<compile_context>
chip_gen: v6e
topology: v6e:2x2x1
jax: 0.10.0
libtpu: 0.0.40
codegen_flags: <defaults>
</compile_context>

<pallas_src>
import jax
import jax.numpy as jnp
from jax.experimental import pallas as pl
from jax.experimental.pallas import tpu as pltpu


# ---------------------------------------------------------------------------
# Fused Pallas kernel: conv1x1+BN -> FReLU -> conv3x3+BN -> FReLU -> SE (+res)
# One grid step == one batch sample.  pad_ref is a single shared padded halo
# scratch reused (sequentially) by FReLU#1, cv2 and FReLU#2.
# ---------------------------------------------------------------------------
def _make_fused_kernel(add):
    def kernel(x_ref, w1_ref, b1_ref, wf1_ref, bf1_ref,
               w2_ref, b2_ref, wf2_ref, bf2_ref,
               wl1_ref, wl2_ref,
               o_ref,
               pad_ref):
        f32 = jnp.float32
        bf16 = jnp.bfloat16

        _, H, W, C1 = x_ref.shape
        c_ = w1_ref.shape[1]
        C2 = o_ref.shape[-1]
        Cp = pad_ref.shape[-1]          # = max(c_, C2)
        N = H * W

        x_bf = x_ref[...]                                          # (1,H,W,C1) bf16

        # ---- zero ONLY the 1-px halo border of the shared scratch ----------
        pad_ref[:, 0:1, :, :] = jnp.zeros((1, 1, W + 2, Cp), f32)
        pad_ref[:, H + 1:H + 2, :, :] = jnp.zeros((1, 1, W + 2, Cp), f32)
        pad_ref[:, 1:H + 1, 0:1, :] = jnp.zeros((1, H, 1, Cp), f32)
        pad_ref[:, 1:H + 1, W + 1:W + 2, :] = jnp.zeros((1, H, 1, Cp), f32)

        # ---- cv1: 1x1 conv (BN scale pre-folded into w1) + BN bias ----------
        z1 = jnp.dot(x_bf.reshape(N, C1), w1_ref[...],
                     preferred_element_type=f32) + b1_ref[...]      # (N, c_)
        z1 = z1.reshape(1, H, W, c_)

        # ---- FReLU #1: max(z1, BN(dwconv3x3(z1))) ---------------------------
        pad_ref[:, 1:H + 1, 1:W + 1, :c_] = z1
        t = z1 * wf1_ref[4]                        # centre tap seeds the acc
        for ky in range(3):
            band = pad_ref[:, ky:ky + H, :, :c_]                    # (1,H,W+2,c_)
            for kx in range(3):
                k = 3 * ky + kx
                if k == 4:
                    continue
                t = t + band[:, :, kx:kx + W, :] * wf1_ref[k]
        a1 = jnp.maximum(z1, t + bf1_ref[...])                      # (1,H,W,c_)

        # ---- cv2: dense 3x3 conv, stride 1, pad 1 (BN scale folded) ---------
        pad_ref[:, 1:H + 1, 1:W + 1, :c_] = a1
        acc = jnp.dot(a1.reshape(N, c_).astype(bf16), w2_ref[4],
                      preferred_element_type=f32)                   # centre tap
        for ky in range(3):
            band = pad_ref[:, ky:ky + H, :, :c_].astype(bf16)       # 1 cast / band
            for kx in range(3):
                k = 3 * ky + kx
                if k == 4:
                    continue
                col = band[:, :, kx:kx + W, :].reshape(N, c_)
                acc = acc + jnp.dot(col, w2_ref[k],
                                    preferred_element_type=f32)
        z2 = (acc + b2_ref[...]).reshape(1, H, W, C2)

        # ---- FReLU #2 --------------------------------------------------------
        pad_ref[:, 1:H + 1, 1:W + 1, :C2] = z2
        t2 = z2 * wf2_ref[4]
        for ky in range(3):
            band = pad_ref[:, ky:ky + H, :, :C2]
            for kx in range(3):
                k = 3 * ky + kx
                if k == 4:
                    continue
                t2 = t2 + band[:, :, kx:kx + W, :] * wf2_ref[k]
        x1 = jnp.maximum(z2, t2 + bf2_ref[...])                     # (1,H,W,C2)

        # ---- SE: GAP -> fc -> relu -> fc -> sigmoid -> scale (+ residual) ----
        y = jnp.sum(x1.reshape(1, N, C2), axis=1) * (1.0 / N)       # (1,C2)
        y = jnp.maximum(jnp.dot(y, wl1_ref[...], preferred_element_type=f32), 0.0)
        y = jax.nn.sigmoid(jnp.dot(y, wl2_ref[...], preferred_element_type=f32))
        out = x1 * y[:, None, None, :]
        if add:
            out = out + x_bf.astype(f32)
        o_ref[...] = out

    return kernel


# ---------------------------------------------------------------------------
# Parameter init / BN folding / wrappers
# ---------------------------------------------------------------------------
def _fold_bn(gamma, beta, mean, var, eps):
    scale = gamma / jnp.sqrt(var + eps)
    bias = beta - mean * scale
    return scale, bias


def init_params(key, c1, c2, e=0.5, ratio=16):
    c_ = int(c2 * e)
    ks = jax.random.split(key, 22)
    f32 = jnp.float32

    def nrm(k, shape, s=0.1):
        return jax.random.normal(k, shape, f32) * s

    def uni(k, shape, lo=0.5, hi=1.5):
        return jax.random.uniform(k, shape, f32, minval=lo, maxval=hi)

    return {
        # cv1: 1x1 conv (c1 -> c_), BN(eps=1e-3), FReLU(c_) (dw 3x3 + BN(1e-5))
        'cv1_w':    nrm(ks[0], (c_, c1, 1, 1)),
        'cv1_bn_g': uni(ks[1], (c_,)), 'cv1_bn_b': nrm(ks[2], (c_,)),
        'cv1_bn_m': nrm(ks[3], (c_,)), 'cv1_bn_v': uni(ks[4], (c_,)),
        'cv1_f_w':  nrm(ks[5], (c_, 1, 3, 3)),
        'cv1_f_g':  uni(ks[6], (c_,)), 'cv1_f_b': nrm(ks[7], (c_,)),
        'cv1_f_m':  nrm(ks[8], (c_,)), 'cv1_f_v': uni(ks[9], (c_,)),
        # cv2: 3x3 conv (c_ -> c2), BN(eps=1e-3), FReLU(c2)
        'cv2_w':    nrm(ks[10], (c2, c_, 3, 3)),
        'cv2_bn_g': uni(ks[11], (c2,)), 'cv2_bn_b': nrm(ks[12], (c2,)),
        'cv2_bn_m': nrm(ks[13], (c2,)), 'cv2_bn_v': uni(ks[14], (c2,)),
        'cv2_f_w':  nrm(ks[15], (c2, 1, 3, 3)),
        'cv2_f_g':  uni(ks[16], (c2,)), 'cv2_f_b': nrm(ks[17], (c2,)),
        'cv2_f_m':  nrm(ks[18], (c2,)), 'cv2_f_v': uni(ks[19], (c2,)),
        # SE linears (PyTorch Linear layout: (out, in), no bias)
        'l1_w': nrm(ks[20], (c1 // ratio, c1)),
        'l2_w': nrm(ks[21], (c1, c1 // ratio)),
    }


def se_bottleneck_nhwc(x_nhwc, params, shortcut=True):
    """Fused SEBottleneck forward; NHWC in / NHWC out, gridded over batch."""
    B, H, W, C1 = x_nhwc.shape
    C2 = params['cv2_w'].shape[0]
    c_ = params['cv1_w'].shape[0]
    # The PyTorch module's SE branch (y.view(b, c1)) only works when c1 == c2.
    assert C1 == C2, "SEBottleneck requires c1 == c2"
    add = bool(shortcut and C1 == C2)

    f32, bf16 = jnp.float32, jnp.bfloat16
    Cp = max(c_, C2)

    # cv1: fold BN(eps=1e-3) scale into the 1x1 conv weight.
    s1, b1 = _fold_bn(params['cv1_bn_g'], params['cv1_bn_b'],
                      params['cv1_bn_m'], params['cv1_bn_v'], 1e-3)
    w1 = (params['cv1_w'].reshape(c_, C1) * s1[:, None]).T.astype(bf16)   # (C1,c_)

    # cv1 FReLU: fold BN(eps=1e-5) scale into the depthwise 3x3 weight.
    sf1, bfb1 = _fold_bn(params['cv1_f_g'], params['cv1_f_b'],
                         params['cv1_f_m'], params['cv1_f_v'], 1e-5)
    wf1 = (params['cv1_f_w'].reshape(c_, 9) * sf1[:, None]).T             # (9,c_)

    # cv2: fold BN(eps=1e-3) scale into the dense 3x3 conv weight.
    s2, b2 = _fold_bn(params['cv2_bn_g'], params['cv2_bn_b'],
                      params['cv2_bn_m'], params['cv2_bn_v'], 1e-3)
    w2 = params['cv2_w'] * s2[:, None, None, None]                        # (C2,c_,3,3)
    w2 = jnp.transpose(w2, (2, 3, 1, 0)).reshape(9, c_, C2).astype(bf16)  # (9,c_,C2)

    # cv2 FReLU.
    sf2, bfb2 = _fold_bn(params['cv2_f_g'], params['cv2_f_b'],
                         params['cv2_f_m'], params['cv2_f_v'], 1e-5)
    wf2 = (params['cv2_f_w'].reshape(C2, 9) * sf2[:, None]).T             # (9,C2)

    wl1 = params['l1_w'].T.astype(f32)                                    # (C1,C1//r)
    wl2 = params['l2_w'].T.astype(f32)                                    # (C1//r,C1)
    r_ = wl1.shape[1]

    # bf16 activations at the HBM boundary (halves the activation read traffic).
    x_bf = x_nhwc.astype(bf16)

    def inv(nd):
        return lambda b: (0,) * nd

    in_specs = [
        pl.BlockSpec((1, H, W, C1), lambda b: (b, 0, 0, 0)),   # x (per-sample)
        pl.BlockSpec((C1, c_), inv(2)),                        # w1
        pl.BlockSpec((1, c_), inv(2)),                         # b1
        pl.BlockSpec((9, c_), inv(2)),                         # wf1
        pl.BlockSpec((1, c_), inv(2)),                         # bf1
        pl.BlockSpec((9, c_, C2), inv(3)),                     # w2
        pl.BlockSpec((1, C2), inv(2)),                         # b2
        pl.BlockSpec((9, C2), inv(2)),                         # wf2
        pl.BlockSpec((1, C2), inv(2)),                         # bf2
        pl.BlockSpec((C1, r_), inv(2)),                        # l1
        pl.BlockSpec((r_, C1), inv(2)),                        # l2
    ]

    # Advisory cost estimate (per full call).
    flops = int(B * H * W * (2 * C1 * c_            # 1x1 conv
                             + 2 * 9 * c_           # FReLU#1 dw conv
                             + 2 * 9 * c_ * C2      # 3x3 conv
                             + 2 * 9 * C2           # FReLU#2 dw conv
                             + 4 * C2)              # SE scale / max / residual
                + B * (2 * C1 * r_ + 2 * r_ * C1))  # SE fc layers
    transcendentals = int(B * C1)
    bytes_accessed = int(x_bf.size * 2 + B * H * W * C2 * 4
                         + w1.size * 2 + w2.size * 2
                         + (wf1.size + wf2.size + wl1.size + wl2.size) * 4
                         + 4 * (c_ * 2 + C2 * 2))

    out = pl.pallas_call(
        _make_fused_kernel(add),
        out_shape=jax.ShapeDtypeStruct((B, H, W, C2), f32),
        grid_spec=pltpu.PrefetchScalarGridSpec(
            num_scalar_prefetch=0,
            grid=(B,),
            in_specs=in_specs,
            out_specs=pl.BlockSpec((1, H, W, C2), lambda b: (b, 0, 0, 0)),
            scratch_shapes=[
                # single shared padded halo buffer, reused by all 3 stages
                pltpu.VMEM((1, H + 2, W + 2, Cp), f32),
            ]),
        compiler_params=pltpu.CompilerParams(
            dimension_semantics=("parallel",),        # v7x: 2 TCs split batch
            vmem_limit_bytes=64 * 1024 * 1024),
        cost_estimate=pl.CostEstimate(
            flops=flops, transcendentals=transcendentals,
            bytes_accessed=bytes_accessed),
    )(x_bf, w1, b1[None, :], wf1, bfb1.reshape(1, c_),
      w2, b2[None, :], wf2, bfb2.reshape(1, C2),
      wl1, wl2)
    return out


def se_bottleneck(x_nchw, params, shortcut=True):
    """PyTorch-layout (NCHW) compatibility wrapper around the NHWC kernel."""
    x_nhwc = jnp.transpose(x_nchw, (0, 2, 3, 1))
    out = se_bottleneck_nhwc(x_nhwc, params, shortcut=shortcut)
    return jnp.transpose(out, (0, 3, 1, 2))


# ---------------------------------------------------------------------------
# Pure-JAX reference (no Pallas) for correctness checking
# ---------------------------------------------------------------------------
def _reference_nhwc(x_nhwc, params, shortcut=True):
    B, H, W, C1 = x_nhwc.shape
    c_ = params['cv1_w'].shape[0]
    C2 = params['cv2_w'].shape[0]
    x = x_nhwc.astype(jnp.float32)

    def bn(v, g, b, m, var, eps):
        return (v - m) * (g / jnp.sqrt(var + eps)) + b

    def dw3x3(z, w):  # w: (C,1,3,3)
        zp = jnp.pad(z, ((0, 0), (1, 1), (1, 1), (0, 0)))
        return sum(zp[:, ky:ky + H, kx:kx + W, :] * w[:, 0, ky, kx]
                   for ky in range(3) for kx in range(3))

    def conv3x3(z, w):  # w: (Cout,Cin,3,3)
        zp = jnp.pad(z, ((0, 0), (1, 1), (1, 1), (0, 0)))
        return sum(jnp.einsum('bhwi,oi->bhwo', zp[:, ky:ky + H, kx:kx + W, :],
                              w[:, :, ky, kx])
                   for ky in range(3) for kx in range(3))

    z1 = jnp.einsum('bhwi,oi->bhwo', x, params['cv1_w'].reshape(c_, C1))
    z1 = bn(z1, params['cv1_bn_g'], params['cv1_bn_b'],
            params['cv1_bn_m'], params['cv1_bn_v'], 1e-3)
    t = bn(dw3x3(z1, params['cv1_f_w']), params['cv1_f_g'], params['cv1_f_b'],
           params['cv1_f_m'], params['cv1_f_v'], 1e-5)
    a1 = jnp.maximum(z1, t)

    z2 = bn(conv3x3(a1, params['cv2_w']), params['cv2_bn_g'], params['cv2_bn_b'],
            params['cv2_bn_m'], params['cv2_bn_v'], 1e-3)
    t2 = bn(dw3x3(z2, params['cv2_f_w']), params['cv2_f_g'], params['cv2_f_b'],
            params['cv2_f_m'], params['cv2_f_v'], 1e-5)
    x1 = jnp.maximum(z2, t2)

    y = jnp.mean(x1, axis=(1, 2))
    y = jnp.maximum(y @ params['l1_w'].T, 0.0)
    y = jax.nn.sigmoid(y @ params['l2_w'].T)
    out = x1 * y[:, None, None, :]
    if shortcut and C1 == C2:
        out = out + x
    return out


if __name__ == "__main__":
    key = jax.random.PRNGKey(0)
    k_x, k_p = jax.random.split(key)

    # c1 == c2 (required by the module's SE branch / residual add)
    B, C, H, W = 2, 32, 8, 8
    x = jax.random.normal(k_x, (B, C, H, W), jnp.float32)
    params = init_params(k_p, C, C, e=0.5, ratio=16)

    out = se_bottleneck(x, params, shortcut=True)
    out = jax.block_until_ready(out)

    assert out.shape == (B, C, H, W), out.shape
    assert bool(jnp.all(jnp.isfinite(out)))

    # Correctness check vs. a pure-JAX reference (bf16 activations / MXU
    # inputs => loose tolerance).
    ref = jnp.transpose(
        _reference_nhwc(jnp.transpose(x, (0, 2, 3, 1)), params, True),
        (0, 3, 1, 2))
    assert bool(jnp.allclose(out, ref, rtol=5e-2, atol=5e-2))

    print("KERNEL_OK")
</pallas_src>

<mosaic_0001>
module attributes {stable_mosaic.version = 11 : i64} {
  func.func @kernel(%arg0: i32, %arg1: memref<1x8x8x32xbf16, #tpu.memory_space<vmem>>, %arg2: memref<32x16xbf16, #tpu.memory_space<vmem>>, %arg3: memref<1x16xf32, #tpu.memory_space<vmem>>, %arg4: memref<9x16xf32, #tpu.memory_space<vmem>>, %arg5: memref<1x16xf32, #tpu.memory_space<vmem>>, %arg6: memref<9x16x32xbf16, #tpu.memory_space<vmem>>, %arg7: memref<1x32xf32, #tpu.memory_space<vmem>>, %arg8: memref<9x32xf32, #tpu.memory_space<vmem>>, %arg9: memref<1x32xf32, #tpu.memory_space<vmem>>, %arg10: memref<32x2xf32, #tpu.memory_space<vmem>>, %arg11: memref<2x32xf32, #tpu.memory_space<vmem>>, %arg12: memref<1x8x8x32xf32, #tpu.memory_space<vmem>>, %arg13: memref<1x10x10x32xf32, #tpu.memory_space<vmem>>) attributes {dimension_semantics = [#tpu.dimension_semantics<parallel>], iteration_bounds = array<i64: 2>, scalar_prefetch = 0 : i64, scratch_operands = 1 : i64, tpu.core_type = #tpu.core_type<tc>, window_params = [{transform_indices = @transform_0, window_bounds = array<i64: 1, 8, 8, 32>}, {pipeline_mode = #tpu.pipeline_mode<synchronous>, transform_indices = @transform_1, window_bounds = array<i64: 32, 16>}, {pipeline_mode = #tpu.pipeline_mode<synchronous>, transform_indices = @transform_2, window_bounds = array<i64: 1, 16>}, {pipeline_mode = #tpu.pipeline_mode<synchronous>, transform_indices = @transform_3, window_bounds = array<i64: 9, 16>}, {pipeline_mode = #tpu.pipeline_mode<synchronous>, transform_indices = @transform_4, window_bounds = array<i64: 1, 16>}, {pipeline_mode = #tpu.pipeline_mode<synchronous>, transform_indices = @transform_5, window_bounds = array<i64: 9, 16, 32>}, {pipeline_mode = #tpu.pipeline_mode<synchronous>, transform_indices = @transform_6, window_bounds = array<i64: 1, 32>}, {pipeline_mode = #tpu.pipeline_mode<synchronous>, transform_indices = @transform_7, window_bounds = array<i64: 9, 32>}, {pipeline_mode = #tpu.pipeline_mode<synchronous>, transform_indices = @transform_8, window_bounds = array<i64: 1, 32>}, {pipeline_mode = #tpu.pipeline_mode<synchronous>, transform_indices = @transform_9, window_bounds = array<i64: 32, 2>}, {pipeline_mode = #tpu.pipeline_mode<synchronous>, transform_indices = @transform_10, window_bounds = array<i64: 2, 32>}, {transform_indices = @transform_11, window_bounds = array<i64: 1, 8, 8, 32>}]} {
    %c0 = arith.constant 0 : index
    %c0_0 = arith.constant 0 : index
    %c0_1 = arith.constant 0 : index
    %c0_2 = arith.constant 0 : index
    %0 = vector.load %arg1[%c0, %c0_0, %c0_1, %c0_2] : memref<1x8x8x32xbf16, #tpu.memory_space<vmem>>, vector<1x8x8x32xbf16>
    %cst = arith.constant 0.000000e+00 : f32
    %1 = vector.broadcast %cst : f32 to vector<1x1x10x32xf32>
    %c0_3 = arith.constant 0 : index
    %c0_4 = arith.constant 0 : index
    %c0_5 = arith.constant 0 : index
    %c0_6 = arith.constant 0 : index
    %2 = vector.load %arg13[%c0_3, %c0_4, %c0_5, %c0_6] : memref<1x10x10x32xf32, #tpu.memory_space<vmem>>, vector<1x1x10x32xf32>
    tpu.vector_store %arg13[%c0_3, %c0_4, %c0_5, %c0_6], %1 {strides = array<i32>} : memref<1x10x10x32xf32, #tpu.memory_space<vmem>>, vector<1x1x10x32xf32>,
    %cst_7 = arith.constant 0.000000e+00 : f32
    %3 = vector.broadcast %cst_7 : f32 to vector<1x1x10x32xf32>
    %c0_8 = arith.constant 0 : index
    %c9 = arith.constant 9 : index
    %c0_9 = arith.constant 0 : index
    %c0_10 = arith.constant 0 : index
    %4 = vector.load %arg13[%c0_8, %c9, %c0_9, %c0_10] : memref<1x10x10x32xf32, #tpu.memory_space<vmem>>, vector<1x1x10x32xf32>
    tpu.vector_store %arg13[%c0_8, %c9, %c0_9, %c0_10], %3 {strides = array<i32>} : memref<1x10x10x32xf32, #tpu.memory_space<vmem>>, vector<1x1x10x32xf32>,
    %cst_11 = arith.constant 0.000000e+00 : f32
    %5 = vector.broadcast %cst_11 : f32 to vector<1x8x1x32xf32>
    %c0_12 = arith.constant 0 : index
    %c1 = arith.constant 1 : index
    %c0_13 = arith.constant 0 : index
    %c0_14 = arith.constant 0 : index
    %6 = vector.load %arg13[%c0_12, %c1, %c0_13, %c0_14] : memref<1x10x10x32xf32, #tpu.memory_space<vmem>>, vector<1x8x1x32xf32>
    tpu.vector_store %arg13[%c0_12, %c1, %c0_13, %c0_14], %5 {strides = array<i32>} : memref<1x10x10x32xf32, #tpu.memory_space<vmem>>, vector<1x8x1x32xf32>,
    %cst_15 = arith.constant 0.000000e+00 : f32
    %7 = vector.broadcast %cst_15 : f32 to vector<1x8x1x32xf32>
    %c0_16 = arith.constant 0 : index
    %c1_17 = arith.constant 1 : index
    %c9_18 = arith.constant 9 : index
    %c0_19 = arith.constant 0 : index
    %8 = vector.load %arg13[%c0_16, %c1_17, %c9_18, %c0_19] : memref<1x10x10x32xf32, #tpu.memory_space<vmem>>, vector<1x8x1x32xf32>
    tpu.vector_store %arg13[%c0_16, %c1_17, %c9_18, %c0_19], %7 {strides = array<i32>} : memref<1x10x10x32xf32, #tpu.memory_space<vmem>>, vector<1x8x1x32xf32>,
    %9 = vector.shape_cast %0 : vector<1x8x8x32xbf16> to vector<64x32xbf16>
    %c0_20 = arith.constant 0 : index
    %c0_21 = arith.constant 0 : index
    %10 = vector.load %arg2[%c0_20, %c0_21] : memref<32x16xbf16, #tpu.memory_space<vmem>>, vector<32x16xbf16>
    %cst_22 = arith.constant dense<0.000000e+00> : vector<64x16xf32>
    %11 = tpu.matmul %9, %10, %cst_22 {dimension_numbers = #tpu.dot_dimension_numbers<[1], [0], [0], [1], [0, 0, 1, 1], [], []>} : vector<64x32xbf16>, vector<32x16xbf16>, vector<64x16xf32> -> vector<64x16xf32>
    %c0_23 = arith.constant 0 : index
    %c0_24 = arith.constant 0 : index
    %12 = vector.load %arg3[%c0_23, %c0_24] : memref<1x16xf32, #tpu.memory_space<vmem>>, vector<1x16xf32>
    %13 = vector.broadcast %12 : vector<1x16xf32> to vector<64x16xf32>
    %14 = arith.addf %11, %13 : vector<64x16xf32>
    %15 = vector.shape_cast %14 : vector<64x16xf32> to vector<1x8x8x16xf32>
    %c0_25 = arith.constant 0 : index
    %c1_26 = arith.constant 1 : index
    %c1_27 = arith.constant 1 : index
    %c0_28 = arith.constant 0 : index
    %16 = vector.load %arg13[%c0_25, %c1_26, %c1_27, %c0_28] : memref<1x10x10x32xf32, #tpu.memory_space<vmem>>, vector<1x8x8x16xf32>
    tpu.vector_store %arg13[%c0_25, %c1_26, %c1_27, %c0_28], %15 {strides = array<i32>} : memref<1x10x10x32xf32, #tpu.memory_space<vmem>>, vector<1x8x8x16xf32>,
    %c4 = arith.constant 4 : index
    %c0_29 = arith.constant 0 : index
    %17 = vector.load %arg4[%c4, %c0_29] : memref<9x16xf32, #tpu.memory_space<vmem>>, vector<1x16xf32>
    %18 = vector.shape_cast %17 : vector<1x16xf32> to vector<16xf32>
    %19 = vector.shape_cast %18 : vector<16xf32> to vector<1x1x1x16xf32>
    %20 = vector.broadcast %19 : vector<1x1x1x16xf32> to vector<1x8x8x16xf32>
    %21 = arith.mulf %15, %20 : vector<1x8x8x16xf32>
    %c0_30 = arith.constant 0 : index
    %c0_31 = arith.constant 0 : index
    %c0_32 = arith.constant 0 : index
    %c0_33 = arith.constant 0 : index
    %22 = vector.load %arg13[%c0_30, %c0_31, %c0_32, %c0_33] : memref<1x10x10x32xf32, #tpu.memory_space<vmem>>, vector<1x8x10x16xf32>
    %23 = vector.extract_strided_slice %22 {offsets = [0, 0, 0, 0], sizes = [1, 8, 8, 16], strides = [1, 1, 1, 1]} : vector<1x8x10x16xf32> to vector<1x8x8x16xf32>
    %c0_34 = arith.constant 0 : index
    %c0_35 = arith.constant 0 : index
    %24 = vector.load %arg4[%c0_34, %c0_35] : memref<9x16xf32, #tpu.memory_space<vmem>>, vector<1x16xf32>
    %25 = vector.shape_cast %24 : vector<1x16xf32> to vector<16xf32>
    %26 = vector.shape_cast %25 : vector<16xf32> to vector<1x1x1x16xf32>
    %27 = vector.broadcast %26 : vector<1x1x1x16xf32> to vector<1x8x8x16xf32>
    %28 = arith.mulf %23, %27 : vector<1x8x8x16xf32>
    %29 = arith.addf %21, %28 : vector<1x8x8x16xf32>
    %30 = vector.extract_strided_slice %22 {offsets = [0, 0, 1, 0], sizes = [1, 8, 8, 16], strides = [1, 1, 1, 1]} : vector<1x8x10x16xf32> to vector<1x8x8x16xf32>
    %c1_36 = arith.constant 1 : index
    %c0_37 = arith.constant 0 : index
    %31 = vector.load %arg4[%c1_36, %c0_37] : memref<9x16xf32, #tpu.memory_space<vmem>>, vector<1x16xf32>
    %32 = vector.shape_cast %31 : vector<1x16xf32> to vector<16xf32>
    %33 = vector.shape_cast %32 : vector<16xf32> to vector<1x1x1x16xf32>
    %34 = vector.broadcast %33 : vector<1x1x1x16xf32> to vector<1x8x8x16xf32>
    %35 = arith.mulf %30, %34 : vector<1x8x8x16xf32>
    %36 = arith.addf %29, %35 : vector<1x8x8x16xf32>
    %37 = vector.extract_strided_slice %22 {offsets = [0, 0, 2, 0], sizes = [1, 8, 8, 16], strides = [1, 1, 1, 1]} : vector<1x8x10x16xf32> to vector<1x8x8x16xf32>
    %c2 = arith.constant 2 : index
    %c0_38 = arith.constant 0 : index
    %38 = vector.load %arg4[%c2, %c0_38] : memref<9x16xf32, #tpu.memory_space<vmem>>, vector<1x16xf32>
    %39 = vector.shape_cast %38 : vector<1x16xf32> to vector<16xf32>
    %40 = vector.shape_cast %39 : vector<16xf32> to vector<1x1x1x16xf32>
    %41 = vector.broadcast %40 : vector<1x1x1x16xf32> to vector<1x8x8x16xf32>
    %42 = arith.mulf %37, %41 : vector<1x8x8x16xf32>
    %43 = arith.addf %36, %42 : vector<1x8x8x16xf32>
    %c0_39 = arith.constant 0 : index
    %c1_40 = arith.constant 1 : index
    %c0_41 = arith.constant 0 : index
    %c0_42 = arith.constant 0 : index
    %44 = vector.load %arg13[%c0_39, %c1_40, %c0_41, %c0_42] : memref<1x10x10x32xf32, #tpu.memory_space<vmem>>, vector<1x8x10x16xf32>
    %45 = vector.extract_strided_slice %44 {offsets = [0, 0, 0, 0], sizes = [1, 8, 8, 16], strides = [1, 1, 1, 1]} : vector<1x8x10x16xf32> to vector<1x8x8x16xf32>
    %c3 = arith.constant 3 : index
    %c0_43 = arith.constant 0 : index
    %46 = vector.load %arg4[%c3, %c0_43] : memref<9x16xf32, #tpu.memory_space<vmem>>, vector<1x16xf32>
    %47 = vector.shape_cast %46 : vector<1x16xf32> to vector<16xf32>
    %48 = vector.shape_cast %47 : vector<16xf32> to vector<1x1x1x16xf32>
    %49 = vector.broadcast %48 : vector<1x1x1x16xf32> to vector<1x8x8x16xf32>
    %50 = arith.mulf %45, %49 : vector<1x8x8x16xf32>
    %51 = arith.addf %43, %50 : vector<1x8x8x16xf32>
    %52 = vector.extract_strided_slice %44 {offsets = [0, 0, 2, 0], sizes = [1, 8, 8, 16], strides = [1, 1, 1, 1]} : vector<1x8x10x16xf32> to vector<1x8x8x16xf32>
    %c5 = arith.constant 5 : index
    %c0_44 = arith.constant 0 : index
    %53 = vector.load %arg4[%c5, %c0_44] : memref<9x16xf32, #tpu.memory_space<vmem>>, vector<1x16xf32>
    %54 = vector.shape_cast %53 : vector<1x16xf32> to vector<16xf32>
    %55 = vector.shape_cast %54 : vector<16xf32> to vector<1x1x1x16xf32>
    %56 = vector.broadcast %55 : vector<1x1x1x16xf32> to vector<1x8x8x16xf32>
    %57 = arith.mulf %52, %56 : vector<1x8x8x16xf32>
    %58 = arith.addf %51, %57 : vector<1x8x8x16xf32>
    %c0_45 = arith.constant 0 : index
    %c2_46 = arith.constant 2 : index
    %c0_47 = arith.constant 0 : index
    %c0_48 = arith.constant 0 : index
    %59 = vector.load %arg13[%c0_45, %c2_46, %c0_47, %c0_48] : memref<1x10x10x32xf32, #tpu.memory_space<vmem>>, vector<1x8x10x16xf32>
    %60 = vector.extract_strided_slice %59 {offsets = [0, 0, 0, 0], sizes = [1, 8, 8, 16], strides = [1, 1, 1, 1]} : vector<1x8x10x16xf32> to vector<1x8x8x16xf32>
    %c6 = arith.constant 6 : index
    %c0_49 = arith.constant 0 : index
    %61 = vector.load %arg4[%c6, %c0_49] : memref<9x16xf32, #tpu.memory_space<vmem>>, vector<1x16xf32>
    %62 = vector.shape_cast %61 : vector<1x16xf32> to vector<16xf32>
    %63 = vector.shape_cast %62 : vector<16xf32> to vector<1x1x1x16xf32>
    %64 = vector.broadcast %63 : vector<1x1x1x16xf32> to vector<1x8x8x16xf32>
    %65 = arith.mulf %60, %64 : vector<1x8x8x16xf32>
    %66 = arith.addf %58, %65 : vector<1x8x8x16xf32>
    %67 = vector.extract_strided_slice %59 {offsets = [0, 0, 1, 0], sizes = [1, 8, 8, 16], strides = [1, 1, 1, 1]} : vector<1x8x10x16xf32> to vector<1x8x8x16xf32>
    %c7 = arith.constant 7 : index
    %c0_50 = arith.constant 0 : index
    %68 = vector.load %arg4[%c7, %c0_50] : memref<9x16xf32, #tpu.memory_space<vmem>>, vector<1x16xf32>
    %69 = vector.shape_cast %68 : vector<1x16xf32> to vector<16xf32>
    %70 = vector.shape_cast %69 : vector<16xf32> to vector<1x1x1x16xf32>
    %71 = vector.broadcast %70 : vector<1x1x1x16xf32> to vector<1x8x8x16xf32>
    %72 = arith.mulf %67, %71 : vector<1x8x8x16xf32>
    %73 = arith.addf %66, %72 : vector<1x8x8x16xf32>
    %74 = vector.extract_strided_slice %59 {offsets = [0, 0, 2, 0], sizes = [1, 8, 8, 16], strides = [1, 1, 1, 1]} : vector<1x8x10x16xf32> to vector<1x8x8x16xf32>
    %c8 = arith.constant 8 : index
    %c0_51 = arith.constant 0 : index
    %75 = vector.load %arg4[%c8, %c0_51] : memref<9x16xf32, #tpu.memory_space<vmem>>, vector<1x16xf32>
    %76 = vector.shape_cast %75 : vector<1x16xf32> to vector<16xf32>
    %77 = vector.shape_cast %76 : vector<16xf32> to vector<1x1x1x16xf32>
    %78 = vector.broadcast %77 : vector<1x1x1x16xf32> to vector<1x8x8x16xf32>
    %79 = arith.mulf %74, %78 : vector<1x8x8x16xf32>
    %80 = arith.addf %73, %79 : vector<1x8x8x16xf32>
    %c0_52 = arith.constant 0 : index
    %c0_53 = arith.constant 0 : index
    %81 = vector.load %arg5[%c0_52, %c0_53] : memref<1x16xf32, #tpu.memory_space<vmem>>, vector<1x16xf32>
    %82 = vector.shape_cast %81 : vector<1x16xf32> to vector<1x1x1x16xf32>
    %83 = vector.broadcast %82 : vector<1x1x1x16xf32> to vector<1x8x8x16xf32>
    %84 = arith.addf %80, %83 : vector<1x8x8x16xf32>
    %85 = arith.maximumf %15, %84 : vector<1x8x8x16xf32>
    %c0_54 = arith.constant 0 : index
    %c1_55 = arith.constant 1 : index
    %c1_56 = arith.constant 1 : index
    %c0_57 = arith.constant 0 : index
    %86 = vector.load %arg13[%c0_54, %c1_55, %c1_56, %c0_57] : memref<1x10x10x32xf32, #tpu.memory_space<vmem>>, vector<1x8x8x16xf32>
    tpu.vector_store %arg13[%c0_54, %c1_55, %c1_56, %c0_57], %85 {strides = array<i32>} : memref<1x10x10x32xf32, #tpu.memory_space<vmem>>, vector<1x8x8x16xf32>,
    %87 = vector.shape_cast %85 : vector<1x8x8x16xf32> to vector<64x16xf32>
    %88 = arith.truncf %87 : vector<64x16xf32> to vector<64x16xbf16>
    %c4_58 = arith.constant 4 : index
    %c0_59 = arith.constant 0 : index
    %c0_60 = arith.constant 0 : index
    %89 = vector.load %arg6[%c4_58, %c0_59, %c0_60] : memref<9x16x32xbf16, #tpu.memory_space<vmem>>, vector<1x16x32xbf16>
    %90 = vector.shape_cast %89 : vector<1x16x32xbf16> to vector<16x32xbf16>
    %cst_61 = arith.constant dense<0.000000e+00> : vector<64x32xf32>
    %91 = tpu.matmul %88, %90, %cst_61 {dimension_numbers = #tpu.dot_dimension_numbers<[1], [0], [0], [1], [0, 0, 1, 1], [], []>} : vector<64x16xbf16>, vector<16x32xbf16>, vector<64x32xf32> -> vector<64x32xf32>
    %c0_62 = arith.constant 0 : index
    %c0_63 = arith.constant 0 : index
    %c0_64 = arith.constant 0 : index
    %c0_65 = arith.constant 0 : index
    %92 = vector.load %arg13[%c0_62, %c0_63, %c0_64, %c0_65] : memref<1x10x10x32xf32, #tpu.memory_space<vmem>>, vector<1x8x10x16xf32>
    %93 = arith.truncf %92 : vector<1x8x10x16xf32> to vector<1x8x10x16xbf16>
    %94 = vector.extract_strided_slice %93 {offsets = [0, 0, 0, 0], sizes = [1, 8, 8, 16], strides = [1, 1, 1, 1]} : vector<1x8x10x16xbf16> to vector<1x8x8x16xbf16>
    %95 = vector.shape_cast %94 : vector<1x8x8x16xbf16> to vector<64x16xbf16>
    %c0_66 = arith.constant 0 : index
    %c0_67 = arith.constant 0 : index
    %c0_68 = arith.constant 0 : index
    %96 = vector.load %arg6[%c0_66, %c0_67, %c0_68] : memref<9x16x32xbf16, #tpu.memory_space<vmem>>, vector<1x16x32xbf16>
    %97 = vector.shape_cast %96 : vector<1x16x32xbf16> to vector<16x32xbf16>
    %cst_69 = arith.constant dense<0.000000e+00> : vector<64x32xf32>
    %98 = tpu.matmul %95, %97, %cst_69 {dimension_numbers = #tpu.dot_dimension_numbers<[1], [0], [0], [1], [0, 0, 1, 1], [], []>} : vector<64x16xbf16>, vector<16x32xbf16>, vector<64x32xf32> -> vector<64x32xf32>
    %99 = arith.addf %91, %98 : vector<64x32xf32>
    %100 = vector.extract_strided_slice %93 {offsets = [0, 0, 1, 0], sizes = [1, 8, 8, 16], strides = [1, 1, 1, 1]} : vector<1x8x10x16xbf16> to vector<1x8x8x16xbf16>
    %101 = vector.shape_cast %100 : vector<1x8x8x16xbf16> to vector<64x16xbf16>
    %c1_70 = arith.constant 1 : index
    %c0_71 = arith.constant 0 : index
    %c0_72 = arith.constant 0 : index
    %102 = vector.load %arg6[%c1_70, %c0_71, %c0_72] : memref<9x16x32xbf16, #tpu.memory_space<vmem>>, vector<1x16x32xbf16>
    %103 = vector.shape_cast %102 : vector<1x16x32xbf16> to vector<16x32xbf16>
    %cst_73 = arith.constant dense<0.000000e+00> : vector<64x32xf32>
    %104 = tpu.matmul %101, %103, %cst_73 {dimension_numbers = #tpu.dot_dimension_numbers<[1], [0], [0], [1], [0, 0, 1, 1], [], []>} : vector<64x16xbf16>, vector<16x32xbf16>, vector<64x32xf32> -> vector<64x32xf32>
    %105 = arith.addf %99, %104 : vector<64x32xf32>
    %106 = vector.extract_strided_slice %93 {offsets = [0, 0, 2, 0], sizes = [1, 8, 8, 16], strides = [1, 1, 1, 1]} : vector<1x8x10x16xbf16> to vector<1x8x8x16xbf16>
    %107 = vector.shape_cast %106 : vector<1x8x8x16xbf16> to vector<64x16xbf16>
    %c2_74 = arith.constant 2 : index
    %c0_75 = arith.constant 0 : index
    %c0_76 = arith.constant 0 : index
    %108 = vector.load %arg6[%c2_74, %c0_75, %c0_76] : memref<9x16x32xbf16, #tpu.memory_space<vmem>>, vector<1x16x32xbf16>
    %109 = vector.shape_cast %108 : vector<1x16x32xbf16> to vector<16x32xbf16>
    %cst_77 = arith.constant dense<0.000000e+00> : vector<64x32xf32>
    %110 = tpu.matmul %107, %109, %cst_77 {dimension_numbers = #tpu.dot_dimension_numbers<[1], [0], [0], [1], [0, 0, 1, 1], [], []>} : vector<64x16xbf16>, vector<16x32xbf16>, vector<64x32xf32> -> vector<64x32xf32>
    %111 = arith.addf %105, %110 : vector<64x32xf32>
    %c0_78 = arith.constant 0 : index
    %c1_79 = arith.constant 1 : index
    %c0_80 = arith.constant 0 : index
    %c0_81 = arith.constant 0 : index
    %112 = vector.load %arg13[%c0_78, %c1_79, %c0_80, %c0_81] : memref<1x10x10x32xf32, #tpu.memory_space<vmem>>, vector<1x8x10x16xf32>
    %113 = arith.truncf %112 : vector<1x8x10x16xf32> to vector<1x8x10x16xbf16>
    %114 = vector.extract_strided_slice %113 {offsets = [0, 0, 0, 0], sizes = [1, 8, 8, 16], strides = [1, 1, 1, 1]} : vector<1x8x10x16xbf16> to vector<1x8x8x16xbf16>
    %115 = vector.shape_cast %114 : vector<1x8x8x16xbf16> to vector<64x16xbf16>
    %c3_82 = arith.constant 3 : index
    %c0_83 = arith.constant 0 : index
    %c0_84 = arith.constant 0 : index
    %116 = vector.load %arg6[%c3_82, %c0_83, %c0_84] : memref<9x16x32xbf16, #tpu.memory_space<vmem>>, vector<1x16x32xbf16>
    %117 = vector.shape_cast %116 : vector<1x16x32xbf16> to vector<16x32xbf16>
    %cst_85 = arith.constant dense<0.000000e+00> : vector<64x32xf32>
    %118 = tpu.matmul %115, %117, %cst_85 {dimension_numbers = #tpu.dot_dimension_numbers<[1], [0], [0], [1], [0, 0, 1, 1], [], []>} : vector<64x16xbf16>, vector<16x32xbf16>, vector<64x32xf32> -> vector<64x32xf32>
    %119 = arith.addf %111, %118 : vector<64x32xf32>
    %120 = vector.extract_strided_slice %113 {offsets = [0, 0, 2, 0], sizes = [1, 8, 8, 16], strides = [1, 1, 1, 1]} : vector<1x8x10x16xbf16> to vector<1x8x8x16xbf16>
    %121 = vector.shape_cast %120 : vector<1x8x8x16xbf16> to vector<64x16xbf16>
    %c5_86 = arith.constant 5 : index
    %c0_87 = arith.constant 0 : index
    %c0_88 = arith.constant 0 : index
    %122 = vector.load %arg6[%c5_86, %c0_87, %c0_88] : memref<9x16x32xbf16, #tpu.memory_space<vmem>>, vector<1x16x32xbf16>
    %123 = vector.shape_cast %122 : vector<1x16x32xbf16> to vector<16x32xbf16>
    %cst_89 = arith.constant dense<0.000000e+00> : vector<64x32xf32>
    %124 = tpu.matmul %121, %123, %cst_89 {dimension_numbers = #tpu.dot_dimension_numbers<[1], [0], [0], [1], [0, 0, 1, 1], [], []>} : vector<64x16xbf16>, vector<16x32xbf16>, vector<64x32xf32> -> vector<64x32xf32>
    %125 = arith.addf %119, %124 : vector<64x32xf32>
    %c0_90 = arith.constant 0 : index
    %c2_91 = arith.constant 2 : index
    %c0_92 = arith.constant 0 : index
    %c0_93 = arith.constant 0 : index
    %126 = vector.load %arg13[%c0_90, %c2_91, %c0_92, %c0_93] : memref<1x10x10x32xf32, #tpu.memory_space<vmem>>, vector<1x8x10x16xf32>
    %127 = arith.truncf %126 : vector<1x8x10x16xf32> to vector<1x8x10x16xbf16>
    %128 = vector.extract_strided_slice %127 {offsets = [0, 0, 0, 0], sizes = [1, 8, 8, 16], strides = [1, 1, 1, 1]} : vector<1x8x10x16xbf16> to vector<1x8x8x16xbf16>
    %129 = vector.shape_cast %128 : vector<1x8x8x16xbf16> to vector<64x16xbf16>
    %c6_94 = arith.constant 6 : index
    %c0_95 = arith.constant 0 : index
    %c0_96 = arith.constant 0 : index
    %130 = vector.load %arg6[%c6_94, %c0_95, %c0_96] : memref<9x16x32xbf16, #tpu.memory_space<vmem>>, vector<1x16x32xbf16>
    %131 = vector.shape_cast %130 : vector<1x16x32xbf16> to vector<16x32xbf16>
    %cst_97 = arith.constant dense<0.000000e+00> : vector<64x32xf32>
    %132 = tpu.matmul %129, %131, %cst_97 {dimension_numbers = #tpu.dot_dimension_numbers<[1], [0], [0], [1], [0, 0, 1, 1], [], []>} : vector<64x16xbf16>, vector<16x32xbf16>, vector<64x32xf32> -> vector<64x32xf32>
    %133 = arith.addf %125, %132 : vector<64x32xf32>
    %134 = vector.extract_strided_slice %127 {offsets = [0, 0, 1, 0], sizes = [1, 8, 8, 16], strides = [1, 1, 1, 1]} : vector<1x8x10x16xbf16> to vector<1x8x8x16xbf16>
    %135 = vector.shape_cast %134 : vector<1x8x8x16xbf16> to vector<64x16xbf16>
    %c7_98 = arith.constant 7 : index
    %c0_99 = arith.constant 0 : index
    %c0_100 = arith.constant 0 : index
    %136 = vector.load %arg6[%c7_98, %c0_99, %c0_100] : memref<9x16x32xbf16, #tpu.memory_space<vmem>>, vector<1x16x32xbf16>
    %137 = vector.shape_cast %136 : vector<1x16x32xbf16> to vector<16x32xbf16>
    %cst_101 = arith.constant dense<0.000000e+00> : vector<64x32xf32>
    %138 = tpu.matmul %135, %137, %cst_101 {dimension_numbers = #tpu.dot_dimension_numbers<[1], [0], [0], [1], [0, 0, 1, 1], [], []>} : vector<64x16xbf16>, vector<16x32xbf16>, vector<64x32xf32> -> vector<64x32xf32>
    %139 = arith.addf %133, %138 : vector<64x32xf32>
    %140 = vector.extract_strided_slice %127 {offsets = [0, 0, 2, 0], sizes = [1, 8, 8, 16], strides = [1, 1, 1, 1]} : vector<1x8x10x16xbf16> to vector<1x8x8x16xbf16>
    %141 = vector.shape_cast %140 : vector<1x8x8x16xbf16> to vector<64x16xbf16>
    %c8_102 = arith.constant 8 : index
    %c0_103 = arith.constant 0 : index
    %c0_104 = arith.constant 0 : index
    %142 = vector.load %arg6[%c8_102, %c0_103, %c0_104] : memref<9x16x32xbf16, #tpu.memory_space<vmem>>, vector<1x16x32xbf16>
    %143 = vector.shape_cast %142 : vector<1x16x32xbf16> to vector<16x32xbf16>
    %cst_105 = arith.constant dense<0.000000e+00> : vector<64x32xf32>
    %144 = tpu.matmul %141, %143, %cst_105 {dimension_numbers = #tpu.dot_dimension_numbers<[1], [0], [0], [1], [0, 0, 1, 1], [], []>} : vector<64x16xbf16>, vector<16x32xbf16>, vector<64x32xf32> -> vector<64x32xf32>
    %145 = arith.addf %139, %144 : vector<64x32xf32>
    %c0_106 = arith.constant 0 : index
    %c0_107 = arith.constant 0 : index
    %146 = vector.load %arg7[%c0_106, %c0_107] : memref<1x32xf32, #tpu.memory_space<vmem>>, vector<1x32xf32>
    %147 = vector.broadcast %146 : vector<1x32xf32> to vector<64x32xf32>
    %148 = arith.addf %145, %147 : vector<64x32xf32>
    %149 = vector.shape_cast %148 : vector<64x32xf32> to vector<1x8x8x32xf32>
    %c0_108 = arith.constant 0 : index
    %c1_109 = arith.constant 1 : index
    %c1_110 = arith.constant 1 : index
    %c0_111 = arith.constant 0 : index
    %150 = vector.load %arg13[%c0_108, %c1_109, %c1_110, %c0_111] : memref<1x10x10x32xf32, #tpu.memory_space<vmem>>, vector<1x8x8x32xf32>
    tpu.vector_store %arg13[%c0_108, %c1_109, %c1_110, %c0_111], %149 {strides = array<i32>} : memref<1x10x10x32xf32, #tpu.memory_space<vmem>>, vector<1x8x8x32xf32>,
    %c4_112 = arith.constant 4 : index
    %c0_113 = arith.constant 0 : index
    %151 = vector.load %arg8[%c4_112, %c0_113] : memref<9x32xf32, #tpu.memory_space<vmem>>, vector<1x32xf32>
    %152 = vector.shape_cast %151 : vector<1x32xf32> to vector<32xf32>
    %153 = vector.shape_cast %152 : vector<32xf32> to vector<1x1x1x32xf32>
    %154 = vector.broadcast %153 : vector<1x1x1x32xf32> to vector<1x8x8x32xf32>
    %155 = arith.mulf %149, %154 : vector<1x8x8x32xf32>
    %c0_114 = arith.constant 0 : index
    %c0_115 = arith.constant 0 : index
    %c0_116 = arith.constant 0 : index
    %c0_117 = arith.constant 0 : index
    %156 = vector.load %arg13[%c0_114, %c0_115, %c0_116, %c0_117] : memref<1x10x10x32xf32, #tpu.memory_space<vmem>>, vector<1x8x10x32xf32>
    %157 = vector.extract_strided_slice %156 {offsets = [0, 0, 0, 0], sizes = [1, 8, 8, 32], strides = [1, 1, 1, 1]} : vector<1x8x10x32xf32> to vector<1x8x8x32xf32>
    %c0_118 = arith.constant 0 : index
    %c0_119 = arith.constant 0 : index
    %158 = vector.load %arg8[%c0_118, %c0_119] : memref<9x32xf32, #tpu.memory_space<vmem>>, vector<1x32xf32>
    %159 = vector.shape_cast %158 : vector<1x32xf32> to vector<32xf32>
    %160 = vector.shape_cast %159 : vector<32xf32> to vector<1x1x1x32xf32>
    %161 = vector.broadcast %160 : vector<1x1x1x32xf32> to vector<1x8x8x32xf32>
    %162 = arith.mulf %157, %161 : vector<1x8x8x32xf32>
    %163 = arith.addf %155, %162 : vector<1x8x8x32xf32>
    %164 = vector.extract_strided_slice %156 {offsets = [0, 0, 1, 0], sizes = [1, 8, 8, 32], strides = [1, 1, 1, 1]} : vector<1x8x10x32xf32> to vector<1x8x8x32xf32>
    %c1_120 = arith.constant 1 : index
    %c0_121 = arith.constant 0 : index
    %165 = vector.load %arg8[%c1_120, %c0_121] : memref<9x32xf32, #tpu.memory_space<vmem>>, vector<1x32xf32>
    %166 = vector.shape_cast %165 : vector<1x32xf32> to vector<32xf32>
    %167 = vector.shape_cast %166 : vector<32xf32> to vector<1x1x1x32xf32>
    %168 = vector.broadcast %167 : vector<1x1x1x32xf32> to vector<1x8x8x32xf32>
    %169 = arith.mulf %164, %168 : vector<1x8x8x32xf32>
    %170 = arith.addf %163, %169 : vector<1x8x8x32xf32>
    %171 = vector.extract_strided_slice %156 {offsets = [0, 0, 2, 0], sizes = [1, 8, 8, 32], strides = [1, 1, 1, 1]} : vector<1x8x10x32xf32> to vector<1x8x8x32xf32>
    %c2_122 = arith.constant 2 : index
    %c0_123 = arith.constant 0 : index
    %172 = vector.load %arg8[%c2_122, %c0_123] : memref<9x32xf32, #tpu.memory_space<vmem>>, vector<1x32xf32>
    %173 = vector.shape_cast %172 : vector<1x32xf32> to vector<32xf32>
    %174 = vector.shape_cast %173 : vector<32xf32> to vector<1x1x1x32xf32>
    %175 = vector.broadcast %174 : vector<1x1x1x32xf32> to vector<1x8x8x32xf32>
    %176 = arith.mulf %171, %175 : vector<1x8x8x32xf32>
    %177 = arith.addf %170, %176 : vector<1x8x8x32xf32>
    %c0_124 = arith.constant 0 : index
    %c1_125 = arith.constant 1 : index
    %c0_126 = arith.constant 0 : index
    %c0_127 = arith.constant 0 : index
    %178 = vector.load %arg13[%c0_124, %c1_125, %c0_126, %c0_127] : memref<1x10x10x32xf32, #tpu.memory_space<vmem>>, vector<1x8x10x32xf32>
    %179 = vector.extract_strided_slice %178 {offsets = [0, 0, 0, 0], sizes = [1, 8, 8, 32], strides = [1, 1, 1, 1]} : vector<1x8x10x32xf32> to vector<1x8x8x32xf32>
    %c3_128 = arith.constant 3 : index
    %c0_129 = arith.constant 0 : index
    %180 = vector.load %arg8[%c3_128, %c0_129] : memref<9x32xf32, #tpu.memory_space<vmem>>, vector<1x32xf32>
    %181 = vector.shape_cast %180 : vector<1x32xf32> to vector<32xf32>
    %182 = vector.shape_cast %181 : vector<32xf32> to vector<1x1x1x32xf32>
    %183 = vector.broadcast %182 : vector<1x1x1x32xf32> to vector<1x8x8x32xf32>
    %184 = arith.mulf %179, %183 : vector<1x8x8x32xf32>
    %185 = arith.addf %177, %184 : vector<1x8x8x32xf32>
    %186 = vector.extract_strided_slice %178 {offsets = [0, 0, 2, 0], sizes = [1, 8, 8, 32], strides = [1, 1, 1, 1]} : vector<1x8x10x32xf32> to vector<1x8x8x32xf32>
    %c5_130 = arith.constant 5 : index
    %c0_131 = arith.constant 0 : index
    %187 = vector.load %arg8[%c5_130, %c0_131] : memref<9x32xf32, #tpu.memory_space<vmem>>, vector<1x32xf32>
    %188 = vector.shape_cast %187 : vector<1x32xf32> to vector<32xf32>
    %189 = vector.shape_cast %188 : vector<32xf32> to vector<1x1x1x32xf32>
    %190 = vector.broadcast %189 : vector<1x1x1x32xf32> to vector<1x8x8x32xf32>
    %191 = arith.mulf %186, %190 : vector<1x8x8x32xf32>
    %192 = arith.addf %185, %191 : vector<1x8x8x32xf32>
    %c0_132 = arith.constant 0 : index
    %c2_133 = arith.constant 2 : index
    %c0_134 = arith.constant 0 : index
    %c0_135 = arith.constant 0 : index
    %193 = vector.load %arg13[%c0_132, %c2_133, %c0_134, %c0_135] : memref<1x10x10x32xf32, #tpu.memory_space<vmem>>, vector<1x8x10x32xf32>
    %194 = vector.extract_strided_slice %193 {offsets = [0, 0, 0, 0], sizes = [1, 8, 8, 32], strides = [1, 1, 1, 1]} : vector<1x8x10x32xf32> to vector<1x8x8x32xf32>
    %c6_136 = arith.constant 6 : index
    %c0_137 = arith.constant 0 : index
    %195 = vector.load %arg8[%c6_136, %c0_137] : memref<9x32xf32, #tpu.memory_space<vmem>>, vector<1x32xf32>
    %196 = vector.shape_cast %195 : vector<1x32xf32> to vector<32xf32>
    %197 = vector.shape_cast %196 : vector<32xf32> to vector<1x1x1x32xf32>
    %198 = vector.broadcast %197 : vector<1x1x1x32xf32> to vector<1x8x8x32xf32>
    %199 = arith.mulf %194, %198 : vector<1x8x8x32xf32>
    %200 = arith.addf %192, %199 : vector<1x8x8x32xf32>
    %201 = vector.extract_strided_slice %193 {offsets = [0, 0, 1, 0], sizes = [1, 8, 8, 32], strides = [1, 1, 1, 1]} : vector<1x8x10x32xf32> to vector<1x8x8x32xf32>
    %c7_138 = arith.constant 7 : index
    %c0_139 = arith.constant 0 : index
    %202 = vector.load %arg8[%c7_138, %c0_139] : memref<9x32xf32, #tpu.memory_space<vmem>>, vector<1x32xf32>
    %203 = vector.shape_cast %202 : vector<1x32xf32> to vector<32xf32>
    %204 = vector.shape_cast %203 : vector<32xf32> to vector<1x1x1x32xf32>
    %205 = vector.broadcast %204 : vector<1x1x1x32xf32> to vector<1x8x8x32xf32>
    %206 = arith.mulf %201, %205 : vector<1x8x8x32xf32>
    %207 = arith.addf %200, %206 : vector<1x8x8x32xf32>
    %208 = vector.extract_strided_slice %193 {offsets = [0, 0, 2, 0], sizes = [1, 8, 8, 32], strides = [1, 1, 1, 1]} : vector<1x8x10x32xf32> to vector<1x8x8x32xf32>
    %c8_140 = arith.constant 8 : index
    %c0_141 = arith.constant 0 : index
    %209 = vector.load %arg8[%c8_140, %c0_141] : memref<9x32xf32, #tpu.memory_space<vmem>>, vector<1x32xf32>
    %210 = vector.shape_cast %209 : vector<1x32xf32> to vector<32xf32>
    %211 = vector.shape_cast %210 : vector<32xf32> to vector<1x1x1x32xf32>
    %212 = vector.broadcast %211 : vector<1x1x1x32xf32> to vector<1x8x8x32xf32>
    %213 = arith.mulf %208, %212 : vector<1x8x8x32xf32>
    %214 = arith.addf %207, %213 : vector<1x8x8x32xf32>
    %c0_142 = arith.constant 0 : index
    %c0_143 = arith.constant 0 : index
    %215 = vector.load %arg9[%c0_142, %c0_143] : memref<1x32xf32, #tpu.memory_space<vmem>>, vector<1x32xf32>
    %216 = vector.shape_cast %215 : vector<1x32xf32> to vector<1x1x1x32xf32>
    %217 = vector.broadcast %216 : vector<1x1x1x32xf32> to vector<1x8x8x32xf32>
    %218 = arith.addf %214, %217 : vector<1x8x8x32xf32>
    %219 = arith.maximumf %149, %218 : vector<1x8x8x32xf32>
    %220 = vector.shape_cast %219 : vector<1x8x8x32xf32> to vector<1x64x32xf32>
    %cst_144 = arith.constant dense<0.000000e+00> : vector<1x32xf32>
    %221 = vector.multi_reduction <add>, %220, %cst_144 [1] : vector<1x64x32xf32> to vector<1x32xf32>
    %cst_145 = arith.constant 1.562500e-02 : f32
    %222 = vector.broadcast %cst_145 : f32 to vector<1x32xf32>
    %223 = arith.mulf %221, %222 : vector<1x32xf32>
    %c0_146 = arith.constant 0 : index
    %c0_147 = arith.constant 0 : index
    %224 = vector.load %arg10[%c0_146, %c0_147] : memref<32x2xf32, #tpu.memory_space<vmem>>, vector<32x2xf32>
    %cst_148 = arith.constant dense<0.000000e+00> : vector<1x2xf32>
    %225 = tpu.matmul %223, %224, %cst_148 {dimension_numbers = #tpu.dot_dimension_numbers<[1], [0], [0], [1], [0, 0, 1, 1], [], []>} : vector<1x32xf32>, vector<32x2xf32>, vector<1x2xf32> -> vector<1x2xf32>
    %cst_149 = arith.constant 0.000000e+00 : f32
    %226 = vector.broadcast %cst_149 : f32 to vector<1x2xf32>
    %227 = arith.maximumf %225, %226 : vector<1x2xf32>
    %c0_150 = arith.constant 0 : index
    %c0_151 = arith.constant 0 : index
    %228 = vector.load %arg11[%c0_150, %c0_151] : memref<2x32xf32, #tpu.memory_space<vmem>>, vector<2x32xf32>
    %cst_152 = arith.constant dense<0.000000e+00> : vector<1x32xf32>
    %229 = tpu.matmul %227, %228, %cst_152 {dimension_numbers = #tpu.dot_dimension_numbers<[1], [0], [0], [1], [0, 0, 1, 1], [], []>} : vector<1x2xf32>, vector<2x32xf32>, vector<1x32xf32> -> vector<1x32xf32>
    %230 = arith.negf %229 : vector<1x32xf32>
    %231 = math.exp %230 : vector<1x32xf32>
    %cst_153 = arith.constant 1.000000e+00 : f32
    %232 = vector.broadcast %cst_153 : f32 to vector<1x32xf32>
    %233 = arith.addf %232, %231 : vector<1x32xf32>
    %234 = arith.divf %232, %233 : vector<1x32xf32>
    %235 = vector.shape_cast %234 : vector<1x32xf32> to vector<1x1x1x32xf32>
    %236 = vector.broadcast %235 : vector<1x1x1x32xf32> to vector<1x8x8x32xf32>
    %237 = arith.mulf %219, %236 : vector<1x8x8x32xf32>
    %238 = arith.extf %0 : vector<1x8x8x32xbf16> to vector<1x8x8x32xf32>
    %239 = arith.addf %237, %238 : vector<1x8x8x32xf32>
    %c0_154 = arith.constant 0 : index
    %c0_155 = arith.constant 0 : index
    %c0_156 = arith.constant 0 : index
    %c0_157 = arith.constant 0 : index
    %240 = vector.load %arg12[%c0_154, %c0_155, %c0_156, %c0_157] : memref<1x8x8x32xf32, #tpu.memory_space<vmem>>, vector<1x8x8x32xf32>
    tpu.vector_store %arg12[%c0_154, %c0_155, %c0_156, %c0_157], %239 {strides = array<i32>} : memref<1x8x8x32xf32, #tpu.memory_space<vmem>>, vector<1x8x8x32xf32>,
    return
  }
  func.func @transform_0(%arg0: i32) -> (i32, i32, i32, i32) {
    %c0_i32 = arith.constant 0 : i32
    %c0_i32_0 = arith.constant 0 : i32
    %c0_i32_1 = arith.constant 0 : i32
    %c0_i32_2 = arith.constant 0 : i32
    return %arg0, %c0_i32, %c0_i32_0, %c0_i32_1 : i32, i32, i32, i32
  }
  func.func @transform_1(%arg0: i32) -> (i32, i32) {
    %c0_i32 = arith.constant 0 : i32
    %c0_i32_0 = arith.constant 0 : i32
    %c0_i32_1 = arith.constant 0 : i32
    return %c0_i32, %c0_i32_0 : i32, i32
  }
  func.func @transform_2(%arg0: i32) -> (i32, i32) {
    %c0_i32 = arith.constant 0 : i32
    %c0_i32_0 = arith.constant 0 : i32
    %c0_i32_1 = arith.constant 0 : i32
    return %c0_i32, %c0_i32_0 : i32, i32
  }
  func.func @transform_3(%arg0: i32) -> (i32, i32) {
    %c0_i32 = arith.constant 0 : i32
    %c0_i32_0 = arith.constant 0 : i32
    %c0_i32_1 = arith.constant 0 : i32
    return %c0_i32, %c0_i32_0 : i32, i32
  }
  func.func @transform_4(%arg0: i32) -> (i32, i32) {
    %c0_i32 = arith.constant 0 : i32
    %c0_i32_0 = arith.constant 0 : i32
    %c0_i32_1 = arith.constant 0 : i32
    return %c0_i32, %c0_i32_0 : i32, i32
  }
  func.func @transform_5(%arg0: i32) -> (i32, i32, i32) {
    %c0_i32 = arith.constant 0 : i32
    %c0_i32_0 = arith.constant 0 : i32
    %c0_i32_1 = arith.constant 0 : i32
    %c0_i32_2 = arith.constant 0 : i32
    return %c0_i32, %c0_i32_0, %c0_i32_1 : i32, i32, i32
  }
  func.func @transform_6(%arg0: i32) -> (i32, i32) {
    %c0_i32 = arith.constant 0 : i32
    %c0_i32_0 = arith.constant 0 : i32
    %c0_i32_1 = arith.constant 0 : i32
    return %c0_i32, %c0_i32_0 : i32, i32
  }
  func.func @transform_7(%arg0: i32) -> (i32, i32) {
    %c0_i32 = arith.constant 0 : i32
    %c0_i32_0 = arith.constant 0 : i32
    %c0_i32_1 = arith.constant 0 : i32
    return %c0_i32, %c0_i32_0 : i32, i32
  }
  func.func @transform_8(%arg0: i32) -> (i32, i32) {
    %c0_i32 = arith.constant 0 : i32
    %c0_i32_0 = arith.constant 0 : i32
    %c0_i32_1 = arith.constant 0 : i32
    return %c0_i32, %c0_i32_0 : i32, i32
  }
  func.func @transform_9(%arg0: i32) -> (i32, i32) {
    %c0_i32 = arith.constant 0 : i32
    %c0_i32_0 = arith.constant 0 : i32
    %c0_i32_1 = arith.constant 0 : i32
    return %c0_i32, %c0_i32_0 : i32, i32
  }
  func.func @transform_10(%arg0: i32) -> (i32, i32) {
    %c0_i32 = arith.constant 0 : i32
    %c0_i32_0 = arith.constant 0 : i32
    %c0_i32_1 = arith.constant 0 : i32
    return %c0_i32, %c0_i32_0 : i32, i32
  }
  func.func @transform_11(%arg0: i32) -> (i32, i32, i32, i32) {
    %c0_i32 = arith.constant 0 : i32
    %c0_i32_0 = arith.constant 0 : i32
    %c0_i32_1 = arith.constant 0 : i32
    %c0_i32_2 = arith.constant 0 : i32
    return %arg0, %c0_i32, %c0_i32_0, %c0_i32_1 : i32, i32, i32, i32
  }
}

</mosaic_0001>

<bundles_post_ra>
// kernel: tpu_custom_call.1
= control target key start
LH: loop header
LB: loop body
LE: loop exit
PB: predicated region body
PF: predicated region fallthrough
CT: control target
= control target key end

     0   :  { %s5752_s0 = inlined_call_operand.hbm [shape: bf16[2,8,8,32], index: 0, kind: input, shape index: {}]   ;;  %s5753_s1 = inlined_call_operand.vmem [shape: bf16[32,16], index: 1, kind: input, shape index: {}]   ;;  %s5754_s2 = inlined_call_operand.vmem [shape: f32[1,16], index: 2, kind: input, shape index: {}]   ;;  %s5755_s3 = inlined_call_operand.vmem [shape: f32[9,16], index: 3, kind: input, shape index: {}]   ;;  %s5756_s4 = inlined_call_operand.vmem [shape: f32[1,16], index: 4, kind: input, shape index: {}]   ;;  %s5757_s5 = inlined_call_operand.hbm [shape: bf16[9,16,32], index: 5, kind: input, shape index: {}]   ;;  %s5758_s6 = inlined_call_operand.vmem [shape: f32[1,32], index: 6, kind: input, shape index: {}]   ;;  %s5759_s7 = inlined_call_operand.vmem [shape: f32[9,32], index: 7, kind: input, shape index: {}]   ;;  %s5760_s8 = inlined_call_operand.vmem [shape: f32[1,32], index: 8, kind: input, shape index: {}]   ;;  %s5761_s9 = inlined_call_operand.vmem [shape: f32[32,2], index: 9, kind: input, shape index: {}]   ;;  %s5762_s10 = inlined_call_operand.vmem [shape: f32[2,32], index: 10, kind: input, shape index: {}]   ;;  %s5763_s11 = inlined_call_operand.hbm [shape: f32[2,8,8,32], index: 11, kind: output, shape index: {}]  }
   0x1   :  { %5777 = sst [smem:[#allocation15_spill]] %s5757_s5 }
   0x2   :  { %5778 = sst [smem:[#allocation16_spill]] %s5763_s11 }
   0x3   :  { %16 = vsyncpa [#allocation4], 0 }
   0x4   :  { %18 = vsyncpa [#allocation4 + $0x1], 0 }
   0x5   :  { %19 = vsyncpa [#allocation7], 0 }
   0x6   :  { %20 = vsyncpa [#allocation5], 0 }
   0x7   :  { %22 = vsyncpa [#allocation5 + $0x1], 0  ;;  %s4145_s17 = smov 0   ;;  %s4147_s18 = smov 0  }
   0x8   :  { %s4149_s19 = smov 0   ;;  %s4151_s20 = smov 0  }
   0x9 LB: > { %5779 = sst [smem:[#allocation12_spill]] %s4062_s17  ;;  %s4166_s21 = sadd.s32 4294967295, %s4074_s20   ;;  %s4074_s20 = sphi %s4151_s20, %s5810_s20   ;;  %s4070_s19 = sphi %s4149_s19, %s5813_s19   ;;  %s4066_s18 = sphi %s4147_s18, %s5812_s18   ;;  %s4062_s17 = sphi %s4145_s17, %s5811_s17  }
   0xa   : > { %s3422_s22 = sadd.s32 4294967294, %s4074_s20   ;;  %p48_p0 = scmp.ne.s32.totalorder %s4066_s18, %s4062_s17 }
   0xb   : > { %p5770_p1 = scmp.eq.s32.totalorder %s4166_s21, 0  ;;  %p288_p3 = scmp.eq.s32.totalorder %s3422_s22, 1 }
   0xc   : > { %p3423_p5 = scmp.ge.s32.totalorder %s4074_s20, 1  ;;  %p295_p7 = scmp.lt.s32.totalorder %s4074_s20, 3 }
   0xd   : > { %p4175_p4 = por %p5770_p1, %p48_p0  ;;  %p4180_p6 = por %p288_p3, %p48_p0 }
   0xe   : > { %p4185_p8 = pnand %p3423_p5, %p295_p7  ;;  %s4076_s26 = smov [#allocation6]  }
   0xf   : > { %s5780_s23 = scalar_select %p4175_p4, 1, 0 }
  0x10   : > { %s5781_s24 = scalar_select %p4180_p6, 1, 0 }
  0x11   : > { %s5783_s25 = scalar_select %p4185_p8, 1, 0 }
  0x12   : > { %5782 = sst [smem:[#allocation13_spill]] %s5781_s24  ;;  %s319_s27 = sshll.u32 %s4076_s26, 4  ;;  %s320_s27 = int_to_ptr.vmem [resolvable:$true] %s319_s27 }
  0x13   : > { %p3869_p9 = pneg %p4185_p8  ;;  %s4199_s29 = sadd.s32 1, %s4074_s20  }
  0x14   : > { %5785 = sst [smem:[#allocation14_spill]] %s4199_s29  ;;  %s35_s30 = sadd.s32 1, %s4070_s19 }
  0x15   : > { %p4194_p11 = pnand %p3869_p9, %p5770_p1  ;;  %s32_s12 = ssub.s32 %s4074_s20, %s4199_s29 }
  0x16   : > { %s3963_s13 = scalar_lea.vmem %s320_s27, 1152  ;;  %p3971_p5 = scmp.lt.s32.totalorder %s320_s27, %s320_s27 }
  0x17   : > { %p3954_p12 = pneg %p4194_p11  ;;  %p3964_p13 = scmp.ne.s32.totalorder %s320_s27, %s3963_s13 }
  0x18   : > { %p3972_p7 = scmp.lt.s32.totalorder %s3963_s13, %s3963_s13 }
  0x19   : > { %p3966_p0 = pnand %p3964_p13, %p3954_p12 }
  0x1a   : > { %p3973_p10 = por %p3972_p7, %p3971_p5 }
  0x1b   : > { %p3967_p3 = pneg %p3966_p0 }
  0x1d   : > { %p3974_p2 = pnand %p3973_p10, %p3967_p3 }
  0x1f   : > { %3977 = shalt.err (!%p3974_p2)
}
  0x20   : > { %s5769_s14 = smov 64   ;;  %s5771_s15 = smov 4  }
  0x21   : > { %s5786_s5 = sld [smem:[#allocation15_spill]]  ;;  %p33_p2 = scmp.eq.s32.totalorder %s32_s12, 0 }
  0x22   : > { %p42_p9 = scmp.ne.s32.totalorder %s4070_s19, %s4066_s18  ;;  %p43_p10 = scmp.eq.s32.totalorder %s4074_s20, 0 }
  0x23   : > { %p3882_p12 = scmp.lt.s32.totalorder %s4074_s20, 2  ;;  %p5787_p0 = scmp.eq.s32.totalorder %s4166_s21, 1 }
  0x24   : > { %s4219_s26 = scalar_select %p33_p2, %s4070_s19, %s35_s30  }
  0x25   : > { %p44_p13 = por %p43_p10, %p42_p9  ;;  %p4223_p3 = por %p5787_p0, %p42_p9 }
  0x26   : > { %s348_s28 = sand.u32 1, %s4070_s19   ;;  %s3623_s29 = sshll.u32 %s4074_s20, 9 }
  0x27   : > { %3872 = dma.hbm_to_vmem [thread:$0]  (!%p4194_p11), %s5786_s5, 1152, %s320_s27, [#allocation7], %s5769_s14, %s5769_s14, %s5771_s15  }
  0x28   : > { %s5788_s13 = scalar_select %p4223_p3, 1, 0 }
  0x29   : > { %s3426_s24 = sshll.u32 %s348_s28, 5  ;;  %s4232_s16 = scalar_lea.hbm %s5752_s0, %s3623_s29 }
  0x2a   : > { %s352_s27 = scalar_lea.vmem [#allocation3], %s3426_s24  ;;  %p4234_p11 = pnand %p3882_p12, %p44_p13 }
  0x2b   : > { %s359_s30 = sshll.u32 %s352_s27, 4  ;;  %s4240_s22 = scalar_lea.sflag [#allocation4], %s348_s28  ;;  %s4238_s30 = int_to_ptr.vmem [resolvable:$true] %s359_s30 }
  0x2c   : > { %s3978_s14 = scalar_lea.hbm %s4232_s16, 512  ;;  %p3980_p7 = pneg %p4234_p11 }
  0x2d   : > { %p3979_p5 = scmp.ne.s32.totalorder %s4232_s16, %s3978_s14  ;;  %s3983_s24 = scalar_lea.hbm %s5752_s0, 1024 }
  0x2e   : > { %p3984_p10 = scmp.lt.s32.totalorder %s4232_s16, %s5752_s0  ;;  %p3985_p12 = scmp.lt.s32.totalorder %s3983_s24, %s3978_s14 }
  0x2f   : > { %p3981_p2 = pnand %p3980_p7, %p3979_p5 }
  0x30   : > { %p3986_p13 = por %p3985_p12, %p3984_p10 }
  0x31   : > { %p3982_p9 = pneg %p3981_p2 }
  0x33   : > { %p3987_p0 = pnand %p3986_p13, %p3982_p9 }
  0x35   : > { %3990 = shalt.err (!%p3987_p0)
}
  0x36   : > { %s3991_s28 = scalar_lea.vmem %s4238_s30, 512  ;;  %s4079_s15 = smov [#allocation3]  }
  0x37   : > { %p3992_p1 = scmp.ne.s32.totalorder %s4238_s30, %s3991_s28  ;;  %s3996_s5 = sshll.u32 %s4079_s15, 4  ;;  %s3997_s5 = int_to_ptr.vmem [resolvable:$false] %s3996_s5 }
  0x38   : > { %s3998_s11 = scalar_lea.vmem %s3997_s5, 1024  ;;  %p3999_p2 = scmp.lt.s32.totalorder %s4238_s30, %s3997_s5 }
  0x39   : > { %p3994_p6 = pnand %p3992_p1, %p3980_p7  ;;  %p4000_p3 = scmp.lt.s32.totalorder %s3998_s11, %s3991_s28 }
  0x3b   : > { %p3995_p5 = pneg %p3994_p6  ;;  %p4001_p4 = por %p4000_p3, %p3999_p2 }
  0x3d   : > { %p4002_p8 = pnand %p4001_p4, %p3995_p5 }
  0x3f   : > { %4005 = shalt.err (!%p4002_p8)
}
  0x40   : > { %s5790_s14 = smov 4   ;;  %s5791_s17 = smov 64  }
  0x41   : > { %3876 = dma.hbm_to_vmem [thread:$0]  (!%p4234_p11), %s4232_s16, 512, %s4238_s30, %s4240_s22, %s5791_s17, %s5791_s17, %s5790_s14  }
  0x42   : > { %p5792_p1 = scmp.ne.s32.totalorder %s5783_s25, 0 }
  0x43   : > { %s4267_s15 = sand.u32 (!%p5792_p1), 1, %s4066_s18   ;;  %p5793_p4 = scmp.ne.s32.totalorder (!%p5792_p1), %s5780_s23, 0 }
  0x44   : > { %371 = sbr.rel (%p5792_p1) target bundleno = 1182 (0x49e), region = 64  ;;  %s3430_s5 = sshll.u32 (!%p5792_p1), %s4267_s15, 5 }
  0x45   : > { %s374_s24 = scalar_lea.sflag (!%p5792_p1), [#allocation4], %s4267_s15  ;;  %s4271_s29 = scalar_lea.vmem (!%p5792_p1), [#allocation3], %s3430_s5 }
  0x49   : > { %4049 = dma.done.wait (%p5793_p4), %s374_s24, 512  }
  0x4a   : > { %4051 = vsyncadd (%p5793_p4), %s374_s24, 4294966784  ;;  %p5794_p6 = scmp.eq.s32.totalorder %s4166_s21, 0 }
  0x4c   : > { %4053 = dma.done.wait (%p5794_p6), [#allocation7], 1152   ;;  %p5795_p8 = pmov %p5794_p6 }
  0x4d   : > { %vm429_vm0 = vcmask 261120   ;;  %vm437_vm1 = vcmask 253952   ;;  %v5775_v0 = vmov 0.0   ;;  %v3924_v1 = vld [vmem:[%s5753_s1 + $0x8] sm:$0xff]   ;;  %v3925_v2 = vld [vmem:[%s5753_s1] sm:$0xff]   ;;  %v425_v5 = vld [vmem:[%s4271_s29 + $0x10] sm:$0xff]  }
  0x4e   : > { %4055 = vsyncadd (%p5795_p8), [#allocation7], 4294966144  ;;  %440 = vst.msk [vmem:[#allocation2 + $0x30] sm:$0x1] %vm437_vm1, %v5775_v0  ;;  %3743 = vmatprep.subr.bf16.mxu0 %v3924_v1  ;;  %v421_v3 = vld [vmem:[%s4271_s29] sm:$0xff]   ;;  %v423_v4 = vld [vmem:[%s4271_s29 + $0x8] sm:$0xff]  }
  0x4f   : > { %448 = vst.msk [vmem:[#allocation2 + $0x39] sm:$0x1] %vm437_vm1, %v5775_v0  ;;  %438 = vst.msk [vmem:[#allocation2 + $0x10] sm:$0x1] %vm437_vm1, %v5775_v0  ;;  %3744 = vmatpush3.bf16.msra.mxu0 %v3924_v1  ;;  %3747 = vmatprep.mubr.msk.bf16.mxu0 %vm429_vm0, %v421_v3  ;;  %v427_v6 = vld [vmem:[%s4271_s29 + $0x18] sm:$0xff]   ;;  %vm431_vm2 = vcmask 254976  }
  0x50   : > { %430 = vst.msk [vmem:[#allocation2] sm:$0xff] %vm429_vm0, %v5775_v0  ;;  %434 = vst.msk [vmem:[#allocation2 + $0x90] sm:$0xff] %vm429_vm0, %v5775_v0  ;;  %3745 = vmatprep.subr.bf16.mxu0 %v3925_v2  ;;  %v3930_v7 = vld [vmem:[#allocation6] sm:$0xff]   ;;  %v3932_v9 = vld [vmem:[#allocation6 + $0x8] sm:$0xff]   ;;  %vm574_vm3 = vcmask 130048   ;;  %vm748_vm4 = vcmask 1045504  }
  0x51   : > { %439 = vst.msk [vmem:[#allocation2 + $0x20] sm:$0x1] %vm437_vm1, %v5775_v0  ;;  %441 = vst.msk [vmem:[#allocation2 + $0x40] sm:$0x1] %vm437_vm1, %v5775_v0  ;;  %v4333_v8 = vld [vmem:[#allocation6 + $0x20] sm:$0xff]   ;;  %3755 = vmatprep.subr.bf16.mxu1 %v3930_v7  ;;  %v4336_v10 = vld [vmem:[#allocation6 + $0x18] sm:$0xff]  }
  0x52   : > { %442 = vst.msk [vmem:[#allocation2 + $0x50] sm:$0x1] %vm437_vm1, %v5775_v0  ;;  %443 = vst.msk [vmem:[#allocation2 + $0x60] sm:$0x1] %vm437_vm1, %v5775_v0  ;;  %3756 = vmatpush3.bf16.msra.mxu1 %v3930_v7  ;;  %v4344_v13 = vld [vmem:[%s5755_s3 + $0x1] ss:$0 sm:$0xff] }
  0x53   : > { %444 = vst.msk [vmem:[#allocation2 + $0x70] sm:$0x1] %vm437_vm1, %v5775_v0  ;;  %445 = vst.msk [vmem:[#allocation2 + $0x80] sm:$0x1] %vm437_vm1, %v5775_v0  ;;  %3746 = vmatpush3.bf16.msra.mxu0 %v3925_v2  ;;  %3765 = vmatprep.subr.bf16.mxu1 %v4333_v8  ;;  %v4349_v14 = vld [vmem:[%s5755_s3 + $0x2] ss:$0 sm:$0xff] }
  0x54   : > { %446 = vst.msk [vmem:[#allocation2 + $0x19] sm:$0x1] %vm437_vm1, %v5775_v0  ;;  %447 = vst.msk [vmem:[#allocation2 + $0x29] sm:$0x1] %vm437_vm1, %v5775_v0  ;;  %3775 = vmatprep.subr.bf16.mxu0 %v3932_v9  ;;  %v4354_v17 = vld [vmem:[%s5754_s2] ss:$0 sm:$0xff] }
  0x55   : > { %449 = vst.msk [vmem:[#allocation2 + $0x49] sm:$0x1] %vm437_vm1, %v5775_v0  ;;  %450 = vst.msk [vmem:[#allocation2 + $0x59] sm:$0x1] %vm437_vm1, %v5775_v0  ;;  %v4366_v21 = vld [vmem:[%s5755_s3 + $0x7] ss:$0 sm:$0xff] }
  0x56   : > { %451 = vst.msk [vmem:[#allocation2 + $0x69] sm:$0x1] %vm437_vm1, %v5775_v0  ;;  %452 = vst.msk [vmem:[#allocation2 + $0x79] sm:$0x1] %vm437_vm1, %v5775_v0  ;;  %3748 = vmatmul.mubr.msk.bf16.vlgmr.msra.gmra.mxu0 %vm429_vm0, %v423_v4  ;;  %v4371_v23 = vld [vmem:[%s5755_s3] ss:$0 sm:$0xff] }
  0x57   : > { %453 = vst.msk [vmem:[#allocation2 + $0x89] sm:$0x1] %vm437_vm1, %v5775_v0  ;;  %3751 = vmatprep.mubr.msk.bf16.mxu0 %vm429_vm0, %v425_v5  ;;  %3776 = vmatpush3.bf16.msra.mxu0 %v3932_v9  ;;  %v4339_v11 = vld [vmem:[#allocation2] sm:$0xff]  ;;  %v918_v15 = vld [vmem:[#allocation2 + $0x90] sm:$0xff]  ;;  %v4379_v26 = vld [vmem:[%s5755_s3 + $0x8] ss:$0 sm:$0xff] }
  0x58   : > { %432 = vst.msk [vmem:[#allocation2 + $0x8] sm:$0x3] %vm431_vm2, %v5775_v0  ;;  %435 = vst.msk [vmem:[#allocation2 + $0x98] sm:$0x3] %vm431_vm2, %v5775_v0  ;;  %3795 = vmatprep.subr.bf16.mxu0 %v4336_v10  ;;  %v638_v18 = vmul.f32 %v4344_v13, %v4339_v11  ;;  %v4361_v20 = vpack.c.bf16 %v4339_v11, %v4339_v11  ;;  %v716_v24 = vmul.f32 %v4349_v14, %v4339_v11  ;;  %vm670_vm5 = vcmask 1046528   ;;  %s3432_s27 = sshll.u32 %s4267_s15, 6 }
  0x59   : > { %v960_v27 = vmul.f32 %v4366_v21, %v918_v15  ;;  %v1037_v30 = vmul.f32 %v4379_v26, %v918_v15  ;;  %v617_v38 = vmul.f32 %v4371_v23, %v4339_v11  ;;  %v4400_v39 = vld [vmem:[%s5755_s3 + $0x4] ss:$0 sm:$0xff]  ;;  %v4422_v55 = vld [vmem:[%s5755_s3 + $0x6] ss:$0 sm:$0xff]  ;;  %v4427_v57 = vld [vmem:[%s5755_s3 + $0x5] ss:$0 sm:$0xff] }
  0x5a   : > { %v671_v33 = vrot.slane %v638_v18, 1  ;;  %v1373_v35 = vshrl.u32 %v4361_v20, 16  ;;  %v1376_v36 = vshll.u32 %v4361_v20, 16  ;;  %v749_v40 = vrot.slane %v716_v24, 2  ;;  %v4466_v24 = vld [vmem:[%s5755_s3 + $0x3] ss:$0 sm:$0xff] }
  0x5b   : > { %v999_v43 = vrot.slane %v960_v27, 1  ;;  %v1076_v47 = vrot.slane %v1037_v30, 2  ;;  %v4431_v60 = vmul.f32 %v4422_v55, %v918_v15  ;;  %vm1369_vm6 = vsmask.f32 3328  ;;  %s3684_s28 = sshll.u32 %s4166_s21, 10  ;;  %s419_s11 = scalar_lea.vmem [#allocation8], %s3432_s27 }
  0x5c   : > { %v4410_v51 = vrot.slane %v1373_v35, 4  ;;  %v4412_v52 = vrot.slane %v1376_v36, 5  ;;  %vm1370_vm7 = vsmask.f32 7440  ;;  %vm1590_vm9 = vcmask 1042432   ;;  %s3339_s14 = sshll.u32 %s419_s11, 4  ;;  %s5701_s14 = int_to_ptr.vmem [resolvable:$true] %s3339_s14 }
  0x5d   : > { %vm4837_vm8 = vmor %vm1369_vm6, %vm1370_vm7  ;;  %vm1591_vm10 = vcmask 1046532   ;;  %vm4081_vm12 = vmmov 0   ;;  %vm3209_vm13 = vcmask 1041408   ;;  %vm3205_vm14 = vcmask 15360   ;;  %s5803_s17 = sld [smem:[#allocation16_spill]]  ;;  %s3326_s23 = scalar_lea.sflag [#allocation5], %s4267_s15 }
  0x5e   : > { %3752 = vmatmul.mubr.msk.bf16.gmra.mxu0 %vm429_vm0, %v427_v6  ;;  %vm4944_vm11 = vmor %vm1590_vm9, %vm1591_vm10  ;;  %s4006_s25 = scalar_lea.vmem %s5701_s14, 1024  ;;  %p5805_p11 = scmp.ne.s32.totalorder %s5788_s13, 0 }
  0x5f   : > { %v597_v12 = vld [vmem:[#allocation2 + $0x8] sm:$0x3]  ;;  %v919_v16 = vld [vmem:[#allocation2 + $0x98] sm:$0x3]  ;;  %p4007_p3 = scmp.ne.s32.totalorder %s5701_s14, %s4006_s25  ;;  %s4082_s16 = smov [#allocation8]  }
  0x60   : > { %v639_v19 = vmul.f32 %v4344_v13, %v597_v12  ;;  %v717_v25 = vmul.f32 %v4349_v14, %v597_v12  ;;  %v961_v28 = vmul.f32 %v4366_v21, %v919_v16  ;;  %v1038_v31 = vmul.f32 %v4379_v26, %v919_v16  ;;  %v1134_v56 = vld [vmem:[#allocation2 + $0x8] sm:$0x3]  ;;  %s4010_s30 = sshll.u32 %s4082_s16, 4  ;;  %s4011_s30 = int_to_ptr.vmem [resolvable:$false] %s4010_s30 }
  0x61   : > { %v4454_v9 = vpack.c.bf16 %v1134_v56, %v1134_v56  ;;  %p4008_p7 = pnand %p4007_p3, %p5805_p11  ;;  %s4012_s12 = scalar_lea.vmem %s4011_s30, 2048 }
  0x62   : > { %v672_v34 = vrot.slane %v639_v19, 1  ;;  %v750_v41 = vrot.slane %v717_v25, 2  ;;  %v1000_v44 = vrot.slane %v961_v28, 1  ;;  %v1077_v48 = vrot.slane %v1038_v31, 2  ;;  %p4013_p10 = scmp.lt.s32.totalorder %s5701_s14, %s4011_s30  ;;  %p4014_p12 = scmp.lt.s32.totalorder %s4012_s12, %s4006_s25 }
  0x63   : > { %s5804_s5 = smov %s5803_s17  ;;  %s5699_s24 = scalar_lea.hbm %s5803_s17, %s3684_s28 }
  0x64   : > { %v673_v49 = vsel %vm670_vm5, %v671_v33, %v672_v34  ;;  %v751_v58 = vsel %vm748_vm4, %v749_v40, %v750_v41  ;;  %v4439_v63 = vsel %vm670_vm5, %v999_v43, %v1000_v44  ;;  %v4442_v1 = vsel %vm748_vm4, %v1076_v47, %v1077_v48  ;;  %p4009_p9 = pneg %p4008_p7  ;;  %p4015_p13 = por %p4014_p12, %p4013_p10 }
  0x66   : > { %p4016_p0 = pnand %p4015_p13, %p4009_p9 }
 0x116   : > { %v3749_v22 = vpop.f32.mrf.mxu0 }
 0x117   : > { %v4384_v29 = vadd.f32 %v3749_v22, %v4354_v17 }
 0x118   : > { %v543_v32 = vpop.f32.mrf.mxu0 }
 0x119   : > { %577 = vst.msk [vmem:[#allocation2 + $0x31] sm:$0xff] %vm574_vm3, %v4384_v29  ;;  %v4393_v37 = vadd.f32 %v4354_v17, %v543_v32  ;;  %v4446_v2 = vmul.f32 %v4400_v39, %v4384_v29 }
 0x11a   : > { %v3750_v42 = vpop.f32.mrf.mxu0 }
 0x11b   : > { %575 = vst.msk [vmem:[#allocation2 + $0x11] sm:$0xff] %vm574_vm3, %v4393_v37  ;;  %v588_v45 = vmul.f32 %v4400_v39, %v4393_v37  ;;  %v4407_v46 = vadd.f32 %v3750_v42, %v4354_v17 }
 0x11c   : > { %v546_v50 = vpop.f32.mrf.mxu0 }
 0x11d   : > { %v625_v53 = vadd.f32 %v617_v38, %v588_v45  ;;  %578 = vst.msk [vmem:[#allocation2 + $0x41] sm:$0xff] %vm574_vm3, %v4407_v46  ;;  %v4417_v54 = vadd.f32 %v4354_v17, %v546_v50  ;;  %v591_v5 = vmul.f32 %v4400_v39, %v4407_v46 }
 0x11e   : > { %v3753_v59 = vpop.f32.mrf.mxu0 }
 0x11f   : > { %v703_v61 = vadd.f32 %v673_v49, %v625_v53  ;;  %576 = vst.msk [vmem:[#allocation2 + $0x21] sm:$0xff] %vm574_vm3, %v4417_v54  ;;  %v4436_v62 = vadd.f32 %v3753_v59, %v4354_v17  ;;  %v589_v18 = vmul.f32 %v4400_v39, %v4417_v54 }
 0x120   : > { %v4448_v3 = vld [vmem:[#allocation2 + $0x30] sm:$0xff]  ;;  %v794_v4 = vld [vmem:[#allocation2 + $0x38] sm:$0x3] }
 0x121   : > { %v603_v6 = vld [vmem:[#allocation2 + $0x38] sm:$0x3]  ;;  %v835_v12 = vmul.f32 %v4427_v57, %v4448_v3  ;;  %v836_v15 = vmul.f32 %v4427_v57, %v794_v4  ;;  %v781_v16 = vadd.f32 %v751_v58, %v703_v61  ;;  %581 = vst.msk [vmem:[#allocation2 + $0x71] sm:$0xff] %vm574_vm3, %v4436_v62  ;;  %v620_v25 = vmul.f32 %v4371_v23, %v4448_v3 }
 0x122   : > { %v789_v19 = vld [vmem:[#allocation2 + $0x10] sm:$0xff]  ;;  %v790_v22 = vld [vmem:[#allocation2 + $0x18] sm:$0x3]  ;;  %v644_v27 = vmul.f32 %v4344_v13, %v4448_v3  ;;  %v645_v28 = vmul.f32 %v4344_v13, %v603_v6  ;;  %v722_v30 = vmul.f32 %v4349_v14, %v4448_v3  ;;  %v4485_v44 = vmul.f32 %v4466_v24, %v4448_v3 }
 0x123   : > { %v869_v31 = vrot.slane %v835_v12, 2  ;;  %v870_v32 = vrot.slane %v836_v15, 2  ;;  %v810_v33 = vmul.f32 %v4466_v24, %v789_v19  ;;  %v831_v34 = vmul.f32 %v4427_v57, %v789_v19 }
 0x124   : > { %v832_v35 = vmul.f32 %v4427_v57, %v790_v22  ;;  %v628_v36 = vadd.f32 %v620_v25, %v591_v5  ;;  %v680_v38 = vrot.slane %v644_v27, 1  ;;  %v681_v40 = vrot.slane %v645_v28, 1  ;;  %v4478_v41 = vld [vmem:[#allocation2 + $0x40] sm:$0xff]  ;;  %v796_v42 = vld [vmem:[#allocation2 + $0x48] sm:$0x3] }
 0x125   : > { %v4481_v43 = vsel %vm748_vm4, %v869_v31, %v870_v32  ;;  %v863_v45 = vrot.slane %v831_v34, 2  ;;  %v723_v47 = vmul.f32 %v4349_v14, %v603_v6  ;;  %v909_v48 = vld [vmem:[#allocation2 + $0x48] sm:$0x3]  ;;  %v818_v49 = vadd.f32 %v810_v33, %v781_v16 }
 0x126   : > { %v864_v50 = vrot.slane %v832_v35, 2  ;;  %v682_v53 = vsel %vm670_vm5, %v680_v38, %v681_v40  ;;  %v758_v56 = vrot.slane %v722_v30, 2  ;;  %v837_v61 = vmul.f32 %v4427_v57, %v4478_v41  ;;  %v4504_v16 = vld [vmem:[#allocation2 + $0x20] sm:$0xff]  ;;  %v599_v30 = vld [vmem:[#allocation2 + $0x18] sm:$0x3] }
 0x127   : > { %v706_v58 = vadd.f32 %v682_v53, %v628_v36  ;;  %v759_v59 = vrot.slane %v723_v47, 2  ;;  %v838_v4 = vmul.f32 %v4427_v57, %v796_v42  ;;  %v4495_v12 = vmul.f32 %v4366_v21, %v4478_v41  ;;  %v601_v35 = vld [vmem:[#allocation2 + $0x28] sm:$0x3] }
 0x128   : > { %v865_v5 = vsel %vm748_vm4, %v863_v45, %v864_v50  ;;  %v4498_v6 = vmul.f32 %v4366_v21, %v909_v48  ;;  %v4502_v15 = vmul.f32 %v4379_v26, %v4478_v41  ;;  %v813_v25 = vmul.f32 %v4466_v24, %v4478_v41  ;;  %v905_v47 = vld [vmem:[#allocation2 + $0x28] sm:$0x3] }
 0x129   : > { %v760_v22 = vsel %vm748_vm4, %v758_v56, %v759_v59  ;;  %v872_v27 = vrot.slane %v837_v61, 2  ;;  %v873_v28 = vrot.slane %v838_v4, 2  ;;  %v895_v31 = vadd.f32 %v865_v5, %v818_v49 }
 0x12a   : > { %v784_v32 = vadd.f32 %v760_v22, %v706_v58  ;;  %v984_v33 = vrot.slane %v4495_v12, 1  ;;  %v4511_v34 = vmul.f32 %v4379_v26, %v909_v48  ;;  %v985_v38 = vrot.slane %v4498_v6, 1 }
 0x12b   : > { %v874_v36 = vsel %vm748_vm4, %v872_v27, %v873_v28  ;;  %v618_v40 = vmul.f32 %v4371_v23, %v789_v19  ;;  %v619_v42 = vmul.f32 %v4371_v23, %v4504_v16  ;;  %v640_v49 = vmul.f32 %v4344_v13, %v789_v19 }
 0x12c   : > { %v821_v45 = vadd.f32 %v813_v25, %v784_v32  ;;  %v641_v50 = vmul.f32 %v4344_v13, %v599_v30  ;;  %v1062_v48 = vrot.slane %v4511_v34, 2  ;;  %v642_v56 = vmul.f32 %v4344_v13, %v4504_v16  ;;  %v792_v32 = vld [vmem:[#allocation2 + $0x28] sm:$0x3] }
 0x12d   : > { %v626_v53 = vadd.f32 %v618_v40, %v589_v18  ;;  %v643_v58 = vmul.f32 %v4344_v13, %v601_v35  ;;  %v627_v59 = vadd.f32 %v619_v42, %v4446_v2  ;;  %v674_v61 = vrot.slane %v640_v49, 1 }
 0x12e   : > { %v675_v4 = vrot.slane %v641_v50, 1  ;;  %v718_v5 = vmul.f32 %v4349_v14, %v789_v19  ;;  %v677_v22 = vrot.slane %v642_v56, 1  ;;  %v719_v27 = vmul.f32 %v4349_v14, %v599_v30 }
 0x12f   : > { %v678_v25 = vrot.slane %v643_v58, 1  ;;  %v720_v28 = vmul.f32 %v4349_v14, %v4504_v16  ;;  %v4530_v18 = vadd.f32 %v874_v36, %v821_v45  ;;  %v721_v0 = vmul.f32 %v4349_v14, %v601_v35  ;;  %v907_v35 = vld [vmem:[#allocation2 + $0x38] sm:$0x3] }
 0x130   : > { %v676_v40 = vsel %vm670_vm5, %v674_v61, %v675_v4  ;;  %v752_v7 = vrot.slane %v718_v5, 2  ;;  %v753_v49 = vrot.slane %v719_v27, 2  ;;  %v833_v30 = vmul.f32 %v4427_v57, %v4504_v16 }
 0x131   : > { %v679_v2 = vsel %vm670_vm5, %v677_v22, %v678_v25  ;;  %v704_v42 = vadd.f32 %v676_v40, %v626_v53  ;;  %v755_v19 = vrot.slane %v720_v28, 2  ;;  %v756_v56 = vrot.slane %v721_v0, 2 }
 0x132   : > { %v705_v50 = vadd.f32 %v679_v2, %v627_v59  ;;  %v834_v58 = vmul.f32 %v4427_v57, %v792_v32  ;;  %v754_v36 = vsel %vm748_vm4, %v752_v7, %v753_v49  ;;  %v811_v45 = vmul.f32 %v4466_v24, %v4504_v16 }
 0x133   : > { %v925_v61 = vmul.f32 %v4422_v55, %v4504_v16  ;;  %v926_v53 = vmul.f32 %v4422_v55, %v4448_v3  ;;  %v757_v0 = vsel %vm748_vm4, %v755_v19, %v756_v56  ;;  %v782_v59 = vadd.f32 %v754_v36, %v704_v42 }
 0x134   : > { %v866_v4 = vrot.slane %v833_v30, 2  ;;  %v867_v5 = vrot.slane %v834_v58, 2  ;;  %v783_v22 = vadd.f32 %v757_v0, %v705_v50  ;;  %v927_v25 = vmul.f32 %v4422_v55, %v4478_v41 }
 0x135   : > { %v946_v7 = vmul.f32 %v4366_v21, %v4504_v16  ;;  %v947_v27 = vmul.f32 %v4366_v21, %v905_v47  ;;  %v819_v28 = vadd.f32 %v811_v45, %v782_v59  ;;  %v933_v32 = vadd.f32 %v925_v61, %v895_v31 }
 0x136   : > { %v948_v40 = vmul.f32 %v4366_v21, %v4448_v3  ;;  %v949_v2 = vmul.f32 %v4366_v21, %v907_v35  ;;  %v820_v42 = vadd.f32 %v4485_v44, %v783_v22  ;;  %v868_v49 = vsel %vm748_vm4, %v866_v4, %v867_v5  ;;  %v4565_v22 = vld [vmem:[#allocation2 + $0x70] sm:$0xff] }
 0x137   : > { %v978_v19 = vrot.slane %v946_v7, 1  ;;  %v979_v50 = vrot.slane %v947_v27, 1  ;;  %v896_v56 = vadd.f32 %v868_v49, %v819_v28  ;;  %v1023_v36 = vmul.f32 %v4379_v26, %v4504_v16 }
 0x138   : > { %v981_v30 = vrot.slane %v948_v40, 1  ;;  %v982_v58 = vrot.slane %v949_v2, 1  ;;  %v897_v45 = vadd.f32 %v4481_v43, %v820_v42  ;;  %v1024_v61 = vmul.f32 %v4379_v26, %v905_v47  ;;  %v802_v43 = vld [vmem:[#allocation2 + $0x78] sm:$0x3]  ;;  %v559_v40 = vpop.f32.mrf.mxu0  ;;  %v4581_v42 = vld [vmem:[%s5756_s4] ss:$0 sm:$0xff] }
 0x139   : > { %v980_v31 = vsel %vm670_vm5, %v978_v19, %v979_v50  ;;  %v1025_v0 = vmul.f32 %v4379_v26, %v4448_v3  ;;  %v934_v44 = vadd.f32 %v926_v53, %v896_v56  ;;  %v1026_v5 = vmul.f32 %v4379_v26, %v907_v35 }
 0x13a   : > { %v983_v59 = vsel %vm670_vm5, %v981_v30, %v982_v58  ;;  %v1010_v4 = vadd.f32 %v980_v31, %v933_v32  ;;  %v935_v7 = vadd.f32 %v927_v25, %v897_v45  ;;  %v1055_v27 = vrot.slane %v1023_v36, 2  ;;  %v3754_v31 = vpop.f32.mrf.mxu0 }
 0x13b   : > { %v1056_v16 = vrot.slane %v1024_v61, 2  ;;  %v1058_v28 = vrot.slane %v1025_v0, 2  ;;  %v986_v3 = vsel %vm670_vm5, %v984_v33, %v985_v38  ;;  %v1011_v47 = vadd.f32 %v983_v59, %v934_v44 }
 0x13c   : > { %v1059_v53 = vrot.slane %v1026_v5, 2  ;;  %v5796_v35 = vrot.slane %v4502_v15, 2  ;;  %v1012_v25 = vadd.f32 %v986_v3, %v935_v7  ;;  %v4585_v12 = vmul.f32 %v4400_v39, %v4436_v62 }
 0x13d   : > { %v1057_v2 = vsel %vm748_vm4, %v1055_v27, %v1056_v16  ;;  %v843_v6 = vmul.f32 %v4427_v57, %v4565_v22  ;;  %v844_v34 = vmul.f32 %v4427_v57, %v802_v43  ;;  %v4592_v38 = vadd.f32 %v4354_v17, %v559_v40  ;;  %v611_v16 = vld [vmem:[#allocation2 + $0x78] sm:$0x3] }
 0x13e   : > { %v1063_v32 = vsel %vm748_vm4, %v5796_v35, %v1062_v48  ;;  %v1060_v33 = vsel %vm748_vm4, %v1058_v28, %v1059_v53  ;;  %v1087_v15 = vadd.f32 %v1057_v2, %v1010_v4  ;;  %v605_v48 = vld [vmem:[#allocation2 + $0x48] sm:$0x3]  ;;  %v621_v56 = vmul.f32 %v4371_v23, %v4478_v41  ;;  %v562_v53 = vpop.f32.mrf.mxu0 }
 0x13f   : > { %v1088_v49 = vadd.f32 %v1060_v33, %v1011_v47  ;;  %v1089_v19 = vadd.f32 %v1063_v32, %v1012_v25  ;;  %v881_v50 = vrot.slane %v843_v6, 2  ;;  %v882_v58 = vrot.slane %v844_v34, 2  ;;  %579 = vst.msk [vmem:[#allocation2 + $0x51] sm:$0xff] %vm574_vm3, %v4592_v38 }
 0x140   : > { %v1102_v30 = vadd.f32 %v4581_v42, %v1087_v15  ;;  %v592_v36 = vmul.f32 %v4400_v39, %v4592_v38  ;;  %v646_v45 = vmul.f32 %v4344_v13, %v4478_v41  ;;  %v647_v44 = vmul.f32 %v4344_v13, %v605_v48 }
 0x141   : > { %v1103_v61 = vadd.f32 %v4581_v42, %v1088_v49  ;;  %v1104_v0 = vadd.f32 %v4581_v42, %v1089_v19  ;;  %v724_v59 = vmul.f32 %v4349_v14, %v4478_v41  ;;  %v4613_v5 = vmul.f32 %v4466_v24, %v4565_v22 }
 0x142   : > { %v4609_v4 = vmax.f32 %v4393_v37, %v1102_v30  ;;  %v629_v7 = vadd.f32 %v621_v56, %v592_v36  ;;  %v683_v27 = vrot.slane %v646_v45, 1  ;;  %v684_v40 = vrot.slane %v647_v44, 1 }
 0x143   : > { %v4616_v28 = vmax.f32 %v4417_v54, %v1103_v61  ;;  %v4619_v43 = vmax.f32 %v4384_v29, %v1104_v0  ;;  %v725_v3 = vmul.f32 %v4349_v14, %v605_v48  ;;  %v4625_v37 = vsel %vm748_vm4, %v881_v50, %v882_v58 }
 0x144   : > { %1118 = vst.msk [vmem:[#allocation2 + $0x11] sm:$0xff] %vm574_vm3, %v4609_v4  ;;  %v761_v41 = vrot.slane %v724_v59, 2  ;;  %v4628_v47 = vadd.f32 %v3754_v31, %v4354_v17  ;;  %v652_v54 = vmul.f32 %v4344_v13, %v4565_v22  ;;  %v685_v29 = vsel %vm670_vm5, %v683_v27, %v684_v40 }
 0x145   : > { %1119 = vst.msk [vmem:[#allocation2 + $0x21] sm:$0xff] %vm574_vm3, %v4616_v28  ;;  %1120 = vst.msk [vmem:[#allocation2 + $0x31] sm:$0xff] %vm574_vm3, %v4619_v43  ;;  %v762_v35 = vrot.slane %v725_v3, 2  ;;  %v624_v32 = vmul.f32 %v4371_v23, %v4565_v22  ;;  %v653_v25 = vmul.f32 %v4344_v13, %v611_v16  ;;  %v707_v2 = vadd.f32 %v685_v29, %v629_v7 }
 0x146   : > { %582 = vst.msk [vmem:[#allocation2 + $0x81] sm:$0xff] %vm574_vm3, %v4628_v47  ;;  %v595_v6 = vmul.f32 %v4400_v39, %v4628_v47  ;;  %v692_v33 = vrot.slane %v652_v54, 1  ;;  %v730_v15 = vmul.f32 %v4349_v14, %v4565_v22  ;;  %v4647_v48 = vld [vmem:[#allocation2 + $0x50] sm:$0xff]  ;;  %v798_v49 = vld [vmem:[#allocation2 + $0x58] sm:$0x3]  ;;  %v731_v56 = vmul.f32 %v4349_v14, %v611_v16 }
 0x147   : > { %v763_v34 = vsel %vm748_vm4, %v761_v41, %v762_v35  ;;  %v911_v19 = vld [vmem:[#allocation2 + $0x58] sm:$0x3]  ;;  %v693_v50 = vrot.slane %v653_v25, 1  ;;  %v4651_v30 = vadd.f32 %v4354_v17, %v562_v53  ;;  %v814_v36 = vmul.f32 %v4466_v24, %v4647_v48 }
 0x148   : > { %v785_v58 = vadd.f32 %v763_v34, %v707_v2  ;;  %v839_v45 = vmul.f32 %v4427_v57, %v4647_v48  ;;  %v840_v31 = vmul.f32 %v4427_v57, %v798_v49  ;;  %v928_v61 = vmul.f32 %v4422_v55, %v4647_v48 }
 0x149   : > { %v952_v0 = vmul.f32 %v4366_v21, %v4647_v48  ;;  %v953_v44 = vmul.f32 %v4366_v21, %v911_v19  ;;  %v1029_v17 = vmul.f32 %v4379_v26, %v4647_v48  ;;  %580 = vst.msk [vmem:[#allocation2 + $0x61] sm:$0xff] %vm574_vm3, %v4651_v30  ;;  %v1030_v16 = vmul.f32 %v4379_v26, %v911_v19 }
 0x14a   : > { %v822_v59 = vadd.f32 %v814_v36, %v785_v58  ;;  %v875_v7 = vrot.slane %v839_v45, 2  ;;  %v876_v27 = vrot.slane %v840_v31, 2  ;;  %v936_v40 = vadd.f32 %v928_v61, %v4530_v18 }
 0x14b   : > { %v987_v3 = vrot.slane %v952_v0, 1  ;;  %v988_v41 = vrot.slane %v953_v44, 1  ;;  %v1064_v54 = vrot.slane %v1029_v17, 2  ;;  %v1065_v29 = vrot.slane %v1030_v16, 2 }
 0x14c   : > { %v877_v53 = vsel %vm748_vm4, %v875_v7, %v876_v27  ;;  %v632_v35 = vadd.f32 %v624_v32, %v595_v6  ;;  %v694_v25 = vsel %vm670_vm5, %v692_v33, %v693_v50  ;;  %v770_v49 = vrot.slane %v730_v15, 2 }
 0x14d   : > { %v4671_v2 = vadd.f32 %v877_v53, %v822_v59  ;;  %v989_v34 = vsel %vm670_vm5, %v987_v3, %v988_v41  ;;  %v771_v58 = vrot.slane %v731_v56, 2  ;;  %v803_v36 = vld [vmem:[#allocation2 + $0x80] sm:$0xff]  ;;  %v804_v45 = vld [vmem:[#allocation2 + $0x88] sm:$0x3]  ;;  %v1066_v18 = vsel %vm748_vm4, %v1064_v54, %v1065_v29  ;;  %v607_v53 = vld [vmem:[#allocation2 + $0x58] sm:$0x3] }
 0x14e   : > { %v1013_v19 = vadd.f32 %v989_v34, %v936_v40  ;;  %v710_v31 = vadd.f32 %v694_v25, %v632_v35  ;;  %v817_v61 = vmul.f32 %v4466_v24, %v803_v36  ;;  %v917_v0 = vld [vmem:[#allocation2 + $0x88] sm:$0x3]  ;;  %v845_v32 = vmul.f32 %v4427_v57, %v803_v36 }
 0x14f   : > { %v772_v44 = vsel %vm748_vm4, %v770_v49, %v771_v58  ;;  %v846_v6 = vmul.f32 %v4427_v57, %v804_v45  ;;  %v4680_v33 = vmul.f32 %v4422_v55, %v803_v36  ;;  %v958_v56 = vmul.f32 %v4366_v21, %v803_v36 }
 0x150   : > { %v1090_v15 = vadd.f32 %v1066_v18, %v1013_v19  ;;  %v788_v50 = vadd.f32 %v772_v44, %v710_v31  ;;  %v959_v17 = vmul.f32 %v4366_v21, %v917_v0  ;;  %v884_v59 = vrot.slane %v845_v32, 2  ;;  %v4687_v29 = vld [vmem:[#allocation2 + $0x60] sm:$0xff]  ;;  %v609_v58 = vld [vmem:[#allocation2 + $0x68] sm:$0x3] }
 0x151   : > { %v885_v7 = vrot.slane %v846_v6, 2  ;;  %v1035_v27 = vmul.f32 %v4379_v26, %v803_v36  ;;  %v1036_v16 = vmul.f32 %v4379_v26, %v917_v0  ;;  %v996_v41 = vrot.slane %v958_v56, 1 }
 0x152   : > { %v1105_v40 = vadd.f32 %v4581_v42, %v1090_v15  ;;  %v825_v3 = vadd.f32 %v817_v61, %v788_v50  ;;  %v997_v54 = vrot.slane %v959_v17, 1  ;;  %v593_v49 = vmul.f32 %v4400_v39, %v4651_v30 }
 0x153   : > { %v886_v35 = vsel %vm748_vm4, %v884_v59, %v885_v7  ;;  %v1073_v25 = vrot.slane %v1035_v27, 2  ;;  %v1074_v34 = vrot.slane %v1036_v16, 2  ;;  %v622_v18 = vmul.f32 %v4371_v23, %v4647_v48 }
 0x154   : > { %v4693_v36 = vmax.f32 %v4407_v46, %v1105_v40  ;;  %v902_v45 = vadd.f32 %v886_v35, %v825_v3  ;;  %v4696_v19 = vsel %vm670_vm5, %v996_v41, %v997_v54  ;;  %v623_v61 = vmul.f32 %v4371_v23, %v4687_v29 }
 0x155   : > { %v4701_v31 = vsel %vm748_vm4, %v1073_v25, %v1074_v34  ;;  %v648_v39 = vmul.f32 %v4344_v13, %v4647_v48  ;;  %v649_v0 = vmul.f32 %v4344_v13, %v607_v53  ;;  %v630_v44 = vadd.f32 %v622_v18, %v593_v49 }
 0x156   : > { %1121 = vst.msk [vmem:[#allocation2 + $0x41] sm:$0xff] %vm574_vm3, %v4693_v36  ;;  %v940_v46 = vadd.f32 %v4431_v60, %v902_v45  ;;  %v650_v32 = vmul.f32 %v4344_v13, %v4687_v29  ;;  %v651_v6 = vmul.f32 %v4344_v13, %v609_v58  ;;  %v631_v15 = vadd.f32 %v623_v61, %v4585_v12  ;;  %v800_v12 = vld [vmem:[#allocation2 + $0x68] sm:$0x3]  ;;  %v915_v61 = vld [vmem:[#allocation2 + $0x78] sm:$0x3] }
 0x157   : > { %v686_v50 = vrot.slane %v648_v39, 1  ;;  %v687_v23 = vrot.slane %v649_v0, 1  ;;  %v726_v56 = vmul.f32 %v4349_v14, %v4647_v48  ;;  %v727_v27 = vmul.f32 %v4349_v14, %v607_v53 }
 0x158   : > { %v1017_v17 = vadd.f32 %v4439_v63, %v940_v46  ;;  %v689_v59 = vrot.slane %v650_v32, 1  ;;  %v690_v7 = vrot.slane %v651_v6, 1  ;;  %v728_v16 = vmul.f32 %v4349_v14, %v4687_v29 }
 0x159   : > { %v688_v60 = vsel %vm670_vm5, %v686_v50, %v687_v23  ;;  %v729_v13 = vmul.f32 %v4349_v14, %v609_v58  ;;  %v764_v40 = vrot.slane %v726_v56, 2  ;;  %v765_v54 = vrot.slane %v727_v27, 2 }
 0x15a   : > { %v1094_v3 = vadd.f32 %v4442_v1, %v1017_v17  ;;  %v691_v41 = vsel %vm670_vm5, %v689_v59, %v690_v7  ;;  %v708_v48 = vadd.f32 %v688_v60, %v630_v44  ;;  %v767_v35 = vrot.slane %v728_v16, 2  ;;  %v913_v1 = vld [vmem:[#allocation2 + $0x68] sm:$0x3] }
 0x15b   : > { %v709_v63 = vadd.f32 %v691_v41, %v631_v15  ;;  %v768_v25 = vrot.slane %v729_v13, 2  ;;  %v815_v53 = vmul.f32 %v4466_v24, %v4687_v29  ;;  %v766_v49 = vsel %vm748_vm4, %v764_v40, %v765_v54  ;;  %v4761_v41 = vld [vmem:[#allocation2 + $0x30] sm:$0xff] }
 0x15c   : > { %v1109_v34 = vadd.f32 %v4581_v42, %v1094_v3  ;;  %v841_v14 = vmul.f32 %v4427_v57, %v4687_v29  ;;  %v842_v58 = vmul.f32 %v4427_v57, %v800_v12  ;;  %v786_v18 = vadd.f32 %v766_v49, %v708_v48  ;;  %v4759_v3 = vld [vmem:[#allocation2 + $0x10] sm:$0xff] }
 0x15d   : > { %v769_v45 = vsel %vm748_vm4, %v767_v35, %v768_v25  ;;  %v929_v39 = vmul.f32 %v4422_v55, %v4687_v29  ;;  %v930_v24 = vmul.f32 %v4422_v55, %v4565_v22  ;;  %v954_v15 = vmul.f32 %v4366_v21, %v4687_v29 }
 0x15e   : > { %v4738_v0 = vmax.f32 %v4628_v47, %v1109_v34  ;;  %v787_v46 = vadd.f32 %v769_v45, %v709_v63  ;;  %v878_v44 = vrot.slane %v841_v14, 2  ;;  %v879_v32 = vrot.slane %v842_v58, 2  ;;  %v4765_v63 = vld [vmem:[#allocation2 + $0x20] sm:$0xff] }
 0x15f   : > { %v823_v6 = vadd.f32 %v815_v53, %v786_v18  ;;  %v937_v57 = vadd.f32 %v929_v39, %v4671_v2  ;;  %v955_v50 = vmul.f32 %v4366_v21, %v913_v1  ;;  %v956_v47 = vmul.f32 %v4366_v21, %v4565_v22 }
 0x160   : > { %1125 = vst.msk [vmem:[#allocation2 + $0x81] sm:$0xff] %vm574_vm3, %v4738_v0  ;;  %v824_v23 = vadd.f32 %v4613_v5, %v787_v46  ;;  %v880_v55 = vsel %vm748_vm4, %v878_v44, %v879_v32  ;;  %v957_v56 = vmul.f32 %v4366_v21, %v915_v61  ;;  %v990_v59 = vrot.slane %v954_v15, 1 }
 0x161   : > { %v900_v17 = vadd.f32 %v880_v55, %v823_v6  ;;  %v991_v2 = vrot.slane %v955_v50, 1  ;;  %v1031_v7 = vmul.f32 %v4379_v26, %v4687_v29  ;;  %v993_v60 = vrot.slane %v956_v47, 1 }
 0x162   : > { %v901_v27 = vadd.f32 %v4625_v37, %v824_v23  ;;  %v994_v16 = vrot.slane %v957_v56, 1  ;;  %v1032_v13 = vmul.f32 %v4379_v26, %v913_v1  ;;  %v1033_v12 = vmul.f32 %v4379_v26, %v4565_v22  ;;  %v4804_v56 = vld [vmem:[#allocation2 + $0x40] sm:$0xff] }
 0x163   : > { %v938_v5 = vadd.f32 %v930_v24, %v900_v17  ;;  %v992_v40 = vsel %vm670_vm5, %v990_v59, %v991_v2  ;;  %v1034_v21 = vmul.f32 %v4379_v26, %v915_v61  ;;  %v1067_v54 = vrot.slane %v1031_v7, 2  ;;  %v1136_v2 = vld [vmem:[#allocation2 + $0x18] sm:$0x3]  ;;  %v1138_v7 = vld [vmem:[#allocation2 + $0x28] sm:$0x3] }
 0x164   : > { %v939_v29 = vadd.f32 %v4680_v33, %v901_v27  ;;  %v995_v37 = vsel %vm670_vm5, %v993_v60, %v994_v16  ;;  %v1014_v48 = vadd.f32 %v992_v40, %v937_v57  ;;  %v1068_v25 = vrot.slane %v1032_v13, 2  ;;  %v1140_v13 = vld [vmem:[#allocation2 + $0x38] sm:$0x3] }
 0x165   : > { %v1015_v35 = vadd.f32 %v995_v37, %v938_v5  ;;  %v1070_v53 = vrot.slane %v1033_v12, 2  ;;  %v1071_v34 = vrot.slane %v1034_v21, 2  ;;  %v3624_v26 = vpack.c.bf16 %v4759_v3, %v4339_v11  ;;  %v4788_v11 = vld [vmem:[#allocation6 + $0x10] sm:$0xff]  }
 0x166   : > { %v1016_v22 = vadd.f32 %v4696_v19, %v939_v29  ;;  %v4772_v49 = vpack.c.bf16 %v4759_v3, %v4759_v3  ;;  %v4776_v33 = vpack.c.bf16 %v4761_v41, %v4765_v63  ;;  %v1069_v14 = vsel %vm748_vm4, %v1067_v54, %v1068_v25 }
 0x167   : > { %v1072_v58 = vsel %vm748_vm4, %v1070_v53, %v1071_v34  ;;  %v4782_v1 = vpack.c.bf16 %v4765_v63, %v4765_v63  ;;  %v4786_v19 = vpack.c.bf16 %v4761_v41, %v4761_v41  ;;  %v1091_v45 = vadd.f32 %v1069_v14, %v1014_v48  ;;  %3757 = vmatprep.mubr.msk.bf16.mxu1 %vm574_vm3, %v3624_v26 }
 0x168   : > { %v1092_v18 = vadd.f32 %v1072_v58, %v1015_v35  ;;  %v1093_v61 = vadd.f32 %v4701_v31, %v1016_v22  ;;  %v1387_v39 = vshrl.u32 %v4772_v49, 16  ;;  %v1390_v24 = vshll.u32 %v4772_v49, 16  ;;  %3758 = vmatmul.mubr.msk.bf16.vlgmr.msra.gmra.mxu1 %vm574_vm3, %v4776_v33  ;;  %v1142_v22 = vld [vmem:[#allocation2 + $0x48] sm:$0x3] }
 0x169   : > { %v1401_v46 = vshrl.u32 %v4782_v1, 16  ;;  %v1404_v44 = vshll.u32 %v4782_v1, 16  ;;  %v1382_v32 = vshll.u32 %v4454_v9, 16  ;;  %v1106_v6 = vadd.f32 %v4581_v42, %v1091_v45  ;;  %3766 = vmatpush3.bf16.msra.mxu1 %v4333_v8 }
 0x16a   : > { %v1107_v57 = vadd.f32 %v4581_v42, %v1092_v18  ;;  %v1108_v31 = vadd.f32 %v4581_v42, %v1093_v61  ;;  %v1389_v15 = vrot.slane %v1387_v39, 4  ;;  %v1392_v50 = vrot.slane %v1390_v24, 5  ;;  %3785 = vmatprep.subr.bf16.mxu1 %v4788_v11 }
 0x16b   : > { %v1403_v23 = vrot.slane %v1401_v46, 4  ;;  %v1406_v55 = vrot.slane %v1404_v44, 5  ;;  %v1415_v47 = vshrl.u32 %v4786_v19, 16  ;;  %v4808_v17 = vmax.f32 %v4592_v38, %v1106_v6 }
 0x16c   : > { %v4811_v59 = vmax.f32 %v4651_v30, %v1107_v57  ;;  %v4814_v42 = vmax.f32 %v4436_v62, %v1108_v31  ;;  %v1418_v8 = vshll.u32 %v4786_v19, 16  ;;  %v1393_v27 = vor.u32 %v1392_v50, %v1389_v15 }
 0x16d   : > { %v1407_v60 = vor.u32 %v1406_v55, %v1403_v23  ;;  %v1417_v16 = vrot.slane %v1415_v47, 4  ;;  %1122 = vst.msk [vmem:[#allocation2 + $0x51] sm:$0xff] %vm574_vm3, %v4808_v17  ;;  %v4825_v38 = vpack.c.bf16 %v4804_v56, %v4804_v56  ;;  %v5797_v30 = vor.u32 %v4412_v52, %v4410_v51 }
 0x16e   : > { %1123 = vst.msk [vmem:[#allocation2 + $0x61] sm:$0xff] %vm574_vm3, %v4811_v59  ;;  %1124 = vst.msk [vmem:[#allocation2 + $0x71] sm:$0xff] %vm574_vm3, %v4814_v42  ;;  %v1420_v62 = vrot.slane %v1418_v8, 5  ;;  %v4830_v40 = vpack.c.bf16 %v1136_v2, %v1136_v2  ;;  %v1384_v12 = vrot.slane %v1382_v32, 5  ;;  %v4832_v21 = vpack.c.bf16 %v1138_v7, %v1138_v7 }
 0x16f   : > { %v1380_v5 = vrot.slane %v5797_v30, 4  ;;  %v4834_v29 = vrot.slane %v1407_v60, 4  ;;  %v4841_v54 = vpack.c.bf16 %v1140_v13, %v1140_v13  ;;  %v1429_v35 = vshrl.u32 %v4825_v38, 16  ;;  %v4897_v30 = vld [vmem:[#allocation6 + $0x30] sm:$0xff]  }
 0x170   : > { %v1421_v37 = vor.u32 %v1420_v62, %v1417_v16  ;;  %v1394_v25 = vrot.slane %v1393_v27, 4  ;;  %v1396_v51 = vshll.u32 %v4830_v40, 16  ;;  %v1410_v52 = vshll.u32 %v4832_v21, 16 }
 0x171   : > { %v1432_v53 = vshll.u32 %v4825_v38, 16  ;;  %v1424_v34 = vshll.u32 %v4841_v54, 16  ;;  %v1385_v14 = vsel %vm4837_vm8, %v1380_v5, %v1384_v12  ;;  %v1126_v18 = vpack.c.bf16 %v4616_v28, %v4609_v4 }
 0x172   : > { %v4848_v26 = vrot.slane %v1421_v37, 4  ;;  %v1398_v58 = vrot.slane %v1396_v51, 5  ;;  %v1412_v45 = vrot.slane %v1410_v52, 5  ;;  %v1431_v61 = vrot.slane %v1429_v35, 4 }
 0x173   : > { %v1434_v39 = vrot.slane %v1432_v53, 5  ;;  %v1426_v57 = vrot.slane %v1424_v34, 5  ;;  %v4865_v31 = vpack.c.bf16 %v1142_v22, %v1142_v22  ;;  %v3493_v34 = vrot.slane %v4361_v20, 9 }
 0x174   : > { %v4854_v24 = vld [vmem:[#allocation2 + $0x50] sm:$0xff]  ;;  %v1399_v46 = vsel %vm4837_vm8, %v1394_v25, %v1398_v58  ;;  %v1413_v6 = vsel %vm4837_vm8, %v4834_v29, %v1412_v45  ;;  %v1144_v23 = vld [vmem:[#allocation2 + $0x58] sm:$0x3] }
 0x175   : > { %v4858_v44 = vld [vmem:[#allocation2 + $0x60] sm:$0xff]  ;;  %v4860_v32 = vld [vmem:[#allocation2 + $0x70] sm:$0xff]  ;;  %v4869_v4 = vpack.c.bf16 %v4854_v24, %v4804_v56  ;;  %v4873_v28 = vpack.c.bf16 %v4854_v24, %v4854_v24  ;;  %v3484_v15 = vcombine.low %v1385_v14, %v1399_v46  ;;  %v1146_v55 = vld [vmem:[#allocation2 + $0x68] sm:$0x3]  ;;  %v1427_v2 = vsel %vm4837_vm8, %v4848_v26, %v1426_v57 }
 0x176   : > { %v4877_v50 = vpack.c.bf16 %v4860_v32, %v4858_v44  ;;  %v4881_v47 = vpack.c.bf16 %v4858_v44, %v4858_v44  ;;  %v4885_v8 = vpack.c.bf16 %v4860_v32, %v4860_v32  ;;  %v4890_v7 = vpack.c.bf16 %v1144_v23, %v1144_v23  ;;  %v1148_v27 = vld [vmem:[#allocation2 + $0x78] sm:$0x3] }
 0x177   : > { %3761 = vmatprep.mubr.msk.bf16.mxu1 %vm574_vm3, %v4869_v4  ;;  %3777 = vmatprep.mubr.msk.bf16.mxu0 %vm574_vm3, %v3484_v15  ;;  %v3485_v60 = vcombine.low %v1413_v6, %v1427_v2  ;;  %v1435_v16 = vor.u32 %v1434_v39, %v1431_v61  ;;  %v1443_v13 = vshrl.u32 %v4873_v28, 16  ;;  %v1446_v62 = vshll.u32 %v4873_v28, 16 }
 0x178   : > { %3762 = vmatmul.mubr.msk.bf16.gmra.mxu1 %vm574_vm3, %v4877_v50  ;;  %v1438_v5 = vshll.u32 %v4865_v31, 16  ;;  %v1452_v12 = vshll.u32 %v4890_v7, 16  ;;  %v4903_v37 = vpack.c.bf16 %v1146_v55, %v1146_v55  ;;  %v1457_v35 = vshrl.u32 %v4881_v47, 16 }
 0x179   : > { %3767 = vmatprep.mubr.msk.bf16.mxu1 %vm574_vm3, %v1126_v18  ;;  %3778 = vmatmul.mubr.msk.bf16.vlgmr.msra.gmra.mxu0 %vm574_vm3, %v3485_v60  ;;  %v1445_v25 = vrot.slane %v1443_v13, 4  ;;  %v1448_v51 = vrot.slane %v1446_v62, 5  ;;  %v4908_v52 = vpack.c.bf16 %v1148_v27, %v1148_v27  ;;  %v1460_v53 = vshll.u32 %v4881_v47, 16  ;;  %v3935_v27 = vld [vmem:[#allocation6 + $0x28] sm:$0xff]  }
 0x17a   : > { %3796 = vmatpush3.bf16.msra.mxu0 %v4336_v10  ;;  %v1459_v22 = vrot.slane %v1457_v35, 4  ;;  %v1471_v14 = vshrl.u32 %v4885_v8, 16  ;;  %v4914_v58 = vrot.slane %v1435_v16, 4  ;;  %v1474_v18 = vshll.u32 %v4885_v8, 16 }
 0x17b   : > { %v1449_v45 = vor.u32 %v1448_v51, %v1445_v25  ;;  %v1462_v61 = vrot.slane %v1460_v53, 5  ;;  %3815 = vmatprep.subr.bf16.mxu0 %v4897_v30  ;;  %v1440_v39 = vrot.slane %v1438_v5, 5  ;;  %v1454_v46 = vrot.slane %v1452_v12, 5 }
 0x17c   : > { %v1466_v6 = vshll.u32 %v4903_v37, 16  ;;  %v1473_v57 = vrot.slane %v1471_v14, 4  ;;  %v1476_v10 = vrot.slane %v1474_v18, 5  ;;  %v1480_v23 = vshll.u32 %v4908_v52, 16 }
 0x17d   : > { %v4919_v15 = vrot.slane %v1449_v45, 4  ;;  %v1463_v20 = vor.u32 %v1462_v61, %v1459_v22  ;;  %v1128_v55 = vpack.c.bf16 %v4811_v59, %v4808_v17  ;;  %v1127_v2 = vpack.c.bf16 %v4693_v36, %v4619_v43 }
 0x17e   : > { %v1441_v60 = vsel %vm4837_vm8, %v4914_v58, %v1440_v39  ;;  %v1477_v62 = vor.u32 %v1476_v10, %v1473_v57  ;;  %v3494_v5 = vrot.slane %v4772_v49, 9  ;;  %v1595_v43 = vrot.slane %v4454_v9, 5  ;;  %v1732_v39 = vld [vmem:[#allocation2 + $0x18] sm:$0x3]  ;;  %v2032_v49 = vld [vmem:[#allocation2 + $0x28] sm:$0x3] }
 0x17f   : > { %v1455_v16 = vsel %vm4837_vm8, %v4919_v15, %v1454_v46  ;;  %v4932_v13 = vrot.slane %v1463_v20, 4  ;;  %v1599_v36 = vrot.slane %v4830_v40, 5  ;;  %v1468_v59 = vrot.slane %v1466_v6, 5  ;;  %v5004_v57 = vld [vmem:[#allocation6 + $0x38] sm:$0xff]  }
 0x180   : > { %v3486_v17 = vcombine.low %v1441_v60, %v1455_v16  ;;  %3768 = vmatmul.mubr.msk.bf16.vlgmr.msra.gmra.mxu1 %vm574_vm3, %v1127_v2  ;;  %v4940_v12 = vrot.slane %v1477_v62, 4  ;;  %v1482_v35 = vrot.slane %v1480_v23, 5  ;;  %v1596_v51 = vsel %vm4944_vm11, %v3493_v34, %v1595_v43  ;;  %v1736_v23 = vld [vmem:[#allocation2 + $0x38] sm:$0x3] }
 0x181   : > { %3786 = vmatpush3.bf16.msra.mxu1 %v4788_v11  ;;  %3771 = vmatprep.mubr.msk.bf16.mxu1 %vm574_vm3, %v1128_v55  ;;  %v1469_v9 = vsel %vm4837_vm8, %v4932_v13, %v1468_v59  ;;  %v1600_v53 = vsel %vm4944_vm11, %v3494_v5, %v1599_v36  ;;  %v3644_v22 = vpack.c.bf16 %v4765_v63, %v4759_v3  ;;  %v4967_v45 = vrot.slane %v4786_v19, 9  ;;  %v1734_v19 = vld [vmem:[#allocation2 + $0x28] sm:$0x3] }
 0x182   : > { %3781 = vmatprep.mubr.msk.bf16.mxu0 %vm574_vm3, %v3486_v17  ;;  %3805 = vmatprep.subr.bf16.mxu1 %v3935_v27  ;;  %v1483_v11 = vsel %vm4837_vm8, %v4940_v12, %v1482_v35  ;;  %v1129_v14 = vpack.c.bf16 %v4738_v0, %v4814_v42  ;;  %v3501_v61 = vcombine.low %v1596_v51, %v1600_v53  ;;  %v1607_v34 = vrot.slane %v4841_v54, 5  ;;  %v5041_v53 = vld [vmem:[#allocation2 + $0x90] sm:$0xff] }
 0x183   : > { %v3487_v40 = vcombine.low %v1469_v9, %v1483_v11  ;;  %v4973_v18 = vrot.slane %v4873_v28, 9  ;;  %v1615_v3 = vrot.slane %v4890_v7, 5  ;;  %v4977_v63 = vrot.slane %v4782_v1, 9 }
 0x184   : > { %v1603_v0 = vrot.slane %v4832_v21, 5  ;;  %v4982_v42 = vrot.slane %v4825_v38, 9  ;;  %v1611_v54 = vrot.slane %v4865_v31, 5  ;;  %v1608_v28 = vsel %vm4944_vm11, %v4967_v45, %v1607_v34  ;;  %v4993_v21 = vld [vmem:[#allocation6 + $0x40] sm:$0xff]  }
 0x185   : > { %3782 = vmatmul.mubr.msk.bf16.gmra.mxu0 %vm574_vm3, %v3487_v40  ;;  %v3645_v7 = vpack.c.bf16 %v4804_v56, %v4761_v41  ;;  %v1616_v1 = vsel %vm4944_vm11, %v4973_v18, %v1615_v3  ;;  %v3651_v46 = vpack.c.bf16 %v1734_v19, %v1734_v19  ;;  %v3646_v38 = vpack.c.bf16 %v4858_v44, %v4854_v24  ;;  %v2034_v40 = vld [vmem:[#allocation2 + $0x38] sm:$0x3] }
 0x186   : > { %3797 = vmatprep.mubr.msk.bf16.mxu0 %vm574_vm3, %v3644_v22  ;;  %v1604_v31 = vsel %vm4944_vm11, %v4977_v63, %v1603_v0  ;;  %v1612_v41 = vsel %vm4944_vm11, %v4982_v42, %v1611_v54  ;;  %v3649_v56 = vpack.c.bf16 %v1732_v39, %v1732_v39  ;;  %v5009_v24 = vrot.slane %v4885_v8, 9  ;;  %v1738_v8 = vld [vmem:[#allocation2 + $0x48] sm:$0x3] }
 0x187   : > { %v3502_v6 = vcombine.low %v1604_v31, %v1608_v28  ;;  %v3503_v20 = vcombine.low %v1612_v41, %v1616_v1  ;;  %v1623_v44 = vrot.slane %v4908_v52, 5  ;;  %v1899_v10 = vrot.slane %v3651_v46, 5  ;;  %v5020_v52 = vld [vmem:[#allocation2 + $0x80] sm:$0xff] }
 0x188   : > { %3772 = vmatmul.mubr.msk.bf16.gmra.mxu1 %vm574_vm3, %v1129_v14  ;;  %v5016_v55 = vrot.slane %v4881_v47, 9  ;;  %v1619_v2 = vrot.slane %v4903_v37, 5  ;;  %v1895_v60 = vrot.slane %v3649_v56, 5  ;;  %v3653_v62 = vpack.c.bf16 %v1736_v23, %v1736_v23  ;;  %v1744_v14 = vld [vmem:[#allocation2 + $0x78] sm:$0x3] }
 0x189   : > { %3787 = vmatprep.mubr.msk.bf16.mxu1 %vm574_vm3, %v3501_v61  ;;  %v1624_v16 = vsel %vm4944_vm11, %v5009_v24, %v1623_v44  ;;  %v3647_v17 = vpack.c.bf16 %v5020_v52, %v4860_v32  ;;  %v1900_v47 = vsel %vm4944_vm11, %v4977_v63, %v1899_v10  ;;  %v3655_v36 = vpack.c.bf16 %v1738_v8, %v1738_v8  ;;  %v2046_v44 = vld [vmem:[#allocation2 + $0x98] sm:$0x3] }
 0x18a   : > { %v1620_v43 = vsel %vm4944_vm11, %v5016_v55, %v1619_v2  ;;  %v1896_v35 = vsel %vm4944_vm11, %v3494_v5, %v1895_v60  ;;  %v1903_v11 = vrot.slane %v3653_v62, 5  ;;  %v5045_v22 = vpack.c.bf16 %v5041_v53, %v5041_v53 }
 0x18b   : > { %v3504_v59 = vcombine.low %v1620_v43, %v1624_v16  ;;  %v3543_v32 = vcombine.low %v1896_v35, %v1900_v47  ;;  %v1907_v5 = vrot.slane %v3655_v36, 5  ;;  %v3671_v34 = vpack.c.bf16 %v2034_v40, %v2034_v40 }
 0x18c   : > { %v1904_v3 = vsel %vm4944_vm11, %v4967_v45, %v1903_v11  ;;  %v3669_v0 = vpack.c.bf16 %v2032_v49, %v2032_v49  ;;  %v3661_v19 = vpack.c.bf16 %v1744_v14, %v1744_v14  ;;  %v2292_v28 = vshrl.u32 %v5045_v22, 16 }
 0x18d   : > { %3798 = vmatmul.mubr.msk.bf16.vlgmr.msra.gmra.mxu0 %vm574_vm3, %v3645_v7  ;;  %v2295_v39 = vshll.u32 %v5045_v22, 16  ;;  %v5058_v7 = vpack.c.bf16 %v5020_v52, %v5020_v52  ;;  %v1908_v1 = vsel %vm4944_vm11, %v4982_v42, %v1907_v5  ;;  %v2417_v41 = vrot.slane %v3671_v34, 5 }
 0x18e   : > { %3801 = vmatprep.mubr.msk.bf16.mxu0 %vm574_vm3, %v3646_v38  ;;  %3816 = vmatpush3.bf16.msra.mxu0 %v4897_v30  ;;  %v1742_v30 = vld [vmem:[#allocation2 + $0x68] sm:$0x3]  ;;  %v3544_v31 = vcombine.low %v1904_v3, %v1908_v1  ;;  %v2217_v56 = vshll.u32 %v3671_v34, 16  ;;  %v2413_v23 = vrot.slane %v3669_v0, 5  ;;  %v1919_v2 = vrot.slane %v3661_v19, 5 }
 0x18f   : > { %3835 = vmatprep.subr.bf16.mxu0 %v4993_v21  ;;  %v3659_v37 = vpack.c.bf16 %v1742_v30, %v1742_v30  ;;  %v2036_v38 = vld [vmem:[#allocation2 + $0x48] sm:$0x3]  ;;  %v2042_v30 = vld [vmem:[#allocation2 + $0x78] sm:$0x3]  ;;  %v5074_v60 = vrot.slane %v2295_v39, 5  ;;  %v2203_v8 = vshll.u32 %v3669_v0, 16  ;;  %v5080_v47 = vpack.c.bf16 %v2046_v44, %v2046_v44 }
 0x190   : > { %3788 = vmatmul.mubr.msk.bf16.vlgmr.msra.gmra.mxu1 %vm574_vm3, %v3502_v6  ;;  %v3673_v16 = vpack.c.bf16 %v2036_v38, %v2036_v38  ;;  %v5802_v62 = vmov 0.0   ;;  %v2418_v43 = vsel %vm4944_vm11, %v4967_v45, %v2417_v41  ;;  %v2219_v36 = vrot.slane %v2217_v56, 5 }
 0x191   : > { %3806 = vmatpush3.bf16.msra.mxu1 %v3935_v27  ;;  %3791 = vmatprep.mubr.msk.bf16.mxu1 %vm574_vm3, %v3503_v20  ;;  %v1740_v27 = vld [vmem:[#allocation2 + $0x58] sm:$0x3]  ;;  %v1915_v51 = vrot.slane %v3659_v37, 5  ;;  %v3667_v37 = vpack.c.bf16 %v5041_v53, %v5020_v52  ;;  %v1920_v35 = vsel %vm4944_vm11, %v5009_v24, %v1919_v2  ;;  %v2281_v52 = vshll.u32 %v5058_v7, 16 }
 0x192   : > { %3825 = vmatprep.subr.bf16.mxu1 %v5004_v57  ;;  %v3657_v9 = vpack.c.bf16 %v1740_v27, %v1740_v27  ;;  %v2038_v20 = vld [vmem:[#allocation2 + $0x58] sm:$0x3]  ;;  %v3542_v27 = vrot.slane %v5058_v7, 9  ;;  %v2220_v45 = vsel %vm4837_vm8, %v4848_v26, %v2219_v36  ;;  %v2421_v11 = vrot.slane %v3673_v16, 5  ;;  %v2044_v26 = vld [vmem:[#allocation2 + $0x88] sm:$0x3] }
 0x193   : > { %v1916_v54 = vsel %vm4944_vm11, %v5016_v55, %v1915_v51  ;;  %v2231_v3 = vshll.u32 %v3673_v16, 16  ;;  %v2283_v19 = vrot.slane %v2281_v52, 5  ;;  %v3593_v39 = vrot.slane %v5045_v22, 9 }
 0x194   : > { %v1911_v61 = vrot.slane %v3657_v9, 5  ;;  %v2278_v9 = vshrl.u32 %v5058_v7, 16  ;;  %v2441_v38 = vrot.slane %v5080_v47, 5  ;;  %v2301_v22 = vshll.u32 %v5080_v47, 16 }
 0x195   : > { %3802 = vmatmul.mubr.msk.bf16.gmra.mxu0 %vm574_vm3, %v3647_v17  ;;  %v2040_v17 = vld [vmem:[#allocation2 + $0x68] sm:$0x3]  ;;  %v2422_v56 = vsel %vm4944_vm11, %v4982_v42, %v2421_v11 }
 0x196   : > { %3817 = vmatprep.mubr.msk.bf16.mxu0 %vm574_vm3, %v4776_v33  ;;  %v1746_v33 = vld [vmem:[#allocation2 + $0x88] sm:$0x3]  ;;  %v1912_v6 = vsel %vm4944_vm11, %v4973_v18, %v1911_v61  ;;  %v3677_v40 = vpack.c.bf16 %v2040_v17, %v2040_v17  ;;  %v2280_v0 = vrot.slane %v2278_v9, 4 }
 0x197   : > { %v3663_v46 = vpack.c.bf16 %v1746_v33, %v1746_v33  ;;  %v3545_v10 = vcombine.low %v1912_v6, %v1916_v54 }
 0x198   : > { %3792 = vmatmul.mubr.msk.bf16.gmra.mxu1 %vm574_vm3, %v3504_v59  ;;  %v3679_v59 = vpack.c.bf16 %v2042_v30, %v2042_v30  ;;  %v2429_v54 = vrot.slane %v3677_v40, 5  ;;  %v2284_v44 = vor.u32 %v2283_v19, %v2280_v0 }
 0x199   : > { %3807 = vmatprep.mubr.msk.bf16.mxu1 %vm574_vm3, %v3543_v32  ;;  %v2205_v32 = vrot.slane %v2203_v8, 5 }
 0x19a   : > { %v2433_v61 = vrot.slane %v3679_v59, 5  ;;  %v2273_v34 = vshll.u32 %v3679_v59, 16  ;;  %v2285_v16 = vrot.slane %v2284_v44, 4 }
 0x19b   : > { %v2206_v5 = vsel %vm4837_vm8, %v4834_v29, %v2205_v32 }
 0x19c   : > { %v3577_v33 = vcombine.low %v2206_v5, %v2220_v45  ;;  %v2275_v6 = vrot.slane %v2273_v34, 5 }
 0x19d   : > { %3818 = vmatmul.mubr.msk.bf16.vlgmr.msra.gmra.mxu0 %vm574_vm3, %v4869_v4  ;;  %v5072_v4 = vrot.slane %v2292_v28, 4  ;;  %v2259_v28 = vshll.u32 %v3677_v40, 16 }
 0x19e   : > { %3821 = vmatprep.mubr.msk.bf16.mxu0 %vm574_vm3, %v4877_v50  ;;  %3836 = vmatpush3.bf16.msra.mxu0 %v4993_v21  ;;  %v1923_v50 = vrot.slane %v3663_v46, 5  ;;  %v3675_v21 = vpack.c.bf16 %v2038_v20, %v2038_v20  ;;  %v3681_v46 = vpack.c.bf16 %v2044_v26, %v2044_v26  ;;  %v2233_v20 = vrot.slane %v2231_v3, 5 }
 0x19f   : > { %3856 = vmatprep.subr.mxu0 %v5802_v62  ;;  %v2298_v41 = vor.u32 %v5074_v60, %v5072_v4  ;;  %v2276_v2 = vsel %vm4837_vm8, %v4940_v12, %v2275_v6  ;;  %v2303_v12 = vrot.slane %v2301_v22, 5 }
 0x1a0   : > { %3808 = vmatmul.mubr.msk.bf16.vlgmr.msra.gmra.mxu1 %vm574_vm3, %v3544_v31  ;;  %v2425_v53 = vrot.slane %v3675_v21, 5  ;;  %v2245_v49 = vshll.u32 %v3675_v21, 16  ;;  %v2434_v31 = vsel %vm4944_vm11, %v5009_v24, %v2433_v61  ;;  %v2430_v24 = vsel %vm4944_vm11, %v5016_v55, %v2429_v54 }
 0x1a1   : > { %3826 = vmatpush3.bf16.msra.mxu1 %v5004_v57  ;;  %3811 = vmatprep.mubr.msk.bf16.mxu1 %vm574_vm3, %v3545_v10  ;;  %v2414_v57 = vsel %vm4944_vm11, %v4977_v63, %v2413_v23  ;;  %v1924_v63 = vsel %vm4944_vm11, %v3542_v27, %v1923_v50  ;;  %v2261_v23 = vrot.slane %v2259_v28, 5  ;;  %v3596_v30 = vcombine.low %v2430_v24, %v2434_v31  ;;  %v3129_v24 = vld [vmem:[%s5761_s9 + $0x18] sm:$0xff] }
 0x1a2   : > { %3845 = vmatprep.subr.mxu1 %v5802_v62  ;;  %v3594_v51 = vcombine.low %v2414_v57, %v2418_v43  ;;  %v3546_v14 = vcombine.low %v1920_v35, %v1924_v63  ;;  %v2426_v29 = vsel %vm4944_vm11, %v4973_v18, %v2425_v53  ;;  %v2247_v1 = vrot.slane %v2245_v49, 5 }
 0x1a3   : > { %v3595_v10 = vcombine.low %v2422_v56, %v2426_v29  ;;  %v2234_v42 = vsel %vm4837_vm8, %v4914_v58, %v2233_v20  ;;  %v2437_v4 = vrot.slane %v3681_v46, 5  ;;  %v2287_v60 = vshll.u32 %v3681_v46, 16 }
 0x1a4   : > { %v2248_v18 = vsel %vm4837_vm8, %v4919_v15, %v2247_v1  ;;  %v2262_v8 = vsel %vm4837_vm8, %v4932_v13, %v2261_v23  ;;  %v2299_v50 = vrot.slane %v2298_v41, 4  ;;  %v2442_v21 = vsel %vm4944_vm11, %v3593_v39, %v2441_v38  ;;  %v3128_v23 = vld [vmem:[%s5761_s9 + $0x10] sm:$0xff] }
 0x1a5   : > { %3822 = vmatmul.mubr.msk.bf16.gmra.mxu0 %vm574_vm3, %v3667_v37  ;;  %v3578_v15 = vcombine.low %v2234_v42, %v2248_v18  ;;  %v3579_v55 = vcombine.low %v2262_v8, %v2276_v2  ;;  %v2438_v58 = vsel %vm4944_vm11, %v3542_v27, %v2437_v4  ;;  %v2289_v17 = vrot.slane %v2287_v60, 5  ;;  %v3127_v42 = vld [vmem:[%s5761_s9 + $0x8] sm:$0xff] }
 0x1a6   : > { %3837 = vmatprep.mubr.msk.bf16.mxu0 %vm574_vm3, %v3594_v51  ;;  %v2304_v47 = vsel %vm4837_vm8, %v2299_v50, %v2303_v12  ;;  %v3597_v37 = vcombine.low %v2438_v58, %v2442_v21 }
 0x1a7   : > { %v2290_v13 = vsel %vm4837_vm8, %v2285_v16, %v2289_v17 }
 0x1a8   : > { %3812 = vmatmul.mubr.msk.bf16.gmra.mxu1 %vm574_vm3, %v3546_v14  ;;  %v3580_v43 = vcombine.low %v2290_v13, %v2304_v47 }
 0x1a9   : > { %3827 = vmatprep.mubr.msk.bf16.mxu1 %vm574_vm3, %v3577_v33 }
 0x1ad   : > { %3838 = vmatmul.mubr.msk.bf16.vlgmr.msra.gmra.mxu0 %vm574_vm3, %v3595_v10 }
 0x1ae   : > { %3841 = vmatprep.mubr.msk.bf16.mxu0 %vm574_vm3, %v3596_v30 }
 0x1b0   : > { %3828 = vmatmul.mubr.msk.bf16.vlgmr.msra.gmra.mxu1 %vm574_vm3, %v3578_v15  ;;  %v3126_v15 = vld [vmem:[%s5761_s9] sm:$0xff] }
 0x1b1   : > { %3831 = vmatprep.mubr.msk.bf16.mxu1 %vm574_vm3, %v3579_v55  ;;  %3846 = vmatpush3.msra.mxu1 %v3129_v24 }
 0x1b2   : > { %3847 = vmatprep.subr.mxu1 %v5802_v62 }
 0x1b3   : > { %3848 = vmatpush3.msra.mxu1 %v3128_v23 }
 0x1b4   : > { %3849 = vmatprep.subr.mxu1 %v5802_v62 }
 0x1b5   : > { %3842 = vmatmul.mubr.msk.bf16.gmra.mxu0 %vm574_vm3, %v3597_v37  ;;  %3850 = vmatpush3.msra.mxu1 %v3127_v42 }
 0x1b6   : > { %3858 = vmatprep.mubr.msk.f32.mxu0 %vm4081_vm12, %v5802_v62  ;;  %3851 = vmatprep.subr.mxu1 %v5802_v62 }
 0x1b7   : > { %3852 = vmatpush3.msra.mxu1 %v3126_v15 }
 0x1b8   : > { %3832 = vmatmul.mubr.msk.bf16.gmra.mxu1 %vm574_vm3, %v3580_v43 }
 0x1b9   : > { %3853 = vmatprep.mubr.msk.f32.mxu1 %vm4081_vm12, %v5802_v62 }
 0x228   : > { %v3759_v7 = vpop.f32.mrf.mxu1 }
 0x22a   : > { %v5155_v36 = vpop.f32.mrf.mxu1 }
 0x22c   : > { %v5157_v27 = vpop.f32.mrf.mxu1 }
 0x22e   : > { %v5159_v25 = vpop.f32.mrf.mxu1 }
 0x238   : > { %v5161_v59 = vpop.f32.mrf.mxu1 }
 0x239   : > { %v5163_v57 = vpop.f32.mrf.mxu0 }
 0x23a   : > { %v1247_v35 = vpop.f32.mrf.mxu1 }
 0x23b   : > { %v5165_v48 = vpop.f32.mrf.mxu0 }
 0x23c   : > { %v3764_v9 = vpop.f32.mrf.mxu1 }
 0x23d   : > { %v5167_v32 = vpop.f32.mrf.mxu0 }
 0x23e   : > { %v1250_v52 = vpop.f32.mrf.mxu1 }
 0x23f   : > { %v5169_v11 = vpop.f32.mrf.mxu0 }
 0x240   : > { %v3769_v45 = vpop.f32.mrf.mxu1 }
 0x241   : > { %v1323_v8 = vadd.f32 %v3769_v45, %v3759_v7  ;;  %v3204_v7 = vld [vmem:[%s5762_s10] sm:$0x3] }
 0x242   : > { %v1314_v40 = vpop.f32.mrf.mxu1  ;;  %3857 = vmatpush3.msk.msra.mxu0 %vm3209_vm13, %v3204_v7 }
 0x243   : > { %v1315_v12 = vadd.f32 %v1314_v40, %v5155_v36  ;;  %v1584_v47 = vadd.f32 %v5163_v57, %v1323_v8 }
 0x244   : > { %v3770_v51 = vpop.f32.mrf.mxu1 }
 0x245   : > { %v5171_v63 = vpop.f32.mrf.mxu0  ;;  %v1326_v13 = vadd.f32 %v3770_v51, %v5157_v27 }
 0x246   : > { %v1317_v53 = vpop.f32.mrf.mxu1 }
 0x247   : > { %v1567_v49 = vpop.f32.mrf.mxu0  ;;  %v1318_v62 = vadd.f32 %v1317_v53, %v5159_v25  ;;  %v1585_v45 = vadd.f32 %v5167_v32, %v1326_v13 }
 0x248   : > { %v5173_v14 = vpop.f32.mrf.mxu1 }
 0x249   : > { %v3784_v5 = vpop.f32.mrf.mxu0  ;;  %v1339_v27 = vadd.f32 %v5173_v14, %v5161_v59 }
 0x24a   : > { %v1330_v61 = vpop.f32.mrf.mxu1 }
 0x24b   : > { %v1331_v34 = vadd.f32 %v1330_v61, %v1247_v35  ;;  %v1570_v26 = vpop.f32.mrf.mxu0  ;;  %v1582_v35 = vadd.f32 %v5165_v48, %v1315_v12  ;;  %v5277_v12 = vld [vmem:[%s5758_s6] ss:$0 sm:$0xff] }
 0x24c   : > { %v3774_v33 = vpop.f32.mrf.mxu1 }
 0x24d   : > { %v1342_v3 = vadd.f32 %v3774_v33, %v3764_v9  ;;  %v5175_v0 = vadd.f32 %v1567_v49, %v1331_v34  ;;  %v3799_v19 = vpop.f32.mrf.mxu0  ;;  %v1588_v34 = vadd.f32 %v5171_v63, %v1339_v27  ;;  %v2585_v33 = vld [vmem:[#allocation2] sm:$0xff] }
 0x24e   : > { %v1333_v54 = vpop.f32.mrf.mxu1  ;;  %v5253_v63 = vld [vmem:[%s5759_s7 + $0x1] ss:$0 sm:$0xff] }
 0x24f   : > { %v1334_v28 = vadd.f32 %v1333_v54, %v1250_v52  ;;  %v5177_v39 = vadd.f32 %v3784_v5, %v1342_v3  ;;  %v5179_v29 = vpop.f32.mrf.mxu0  ;;  %v1583_v5 = vadd.f32 %v5169_v11, %v1318_v62  ;;  %v2627_v42 = vmul.f32 %v5253_v63, %v2585_v33 }
 0x250   : > { %v3789_v1 = vpop.f32.mrf.mxu1 }
 0x251   : > { %v1587_v46 = vadd.f32 %v1570_v26, %v1334_v28  ;;  %v5181_v38 = vpop.f32.mrf.mxu0  ;;  %v1725_v36 = vadd.f32 %v3789_v1, %v1584_v47  ;;  %v5248_v28 = vld [vmem:[%s5759_s7] ss:$0 sm:$0xff]  ;;  %v2659_v27 = vrot.slane %v2627_v42, 1 }
 0x252   : > { %v1692_v31 = vpop.f32.mrf.mxu1 }
 0x253   : > { %v5183_v6 = vpop.f32.mrf.mxu0  ;;  %v1723_v57 = vadd.f32 %v1692_v31, %v1582_v35  ;;  %v1863_v25 = vadd.f32 %v3799_v19, %v1725_v36  ;;  %v2586_v19 = vld [vmem:[#allocation2 + $0x8] sm:$0x3] }
 0x254   : > { %v3790_v41 = vpop.f32.mrf.mxu1 }
 0x255   : > { %v5185_v22 = vpop.f32.mrf.mxu0  ;;  %v1726_v49 = vadd.f32 %v3790_v41, %v1585_v45  ;;  %v1861_v59 = vadd.f32 %v5179_v29, %v1723_v57 }
 0x256   : > { %v1695_v56 = vpop.f32.mrf.mxu1 }
 0x257   : > { %v5187_v20 = vpop.f32.mrf.mxu0  ;;  %v1724_v61 = vadd.f32 %v1695_v56, %v1583_v5  ;;  %v1864_v11 = vadd.f32 %v5181_v38, %v1726_v49  ;;  %v5261_v38 = vld [vmem:[%s5759_s7 + $0x2] ss:$0 sm:$0xff]  ;;  %v5263_v56 = vld [vmem:[#allocation2 + $0x90] sm:$0xff] }
 0x258   : > { %v3793_v18 = vpop.f32.mrf.mxu1  ;;  %v2704_v13 = vmul.f32 %v5261_v38, %v2585_v33  ;;  %v2705_v47 = vmul.f32 %v5261_v38, %v2586_v19 }
 0x259   : > { %v5189_v44 = vpop.f32.mrf.mxu0  ;;  %v1729_v3 = vadd.f32 %v3793_v18, %v1588_v34  ;;  %v1862_v31 = vadd.f32 %v5183_v6, %v1724_v61  ;;  %v2905_v18 = vld [vmem:[#allocation2 + $0x98] sm:$0x3] }
 0x25a   : > { %v5191_v10 = vpop.f32.mrf.mxu1  ;;  %v2736_v34 = vrot.slane %v2704_v13, 2 }
 0x25b   : > { %v1849_v2 = vpop.f32.mrf.mxu0  ;;  %v1867_v6 = vadd.f32 %v5185_v22, %v1729_v3  ;;  %v1727_v35 = vadd.f32 %v5191_v10, %v5175_v0 }
 0x25c   : > { %v5200_v30 = vpop.f32.mrf.mxu1 }
 0x25d   : > { %v3819_v4 = vpop.f32.mrf.mxu0  ;;  %v1865_v3 = vadd.f32 %v5187_v20, %v1727_v35 }
 0x25e   : > { %v1711_v60 = vpop.f32.mrf.mxu1 }
 0x25f   : > { %v1728_v55 = vadd.f32 %v1711_v60, %v1587_v46  ;;  %v2130_v16 = vpop.f32.mrf.mxu0  ;;  %v2628_v60 = vmul.f32 %v5253_v63, %v2586_v19 }
 0x260   : > { %v3809_v50 = vpop.f32.mrf.mxu1 }
 0x261   : > { %v5213_v58 = vadd.f32 %v1849_v2, %v1728_v55  ;;  %v5215_v21 = vpop.f32.mrf.mxu0  ;;  %v2025_v26 = vadd.f32 %v3809_v50, %v1863_v25  ;;  %v2606_v2 = vmul.f32 %v5248_v28, %v2585_v33  ;;  %v5272_v55 = vld [vmem:[%s5759_s7 + $0x7] ss:$0 sm:$0xff]  ;;  %v2660_v57 = vrot.slane %v2628_v60, 1 }
 0x262   : > { %v1992_v17 = vpop.f32.mrf.mxu1  ;;  %v2946_v22 = vmul.f32 %v5272_v55, %v5263_v56 }
 0x263   : > { %v5219_v37 = vpop.f32.mrf.mxu0  ;;  %v2023_v54 = vadd.f32 %v1992_v17, %v1861_v59  ;;  %v2163_v41 = vadd.f32 %v3819_v4, %v2025_v26  ;;  %v2737_v26 = vrot.slane %v2705_v47, 2 }
 0x264   : > { %v3810_v43 = vpop.f32.mrf.mxu1  ;;  %v2985_v59 = vrot.slane %v2946_v22, 1 }
 0x265   : > { %v5226_v9 = vpop.f32.mrf.mxu0  ;;  %v2026_v46 = vadd.f32 %v3810_v43, %v1864_v11  ;;  %v2161_v8 = vadd.f32 %v2130_v16, %v2023_v54  ;;  %v2947_v16 = vmul.f32 %v5272_v55, %v2905_v18  ;;  %v5309_v11 = vld [vmem:[%s5759_s7 + $0x4] ss:$0 sm:$0xff] }
 0x266   : > { %v1995_v52 = vpop.f32.mrf.mxu1 }
 0x267   : > { %v5231_v40 = vpop.f32.mrf.mxu0  ;;  %v2024_v15 = vadd.f32 %v1995_v52, %v1862_v31  ;;  %v2164_v36 = vadd.f32 %v5215_v21, %v2026_v46  ;;  %v1730_v52 = vadd.f32 %v5200_v30, %v5177_v39  ;;  %v2986_v33 = vrot.slane %v2947_v16, 1  ;;  %v5301_v30 = vld [vmem:[%s5759_s7 + $0x8] ss:$0 sm:$0xff] }
 0x268   : > { %v3813_v51 = vpop.f32.mrf.mxu1  ;;  %v5316_v46 = vmul.f32 %v5301_v30, %v2905_v18 }
 0x269   : > { %v5234_v53 = vpop.f32.mrf.mxu0  ;;  %v2029_v43 = vadd.f32 %v3813_v51, %v1867_v6  ;;  %v2162_v51 = vadd.f32 %v5219_v37, %v2024_v15  ;;  %v1868_v54 = vadd.f32 %v5189_v44, %v1730_v52  ;;  %v5336_v15 = vld [vmem:[%s5759_s7 + $0x6] ss:$0 sm:$0xff]  ;;  %v5380_v52 = vld [vmem:[%s5759_s7 + $0x5] ss:$0 sm:$0xff] }
 0x26a   : > { %v5236_v48 = vpop.f32.mrf.mxu1  ;;  %v3063_v13 = vrot.slane %v5316_v46, 2 }
 0x26b   : > { %v5240_v14 = vpop.f32.mrf.mxu0  ;;  %v2167_v37 = vadd.f32 %v5226_v9, %v2029_v43 }
 0x26c   : > { %v5242_v32 = vpop.f32.mrf.mxu1 }
 0x26d   : > { %v3839_v29 = vpop.f32.mrf.mxu0 }
 0x26e   : > { %v5255_v1 = vpop.f32.mrf.mxu1 }
 0x26f   : > { %v2510_v24 = vpop.f32.mrf.mxu0  ;;  %v5355_v47 = vadd.f32 %v5255_v1, %v5213_v58 }
 0x270   : > { %v3829_v23 = vpop.f32.mrf.mxu1 }
 0x271   : > { %v2405_v4 = vadd.f32 %v3829_v23, %v2163_v41  ;;  %v3840_v50 = vpop.f32.mrf.mxu0  ;;  %v2027_v41 = vadd.f32 %v5236_v48, %v1865_v3  ;;  %v2661_v23 = vsel %vm670_vm5, %v2659_v27, %v2660_v57  ;;  %v2738_v48 = vsel %vm748_vm4, %v2736_v34, %v2737_v26 }
 0x272   : > { %v2372_v17 = vpop.f32.mrf.mxu1 }
 0x273   : > { %v2543_v7 = vadd.f32 %v3839_v29, %v2405_v4  ;;  %v2403_v62 = vadd.f32 %v2372_v17, %v2161_v8  ;;  %v2513_v61 = vpop.f32.mrf.mxu0  ;;  %v5313_v29 = vmul.f32 %v5301_v30, %v5263_v56  ;;  %v2165_v43 = vadd.f32 %v5231_v40, %v2027_v41 }
 0x274   : > { %v3830_v45 = vpop.f32.mrf.mxu1 }
 0x275   : > { %v5290_v49 = vadd.f32 %v5277_v12, %v2543_v7  ;;  %v2541_v5 = vadd.f32 %v2510_v24, %v2403_v62  ;;  %v2406_v25 = vadd.f32 %v3830_v45, %v2164_v36  ;;  %v2030_v24 = vadd.f32 %v5242_v32, %v1868_v54  ;;  %v3843_v42 = vpop.f32.mrf.mxu0  ;;  %v5366_v62 = vld [vmem:[%s5759_s7 + $0x3] ss:$0 sm:$0xff] }
 0x276   : > { %v2375_v21 = vpop.f32.mrf.mxu1  ;;  %v5341_v32 = vmul.f32 %v5336_v15, %v5263_v56  ;;  %v3062_v17 = vrot.slane %v5313_v29, 2 }
 0x277   : > { %2566 = vst.msk [vmem:[#allocation2 + $0x31] sm:$0xff] %vm429_vm0, %v5290_v49  ;;  %v5296_v0 = vadd.f32 %v5277_v12, %v2541_v5  ;;  %v2544_v39 = vadd.f32 %v3840_v50, %v2406_v25  ;;  %v2404_v10 = vadd.f32 %v2375_v21, %v2162_v51  ;;  %v2579_v56 = vmul.f32 %v5309_v11, %v5290_v49 }
 0x278   : > { %v3833_v19 = vpop.f32.mrf.mxu1  ;;  %v2168_v7 = vadd.f32 %v5234_v53, %v2030_v24 }
 0x279   : > { %2564 = vst.msk [vmem:[#allocation2 + $0x11] sm:$0xff] %vm429_vm0, %v5296_v0  ;;  %v2577_v20 = vmul.f32 %v5309_v11, %v5296_v0  ;;  %v5323_v44 = vadd.f32 %v5277_v12, %v2544_v39  ;;  %v2542_v9 = vadd.f32 %v2513_v61, %v2404_v10  ;;  %v2409_v31 = vadd.f32 %v3833_v19, %v2167_v37 }
 0x27a   : > { %v2388_v50 = vpop.f32.mrf.mxu1 }
 0x27b   : > { %v2614_v18 = vadd.f32 %v2606_v2, %v2577_v20  ;;  %2567 = vst.msk [vmem:[#allocation2 + $0x41] sm:$0xff] %vm429_vm0, %v5323_v44  ;;  %v5331_v60 = vadd.f32 %v5277_v12, %v2542_v9  ;;  %v2547_v6 = vadd.f32 %v3843_v42, %v2409_v31  ;;  %v5344_v2 = vsel %vm670_vm5, %v2985_v59, %v2986_v33  ;;  %v2526_v20 = vpop.f32.mrf.mxu0 }
 0x27c   : > { %v2580_v36 = vmul.f32 %v5309_v11, %v5323_v44  ;;  %v2407_v5 = vadd.f32 %v2388_v50, %v2165_v43  ;;  %v3834_v26 = vpop.f32.mrf.mxu1 }
 0x27d   : > { %v2691_v4 = vadd.f32 %v2661_v23, %v2614_v18  ;;  %2565 = vst.msk [vmem:[#allocation2 + $0x21] sm:$0xff] %vm429_vm0, %v5331_v60  ;;  %v5349_v8 = vadd.f32 %v5277_v12, %v2547_v6  ;;  %v2578_v45 = vmul.f32 %v5309_v11, %v5331_v60  ;;  %v5399_v18 = vadd.f32 %v3834_v26, %v2168_v7 }
 0x27e   : > { %v5359_v22 = vld [vmem:[#allocation2 + $0x30] sm:$0xff]  ;;  %v2592_v16 = vld [vmem:[#allocation2 + $0x38] sm:$0x3]  ;;  %v5397_v42 = vadd.f32 %v2526_v20, %v2407_v5 }
 0x27f   : > { %v2609_v58 = vmul.f32 %v5248_v28, %v5359_v22  ;;  %v2633_v1 = vmul.f32 %v5253_v63, %v5359_v22  ;;  %v2634_v35 = vmul.f32 %v5253_v63, %v2592_v16  ;;  %2570 = vst.msk [vmem:[#allocation2 + $0x71] sm:$0xff] %vm429_vm0, %v5349_v8  ;;  %v2710_v27 = vmul.f32 %v5261_v38, %v5359_v22 }
 0x280   : > { %v2776_v40 = vld [vmem:[#allocation2 + $0x10] sm:$0xff]  ;;  %v2777_v53 = vld [vmem:[#allocation2 + $0x18] sm:$0x3]  ;;  %v2711_v57 = vmul.f32 %v5261_v38, %v2592_v16  ;;  %v2768_v25 = vadd.f32 %v2738_v48, %v2691_v4  ;;  %v2799_v23 = vmul.f32 %v5366_v62, %v5359_v22  ;;  %v2822_v16 = vmul.f32 %v5380_v52, %v5359_v22 }
 0x281   : > { %v2797_v51 = vmul.f32 %v5366_v62, %v2776_v40  ;;  %v2818_v61 = vmul.f32 %v5380_v52, %v2776_v40  ;;  %v2819_v34 = vmul.f32 %v5380_v52, %v2777_v53  ;;  %v2668_v21 = vrot.slane %v2633_v1, 1  ;;  %v2588_v41 = vld [vmem:[#allocation2 + $0x18] sm:$0x3] }
 0x282   : > { %v2669_v59 = vrot.slane %v2634_v35, 1  ;;  %v2745_v33 = vrot.slane %v2710_v27, 2  ;;  %v2746_v39 = vrot.slane %v2711_v57, 2  ;;  %v2617_v54 = vadd.f32 %v2609_v58, %v2580_v36  ;;  %v5390_v19 = vld [vmem:[#allocation2 + $0x40] sm:$0xff]  ;;  %v2783_v31 = vld [vmem:[#allocation2 + $0x48] sm:$0x3] }
 0x283   : > { %v2805_v10 = vadd.f32 %v2797_v51, %v2768_v25  ;;  %v2850_v37 = vrot.slane %v2818_v61, 2  ;;  %v2851_v3 = vrot.slane %v2819_v34, 2  ;;  %v2607_v4 = vmul.f32 %v5248_v28, %v2776_v40 }
 0x284   : > { %v2670_v9 = vsel %vm670_vm5, %v2668_v21, %v2669_v59  ;;  %v5393_v24 = vld [vmem:[#allocation2 + $0x20] sm:$0xff]  ;;  %v2590_v48 = vld [vmem:[#allocation2 + $0x28] sm:$0x3]  ;;  %v5408_v43 = vsel %vm748_vm4, %v2745_v33, %v2746_v39  ;;  %v5412_v36 = vmul.f32 %v5366_v62, %v5390_v19  ;;  %v5416_v7 = vmul.f32 %v5380_v52, %v5390_v19 }
 0x285   : > { %v2852_v6 = vsel %vm748_vm4, %v2850_v37, %v2851_v3  ;;  %v2608_v50 = vmul.f32 %v5248_v28, %v5393_v24  ;;  %v2629_v58 = vmul.f32 %v5253_v63, %v2776_v40  ;;  %v5419_v35 = vadd.f32 %v2670_v9, %v2617_v54 }
 0x286   : > { %v2882_v1 = vadd.f32 %v2852_v6, %v2805_v10  ;;  %v5422_v53 = vmul.f32 %v5380_v52, %v2783_v31  ;;  %v2630_v27 = vmul.f32 %v5253_v63, %v2588_v41  ;;  %v2615_v57 = vadd.f32 %v2607_v4, %v2578_v45  ;;  %v2781_v45 = vld [vmem:[#allocation2 + $0x38] sm:$0x3] }
 0x287   : > { %v2631_v5 = vmul.f32 %v5253_v63, %v5393_v24  ;;  %v2632_v25 = vmul.f32 %v5253_v63, %v2590_v48  ;;  %v2662_v51 = vrot.slane %v2629_v58, 1  ;;  %v2616_v61 = vadd.f32 %v2608_v50, %v2579_v56  ;;  %v2779_v56 = vld [vmem:[#allocation2 + $0x28] sm:$0x3] }
 0x288   : > { %v2663_v34 = vrot.slane %v2630_v27, 1  ;;  %v2706_v26 = vmul.f32 %v5261_v38, %v2776_v40  ;;  %v2707_v21 = vmul.f32 %v5261_v38, %v2588_v41  ;;  %v2708_v39 = vmul.f32 %v5261_v38, %v5393_v24 }
 0x289   : > { %v2665_v59 = vrot.slane %v2631_v5, 1  ;;  %v2666_v33 = vrot.slane %v2632_v25, 1  ;;  %v2709_v10 = vmul.f32 %v5261_v38, %v2590_v48  ;;  %v2859_v37 = vrot.slane %v5416_v7, 2 }
 0x28a   : > { %v2664_v3 = vsel %vm670_vm5, %v2662_v51, %v2663_v34  ;;  %v2739_v54 = vrot.slane %v2706_v26, 2  ;;  %v2740_v20 = vrot.slane %v2707_v21, 2  ;;  %v2742_v31 = vrot.slane %v2708_v39, 2  ;;  %v2891_v26 = vld [vmem:[#allocation2 + $0x28] sm:$0x3] }
 0x28b   : > { %v2667_v9 = vsel %vm670_vm5, %v2665_v59, %v2666_v33  ;;  %v2692_v40 = vadd.f32 %v2664_v3, %v2615_v57  ;;  %v2743_v41 = vrot.slane %v2709_v10, 2  ;;  %v2798_v50 = vmul.f32 %v5366_v62, %v5393_v24  ;;  %v2893_v39 = vld [vmem:[#allocation2 + $0x38] sm:$0x3] }
 0x28c   : > { %v2693_v6 = vadd.f32 %v2667_v9, %v2616_v61  ;;  %v2741_v4 = vsel %vm748_vm4, %v2739_v54, %v2740_v20  ;;  %v2820_v48 = vmul.f32 %v5380_v52, %v5393_v24  ;;  %v2821_v5 = vmul.f32 %v5380_v52, %v2779_v56  ;;  %v2895_v54 = vld [vmem:[#allocation2 + $0x48] sm:$0x3] }
 0x28d   : > { %v2744_v58 = vsel %vm748_vm4, %v2742_v31, %v2743_v41  ;;  %v2769_v27 = vadd.f32 %v2741_v4, %v2692_v40  ;;  %v2823_v25 = vmul.f32 %v5380_v52, %v2781_v45  ;;  %v2856_v34 = vrot.slane %v2822_v16, 2 }
 0x28e   : > { %v2770_v51 = vadd.f32 %v2744_v58, %v2693_v6  ;;  %v2853_v57 = vrot.slane %v2820_v48, 2  ;;  %v2911_v61 = vmul.f32 %v5336_v15, %v5393_v24  ;;  %v2854_v59 = vrot.slane %v2821_v5, 2 }
 0x28f   : > { %v2806_v21 = vadd.f32 %v2798_v50, %v2769_v27  ;;  %v2857_v33 = vrot.slane %v2823_v25, 2  ;;  %v2912_v10 = vmul.f32 %v5336_v15, %v5359_v22  ;;  %v2913_v20 = vmul.f32 %v5336_v15, %v5390_v19 }
 0x290   : > { %v2807_v3 = vadd.f32 %v2799_v23, %v2770_v51  ;;  %v2919_v45 = vadd.f32 %v2911_v61, %v2882_v1  ;;  %v2932_v16 = vmul.f32 %v5272_v55, %v5393_v24  ;;  %v2855_v56 = vsel %vm748_vm4, %v2853_v57, %v2854_v59 }
 0x291   : > { %v2858_v9 = vsel %vm748_vm4, %v2856_v34, %v2857_v33  ;;  %v2933_v40 = vmul.f32 %v5272_v55, %v2891_v26  ;;  %v2934_v31 = vmul.f32 %v5272_v55, %v5359_v22  ;;  %v2883_v41 = vadd.f32 %v2855_v56, %v2806_v21 }
 0x292   : > { %v2884_v6 = vadd.f32 %v2858_v9, %v2807_v3  ;;  %v2935_v23 = vmul.f32 %v5272_v55, %v2893_v39  ;;  %v2936_v4 = vmul.f32 %v5272_v55, %v5390_v19  ;;  %v2937_v1 = vmul.f32 %v5272_v55, %v2895_v54 }
 0x293   : > { %v2964_v50 = vrot.slane %v2932_v16, 1  ;;  %v2965_v48 = vrot.slane %v2933_v40, 1  ;;  %v2967_v58 = vrot.slane %v2934_v31, 1  ;;  %v2920_v27 = vadd.f32 %v2912_v10, %v2883_v41 }
 0x294   : > { %v2921_v5 = vadd.f32 %v2913_v20, %v2884_v6  ;;  %v2968_v25 = vrot.slane %v2935_v23, 1  ;;  %v2970_v51 = vrot.slane %v2936_v4, 1  ;;  %v2971_v34 = vrot.slane %v2937_v1, 1 }
 0x295   : > { %v2966_v57 = vsel %vm670_vm5, %v2964_v50, %v2965_v48  ;;  %v3009_v61 = vmul.f32 %v5301_v30, %v5393_v24  ;;  %v3010_v21 = vmul.f32 %v5301_v30, %v2891_v26  ;;  %v2771_v59 = vadd.f32 %v5408_v43, %v5419_v35  ;;  %v2594_v43 = vld [vmem:[#allocation2 + $0x48] sm:$0x3]  ;;  %v5489_v48 = vld [vmem:[%s5760_s8] ss:$0 sm:$0xff] }
 0x296   : > { %v2969_v33 = vsel %vm670_vm5, %v2967_v58, %v2968_v25  ;;  %v3011_v3 = vmul.f32 %v5301_v30, %v5359_v22  ;;  %v3012_v10 = vmul.f32 %v5301_v30, %v2893_v39  ;;  %v2972_v20 = vsel %vm670_vm5, %v2970_v51, %v2971_v34  ;;  %v3844_v25 = vpop.f32.mrf.mxu0 }
 0x297   : > { %v2996_v16 = vadd.f32 %v2966_v57, %v2919_v45  ;;  %v3013_v56 = vmul.f32 %v5301_v30, %v5390_v19  ;;  %v3014_v24 = vmul.f32 %v5301_v30, %v2895_v54  ;;  %v2997_v9 = vadd.f32 %v2969_v33, %v2920_v27 }
 0x298   : > { %v3041_v26 = vrot.slane %v3009_v61, 2  ;;  %v3042_v40 = vrot.slane %v3010_v21, 2  ;;  %v3044_v31 = vrot.slane %v3011_v3, 2  ;;  %v2998_v35 = vadd.f32 %v2972_v20, %v2921_v5  ;;  %v5503_v3 = vld [vmem:[#allocation2 + $0x70] sm:$0xff] }
 0x299   : > { %v3045_v41 = vrot.slane %v3012_v10, 2  ;;  %v3047_v6 = vrot.slane %v3013_v56, 2  ;;  %v3048_v23 = vrot.slane %v3014_v24, 2  ;;  %v5478_v39 = vadd.f32 %v5277_v12, %v5397_v42 }
 0x29a   : > { %v3043_v22 = vsel %vm748_vm4, %v3041_v26, %v3042_v40  ;;  %v2610_v45 = vmul.f32 %v5248_v28, %v5390_v19  ;;  %v2635_v54 = vmul.f32 %v5253_v63, %v5390_v19  ;;  %v2808_v4 = vadd.f32 %v5412_v36, %v2771_v59 }
 0x29b   : > { %v2860_v1 = vrot.slane %v5422_v53, 2  ;;  %v3073_v50 = vadd.f32 %v3043_v22, %v2996_v16  ;;  %v2636_v58 = vmul.f32 %v5253_v63, %v2594_v43  ;;  %v3046_v42 = vsel %vm748_vm4, %v3044_v31, %v3045_v41  ;;  %2568 = vst.msk [vmem:[#allocation2 + $0x51] sm:$0xff] %vm429_vm0, %v5478_v39 }
 0x29c   : > { %v3049_v27 = vsel %vm748_vm4, %v3047_v6, %v3048_v23  ;;  %v2581_v36 = vmul.f32 %v5309_v11, %v5478_v39  ;;  %v2671_v5 = vrot.slane %v2635_v54, 1  ;;  %v3074_v53 = vadd.f32 %v3046_v42, %v2997_v9  ;;  %v2600_v9 = vld [vmem:[#allocation2 + $0x78] sm:$0x3]  ;;  %v2391_v23 = vpop.f32.mrf.mxu1 }
 0x29d   : > { %v2672_v51 = vrot.slane %v2636_v58, 1  ;;  %v2712_v57 = vmul.f32 %v5261_v38, %v5390_v19  ;;  %v2713_v34 = vmul.f32 %v5261_v38, %v2594_v43  ;;  %v3075_v61 = vadd.f32 %v3049_v27, %v2998_v35 }
 0x29e   : > { %v3088_v21 = vadd.f32 %v5489_v48, %v3073_v50  ;;  %v2618_v59 = vadd.f32 %v2610_v45, %v2581_v36  ;;  %v2548_v33 = vadd.f32 %v3844_v25, %v5399_v18  ;;  %v5511_v19 = vsel %vm748_vm4, %v3062_v17, %v3063_v13  ;;  %v2529_v25 = vpop.f32.mrf.mxu0 }
 0x29f   : > { %v2673_v10 = vsel %vm670_vm5, %v2671_v5, %v2672_v51  ;;  %v2748_v20 = vrot.slane %v2712_v57, 2  ;;  %v2749_v16 = vrot.slane %v2713_v34, 2  ;;  %v2861_v56 = vsel %vm748_vm4, %v2859_v37, %v2860_v1 }
 0x2a0   : > { %v2695_v24 = vadd.f32 %v2673_v10, %v2618_v59  ;;  %v5517_v18 = vadd.f32 %v5277_v12, %v2548_v33  ;;  %v2166_v26 = vadd.f32 %v5240_v14, %v5355_v47  ;;  %v5521_v40 = vadd.f32 %v2861_v56, %v2808_v4 }
 0x2a1   : > { %v5525_v29 = vmul.f32 %v5309_v11, %v5349_v8  ;;  %v2613_v46 = vmul.f32 %v5248_v28, %v5503_v3  ;;  %v2641_v17 = vmul.f32 %v5253_v63, %v5503_v3  ;;  %v3089_v13 = vadd.f32 %v5489_v48, %v3074_v53 }
 0x2a2   : > { %v3090_v7 = vadd.f32 %v5489_v48, %v3075_v61  ;;  %v5534_v37 = vmax.f32 %v5296_v0, %v3088_v21  ;;  %2571 = vst.msk [vmem:[#allocation2 + $0x81] sm:$0xff] %vm429_vm0, %v5517_v18  ;;  %v2584_v14 = vmul.f32 %v5309_v11, %v5517_v18  ;;  %v2750_v47 = vsel %vm748_vm4, %v2748_v20, %v2749_v16  ;;  %v5541_v31 = vld [vmem:[#allocation2 + $0x50] sm:$0xff]  ;;  %v2785_v43 = vld [vmem:[#allocation2 + $0x58] sm:$0x3] }
 0x2a3   : > { %v2642_v35 = vmul.f32 %v5253_v63, %v2600_v9  ;;  %v2680_v41 = vrot.slane %v2641_v17, 1  ;;  %v2718_v6 = vmul.f32 %v5261_v38, %v5503_v3  ;;  %v2772_v0 = vadd.f32 %v2750_v47, %v2695_v24  ;;  %v2596_v42 = vld [vmem:[#allocation2 + $0x58] sm:$0x3] }
 0x2a4   : > { %v2826_v22 = vmul.f32 %v5380_v52, %v5541_v31  ;;  %v2827_v45 = vmul.f32 %v5380_v52, %v2785_v43  ;;  %v2621_v54 = vadd.f32 %v2613_v46, %v2584_v14  ;;  %v2801_v4 = vmul.f32 %v5366_v62, %v5541_v31  ;;  %v2789_v43 = vld [vmem:[#allocation2 + $0x78] sm:$0x3] }
 0x2a5   : > { %v2681_v1 = vrot.slane %v2642_v35, 1  ;;  %v2719_v50 = vmul.f32 %v5261_v38, %v2600_v9  ;;  %v2757_v58 = vrot.slane %v2718_v6, 2  ;;  %v5553_v27 = vmax.f32 %v5331_v60, %v3089_v13 }
 0x2a6   : > { %v5556_v36 = vmax.f32 %v5290_v49, %v3090_v7  ;;  %v5560_v5 = vsel %vm429_vm0, %v5534_v37, 0.0  ;;  %v2408_v53 = vadd.f32 %v2391_v23, %v2166_v26  ;;  %v2862_v51 = vrot.slane %v2826_v22, 2 }
 0x2a7   : > { %v2682_v57 = vsel %vm670_vm5, %v2680_v41, %v2681_v1  ;;  %v2758_v34 = vrot.slane %v2719_v50, 2  ;;  %v2637_v61 = vmul.f32 %v5253_v63, %v5541_v31  ;;  %v2863_v21 = vrot.slane %v2827_v45, 2  ;;  %v2897_v50 = vld [vmem:[#allocation2 + $0x58] sm:$0x3] }
 0x2a8   : > { %v2698_v59 = vadd.f32 %v2682_v57, %v2621_v54  ;;  %v2546_v60 = vadd.f32 %v2529_v25, %v2408_v53  ;;  %v2638_v33 = vmul.f32 %v5253_v63, %v2596_v42  ;;  %v2809_v49 = vadd.f32 %v2801_v4, %v2772_v0 }
 0x2a9   : > { %v2759_v10 = vsel %vm748_vm4, %v2757_v58, %v2758_v34  ;;  %v5567_v20 = vld [vmem:[#allocation2 + $0x80] sm:$0xff]  ;;  %v2791_v16 = vld [vmem:[#allocation2 + $0x88] sm:$0x3]  ;;  %v2674_v56 = vrot.slane %v2637_v61, 1  ;;  %v2714_v24 = vmul.f32 %v5261_v38, %v5541_v31  ;;  %v2611_v7 = vmul.f32 %v5248_v28, %v5541_v31  ;;  %v5600_v61 = vld [vmem:[#allocation2 + $0x78] sm:$0x3] }
 0x2aa   : > { %v2775_v9 = vadd.f32 %v2759_v10, %v2698_v59  ;;  %v2804_v26 = vmul.f32 %v5366_v62, %v5567_v20  ;;  %v2832_v46 = vmul.f32 %v5380_v52, %v5567_v20  ;;  %v2833_v17 = vmul.f32 %v5380_v52, %v2791_v16 }
 0x2ab   : > { %v5577_v13 = vadd.f32 %v5277_v12, %v2546_v60  ;;  %v2675_v14 = vrot.slane %v2638_v33, 1  ;;  %v2715_v47 = vmul.f32 %v5261_v38, %v2596_v42  ;;  %v2864_v35 = vsel %vm748_vm4, %v2862_v51, %v2863_v21  ;;  %v5602_v21 = vld [vmem:[#allocation2 + $0x88] sm:$0x3] }
 0x2ac   : > { %v2812_v41 = vadd.f32 %v2804_v26, %v2775_v9  ;;  %v2871_v6 = vrot.slane %v2832_v46, 2  ;;  %v2872_v23 = vrot.slane %v2833_v17, 2  ;;  %v2751_v22 = vrot.slane %v2714_v24, 2 }
 0x2ad   : > { %2569 = vst.msk [vmem:[#allocation2 + $0x61] sm:$0xff] %vm429_vm0, %v5577_v13  ;;  %v2582_v0 = vmul.f32 %v5309_v11, %v5577_v13  ;;  %v2676_v12 = vsel %vm670_vm5, %v2674_v56, %v2675_v14  ;;  %v2830_v45 = vmul.f32 %v5380_v52, %v5503_v3  ;;  %v2752_v4 = vrot.slane %v2715_v47, 2 }
 0x2ae   : > { %v2873_v54 = vsel %vm748_vm4, %v2871_v6, %v2872_v23  ;;  %v2831_v1 = vmul.f32 %v5380_v52, %v2789_v43  ;;  %v2914_v58 = vmul.f32 %v5336_v15, %v5541_v31  ;;  %v5596_v42 = vsel %vm429_vm0, %v5553_v27, 0.0 }
 0x2af   : > { %v2889_v11 = vadd.f32 %v2873_v54, %v2812_v41  ;;  %v2619_v53 = vadd.f32 %v2611_v7, %v2582_v0  ;;  %v2868_v25 = vrot.slane %v2830_v45, 2  ;;  %v2886_v51 = vadd.f32 %v2864_v35, %v2809_v49 }
 0x2b0   : > { %v2803_v57 = vmul.f32 %v5366_v62, %v5503_v3  ;;  %v2869_v34 = vrot.slane %v2831_v1, 2  ;;  %v2938_v59 = vmul.f32 %v5272_v55, %v5541_v31  ;;  %v2939_v10 = vmul.f32 %v5272_v55, %v2897_v50 }
 0x2b1   : > { %v2926_v60 = vadd.f32 %v5341_v32, %v2889_v11  ;;  %v2696_v33 = vadd.f32 %v2676_v12, %v2619_v53  ;;  %v2942_v16 = vmul.f32 %v5272_v55, %v5503_v3  ;;  %v2753_v49 = vsel %vm748_vm4, %v2751_v22, %v2752_v4 }
 0x2b2   : > { %v2916_v56 = vmul.f32 %v5336_v15, %v5503_v3  ;;  %v5615_v24 = vmul.f32 %v5336_v15, %v5567_v20  ;;  %v2922_v9 = vadd.f32 %v2914_v58, %v5521_v40  ;;  %v2870_v26 = vsel %vm748_vm4, %v2868_v25, %v2869_v34 }
 0x2b3   : > { %v2943_v32 = vmul.f32 %v5272_v55, %v5600_v61  ;;  %v2944_v46 = vmul.f32 %v5272_v55, %v5567_v20  ;;  %v2945_v17 = vmul.f32 %v5272_v55, %v5602_v21  ;;  %v5626_v7 = vadd.f32 %v5344_v2, %v2926_v60 }
 0x2b4   : > { %v2597_v14 = vld [vmem:[#allocation2 + $0x60] sm:$0xff]  ;;  %v2598_v47 = vld [vmem:[#allocation2 + $0x68] sm:$0x3]  ;;  %v2773_v43 = vadd.f32 %v2753_v49, %v2696_v33  ;;  %v2973_v35 = vrot.slane %v2938_v59, 1  ;;  %v2974_v41 = vrot.slane %v2939_v10, 1  ;;  %v2979_v12 = vrot.slane %v2942_v16, 1 }
 0x2b5   : > { %v2612_v40 = vmul.f32 %v5248_v28, %v2597_v14  ;;  %v2639_v6 = vmul.f32 %v5253_v63, %v2597_v14  ;;  %v2640_v23 = vmul.f32 %v5253_v63, %v2598_v47  ;;  %v2787_v0 = vld [vmem:[#allocation2 + $0x68] sm:$0x3]  ;;  %v2716_v22 = vmul.f32 %v5261_v38, %v2597_v14 }
 0x2b6   : > { %v2717_v45 = vmul.f32 %v5261_v38, %v2598_v47  ;;  %v2828_v2 = vmul.f32 %v5380_v52, %v2597_v14  ;;  %v3015_v54 = vmul.f32 %v5301_v30, %v5541_v31  ;;  %v2802_v28 = vmul.f32 %v5366_v62, %v2597_v14  ;;  %v2899_v25 = vld [vmem:[#allocation2 + $0x68] sm:$0x3] }
 0x2b7   : > { %v2620_v4 = vadd.f32 %v2612_v40, %v5525_v29  ;;  %v2677_v1 = vrot.slane %v2639_v6, 1  ;;  %v2678_v58 = vrot.slane %v2640_v23, 1  ;;  %v2754_v11 = vrot.slane %v2716_v22, 2 }
 0x2b8   : > { %v2755_v53 = vrot.slane %v2717_v45, 2  ;;  %v2829_v63 = vmul.f32 %v5380_v52, %v2787_v0  ;;  %v3016_v34 = vmul.f32 %v5301_v30, %v2897_v50  ;;  %v2810_v59 = vadd.f32 %v2802_v28, %v2773_v43 }
 0x2b9   : > { %v2679_v38 = vsel %vm670_vm5, %v2677_v1, %v2678_v58  ;;  %v2865_v60 = vrot.slane %v2828_v2, 2  ;;  %v2915_v33 = vmul.f32 %v5336_v15, %v2597_v14  ;;  %v2940_v29 = vmul.f32 %v5272_v55, %v2597_v14 }
 0x2ba   : > { %v2697_v31 = vadd.f32 %v2679_v38, %v2620_v4  ;;  %v2866_v10 = vrot.slane %v2829_v63, 2  ;;  %v3019_v62 = vmul.f32 %v5301_v30, %v5503_v3  ;;  %v2756_v16 = vsel %vm748_vm4, %v2754_v11, %v2755_v53 }
 0x2bb   : > { %v2923_v49 = vadd.f32 %v2915_v33, %v2886_v51  ;;  %v2941_v52 = vmul.f32 %v5272_v55, %v2899_v25  ;;  %v2975_v50 = vsel %vm670_vm5, %v2973_v35, %v2974_v41  ;;  %v2976_v40 = vrot.slane %v2940_v29, 1 }
 0x2bc   : > { %v2774_v47 = vadd.f32 %v2756_v16, %v2697_v31  ;;  %v2867_v43 = vsel %vm748_vm4, %v2865_v60, %v2866_v10  ;;  %v2980_v6 = vrot.slane %v2943_v32, 1  ;;  %v2982_v0 = vrot.slane %v2944_v46, 1 }
 0x2bd   : > { %v2887_v15 = vadd.f32 %v2867_v43, %v2810_v59  ;;  %v2977_v23 = vrot.slane %v2941_v52, 1  ;;  %v2983_v22 = vrot.slane %v2945_v17, 1  ;;  %v2999_v3 = vadd.f32 %v2975_v50, %v2922_v9 }
 0x2be   : > { %v2811_v45 = vadd.f32 %v2803_v57, %v2774_v47  ;;  %v2981_v2 = vsel %vm670_vm5, %v2979_v12, %v2980_v6  ;;  %v3017_v4 = vmul.f32 %v5301_v30, %v2597_v14  ;;  %v3018_v41 = vmul.f32 %v5301_v30, %v2899_v25 }
 0x2bf   : > { %v2924_v51 = vadd.f32 %v2916_v56, %v2887_v15  ;;  %v2978_v55 = vsel %vm670_vm5, %v2976_v40, %v2977_v23  ;;  %v2984_v35 = vsel %vm670_vm5, %v2982_v0, %v2983_v22  ;;  %v3020_v32 = vmul.f32 %v5301_v30, %v5600_v61 }
 0x2c0   : > { %v2888_v1 = vadd.f32 %v2870_v26, %v2811_v45  ;;  %v3000_v58 = vadd.f32 %v2978_v55, %v2923_v49  ;;  %v3021_v57 = vmul.f32 %v5301_v30, %v5567_v20  ;;  %v3022_v9 = vmul.f32 %v5301_v30, %v5602_v21 }
 0x2c1   : > { %v3001_v46 = vadd.f32 %v2981_v2, %v2924_v51  ;;  %v3050_v17 = vrot.slane %v3015_v54, 2  ;;  %v3051_v56 = vrot.slane %v3016_v34, 2  ;;  %v3053_v12 = vrot.slane %v3017_v4, 2 }
 0x2c2   : > { %v2925_v14 = vadd.f32 %v5615_v24, %v2888_v1  ;;  %v3054_v28 = vrot.slane %v3018_v41, 2  ;;  %v3056_v11 = vrot.slane %v3019_v62, 2  ;;  %v3057_v53 = vrot.slane %v3020_v32, 2 }
 0x2c3   : > { %v3052_v26 = vsel %vm748_vm4, %v3050_v17, %v3051_v56  ;;  %v3059_v63 = vrot.slane %v3021_v57, 2  ;;  %v3060_v25 = vrot.slane %v3022_v9, 2  ;;  %v3107_v61 = vsel %vm429_vm0, %v5556_v36, 0.0  ;;  %v3948_v17 = vld [vmem:[%s4271_s29] sm:$0xff]  }
 0x2c4   : > { %v3002_v20 = vadd.f32 %v2984_v35, %v2925_v14  ;;  %v3055_v38 = vsel %vm748_vm4, %v3053_v12, %v3054_v28  ;;  %v3076_v59 = vadd.f32 %v3052_v26, %v2999_v3  ;;  %v3106_v30 = vadd.f32 %v5596_v42, %v5560_v5  ;;  %v3949_v12 = vld [vmem:[%s4271_s29 + $0x8] sm:$0xff]  }
 0x2c5   : > { %v3058_v21 = vsel %vm748_vm4, %v3056_v11, %v3057_v53  ;;  %v3061_v24 = vsel %vm748_vm4, %v3059_v63, %v3060_v25  ;;  %v3077_v54 = vadd.f32 %v3055_v38, %v3000_v58  ;;  %v3080_v34 = vadd.f32 %v5511_v19, %v5626_v7  ;;  %v3950_v53 = vld [vmem:[%s4271_s29 + $0x10] sm:$0xff]  }
 0x2c6   : > { %v3078_v60 = vadd.f32 %v3058_v21, %v3001_v46  ;;  %v3079_v33 = vadd.f32 %v3061_v24, %v3002_v20  ;;  %v3091_v31 = vadd.f32 %v5489_v48, %v3076_v59  ;;  %v3108_v10 = vadd.f32 %v3107_v61, %v3106_v30  ;;  %v3951_v61 = vld [vmem:[%s4271_s29 + $0x18] sm:$0xff]  }
 0x2c7   : > { %v3092_v29 = vadd.f32 %v5489_v48, %v3077_v54  ;;  %v3095_v49 = vadd.f32 %v5489_v48, %v3080_v34  ;;  %v3289_v32 = vlaneseq  ;;  %v3301_v56 = vunpack.c.l.bf16 %v3948_v17 }
 0x2c8   : > { %v3093_v62 = vadd.f32 %v5489_v48, %v3078_v60  ;;  %v3094_v16 = vadd.f32 %v5489_v48, %v3079_v33  ;;  %v3099_v5 = vmax.f32 %v5323_v44, %v3091_v31  ;;  %v3302_v14 = vunpack.c.h.bf16 %v3948_v17 }
 0x2c9   : > { %v3100_v42 = vmax.f32 %v5478_v39, %v3092_v29  ;;  %v3103_v40 = vmax.f32 %v5517_v18, %v3095_v49  ;;  %v3290_v57 = vshrl.u32 %v3289_v32, 7  ;;  %v3303_v28 = vunpack.c.l.bf16 %v3949_v12 }
 0x2ca   : > { %v3101_v52 = vmax.f32 %v5577_v13, %v3093_v62  ;;  %v3102_v19 = vmax.f32 %v5349_v8, %v3094_v16  ;;  %v3109_v7 = vsel %vm429_vm0, %v3099_v5, 0.0  ;;  %v3304_v11 = vunpack.c.h.bf16 %v3949_v12 }
 0x2cb   : > { %v3110_v50 = vadd.f32 %v3109_v7, %v3108_v10  ;;  %v3111_v47 = vsel %vm429_vm0, %v3100_v42, 0.0  ;;  %v3117_v48 = vsel %vm429_vm0, %v3103_v40, 0.0  ;;  %v3291_v46 = vsub.s32 0, %v3290_v57 }
 0x2cc   : > { %v3113_v6 = vsel %vm429_vm0, %v3101_v52, 0.0  ;;  %v3115_v44 = vsel %vm429_vm0, %v3102_v19, 0.0  ;;  %v3305_v63 = vunpack.c.l.bf16 %v3950_v53  ;;  %v3306_v25 = vunpack.c.h.bf16 %v3950_v53 }
 0x2cd   : > { %v3112_v43 = vadd.f32 %v3111_v47, %v3110_v50  ;;  %v3307_v20 = vunpack.c.l.bf16 %v3951_v61  ;;  %v3308_v38 = vunpack.c.h.bf16 %v3951_v61 }
 0x2cf   : > { %v3114_v15 = vadd.f32 %v3113_v6, %v3112_v43 }
 0x2d1   : > { %v3116_v39 = vadd.f32 %v3115_v44, %v3114_v15 }
 0x2d3   : > { %v3118_v23 = vadd.f32 %v3117_v48, %v3116_v39 }
 0x2d5   : > { %v3119_v13 = vrot.slane %v3118_v23, 4 }
 0x2d7   : > { %v3120_v0 = vadd.f32 %v3119_v13, %v3118_v23 }
 0x2d9   : > { %v3121_v8 = vrot.slane %v3120_v0, 2 }
 0x2db   : > { %v3122_v22 = vadd.f32 %v3121_v8, %v3120_v0 }
 0x2dd   : > { %v3123_v45 = vrot.slane %v3122_v22, 1 }
 0x2df   : > { %v3124_v2 = vadd.f32 %v3123_v45, %v3122_v22 }
 0x2e1   : > { %v3125_v3 = vmul.f32 0.015625, %v3124_v2 }
 0x2e3   : > { %3854 = vmatmul.mubr.msk.f32.vlgmr.msra.gmra.mxu1 %vm429_vm0, %v3125_v3 }
 0x3a3   : > { %v3199_v18 = vpop.f32.mrf.mxu1 }
 0x3a4   : > { %v3203_v4 = vmax.f32 %v3199_v18, 0.0 }
 0x3a5   : > { %v3855_v51 = vpop.f32.mrf.mxu1 }
 0x3a6   : > { %3859 = vmatmul.mubr.msk.f32.vlgmr.msra.gmra.mxu0 %vm3205_vm14, %v3203_v4 }
 0x466   : > { %v3279_v55 = vpop.f32.mrf.mxu0 }
 0x467   : > { %v3617_v35 = vmul.f32 -1.442695, %v3279_v55 }
 0x468   : > { %v3860_v41 = vpop.f32.mrf.mxu0 }
 0x469   : > { %3943 = vpow2.f32 %v3617_v35 }
 0x476   : > { %v3944_v1 = vpop.eup %3943 }
 0x477   : > { %v3286_v58 = vadd.f32 1.0, %v3944_v1 }
 0x479   : > { %3945 = vrcp.f32 %v3286_v58 }
 0x486   : > { %v3946_v9 = vpop.eup %3945 }
 0x487   : > { %v3292_v26 = vrot.slane %v3946_v9, %v3291_v46 }
 0x489   : > { %v3293_v59 = vmul.f32 %v3292_v26, %v5534_v37  ;;  %v3294_v30 = vmul.f32 %v3292_v26, %v5553_v27  ;;  %v3295_v21 = vmul.f32 %v3292_v26, %v5556_v36  ;;  %v3296_v24 = vmul.f32 %v3292_v26, %v3099_v5 }
 0x48a   : > { %v3297_v54 = vmul.f32 %v3292_v26, %v3100_v42  ;;  %v3298_v34 = vmul.f32 %v3292_v26, %v3101_v52  ;;  %v3299_v60 = vmul.f32 %v3292_v26, %v3102_v19  ;;  %v3300_v33 = vmul.f32 %v3292_v26, %v3103_v40 }
 0x48b   : > { %v3309_v31 = vadd.f32 %v3301_v56, %v3293_v59  ;;  %v3310_v10 = vadd.f32 %v3302_v14, %v3294_v30  ;;  %v3311_v29 = vadd.f32 %v3303_v28, %v3295_v21  ;;  %v3312_v62 = vadd.f32 %v3304_v11, %v3296_v24 }
 0x48c   : > { %v3313_v37 = vadd.f32 %v3305_v63, %v3297_v54  ;;  %v3314_v27 = vadd.f32 %v3306_v25, %v3298_v34  ;;  %v3315_v36 = vadd.f32 %v3307_v20, %v3299_v60  ;;  %v3316_v16 = vadd.f32 %v3308_v38, %v3300_v33 }
 0x48d   : > { %3317 = vst.msk [vmem:[%s419_s11] sm:$0xff] %vm429_vm0, %v3309_v31  ;;  %3318 = vst.msk [vmem:[%s419_s11 + $0x8] sm:$0xff] %vm429_vm0, %v3310_v10 }
 0x48e   : > { %3319 = vst.msk [vmem:[%s419_s11 + $0x10] sm:$0xff] %vm429_vm0, %v3311_v29  ;;  %3320 = vst.msk [vmem:[%s419_s11 + $0x18] sm:$0xff] %vm429_vm0, %v3312_v62 }
 0x48f   : > { %3321 = vst.msk [vmem:[%s419_s11 + $0x20] sm:$0xff] %vm429_vm0, %v3313_v37  ;;  %3322 = vst.msk [vmem:[%s419_s11 + $0x28] sm:$0xff] %vm429_vm0, %v3314_v27 }
 0x490   : > { %3323 = vst.msk [vmem:[%s419_s11 + $0x30] sm:$0xff] %vm429_vm0, %v3315_v36  ;;  %3324 = vst.msk [vmem:[%s419_s11 + $0x38] sm:$0xff] %vm429_vm0, %v3316_v16 }
 0x491   : > { %4019 = shalt.err (!%p4016_p0)
}
 0x492   : > { %s4020_s22 = scalar_lea.hbm %s5699_s24, 1024  ;;  %s4024_s11 = scalar_lea.hbm %s5804_s5, 2048 }
 0x493   : > { %p4021_p5 = scmp.ne.s32.totalorder %s5699_s24, %s4020_s22  ;;  %p4025_p4 = scmp.lt.s32.totalorder %s5699_s24, %s5804_s5 }
 0x494   : > { %p4026_p6 = scmp.lt.s32.totalorder %s4024_s11, %s4020_s22 }
 0x495   : > { %p4022_p2 = pnand %p4021_p5, %p5805_p11 }
 0x496   : > { %p4027_p8 = por %p4026_p6, %p4025_p4 }
 0x497   : > { %p4023_p1 = pneg %p4022_p2 }
 0x499   : > { %p4028_p3 = pnand %p4027_p8, %p4023_p1 }
 0x49b   : > { %4031 = shalt.err (!%p4028_p3)
}
 0x49c   : > { %s4083_s17 = smov 128   ;;  %s4084_s25 = smov 8  }
 0x49d   : > { %3867 = dma.vmem_to_hbm [thread:$0]  (%p5805_p11), %s5701_s14, 1024, %s5699_s24, %s3326_s23, %s4083_s17, %s4083_s17, %s4084_s25  }
 0x49e PF: > { %s5806_s16 = sld [smem:[#allocation12_spill]]  ;;  %p5809_p9 = scmp.ge.s32.totalorder %s4074_s20, 2 }
 0x49f   : > { %s5807_s30 = sld [smem:[#allocation13_spill]] }
 0x4a4   : > { %s3354_s12 = sand.u32 1, %s5806_s16  }
 0x4a5   : > { %p5808_p7 = scmp.ne.s32.totalorder %s5807_s30, 0  ;;  %s3355_s22 = scalar_lea.sflag [#allocation5], %s3354_s12 }
 0x4a7   : > { %p3878_p10 = pnand %p5809_p9, %p5808_p7 }
 0x4a9   : > { %p3879_p12 = pneg %p3878_p10 }
 0x4ab   : > { %4057 = dma.done.wait (%p3879_p12), %s3355_s22, 1024  }
 0x4ac   : > { %4059 = vsyncadd (%p3879_p12), %s3355_s22, 4294966272  ;;  %s5810_s20 = sld [smem:[#allocation14_spill]]  ;;  %s5811_s17 = smov %s4066_s18 }
 0x4ad   : > { %s5812_s18 = smov %s4070_s19  ;;  %s5813_s19 = smov %s4219_s26 }
 0x4b2   : > { %p25_p13 = scmp.ge.s32.totalorder %s5810_s20, 4  }
 0x4b4   :  { %27 = sbr.rel (!%p25_p13) target bundleno = 9 (0x9), region = 124 }
 0x4b9   :  { %3360 = vsyncpa [#allocation4], 1 }
 0x4ba   :  { %3362 = vsyncpa [#allocation4 + $0x1], 1 }
 0x4bb   :  { %3363 = vsyncpa [#allocation7], 1 }
 0x4bc   :  { %3364 = vsyncpa [#allocation5], 1 }
 0x4bd   :  { %3366 = vsyncpa [#allocation5 + $0x1], 1 }

</bundles_post_ra>
